<compile_context>
chip_gen: v7x
topology: tpu7x:2x2x1
jax: 0.10.0
libtpu: 0.0.40
codegen_flags: <defaults>
</compile_context>

<pallas_src>
import functools

import numpy as np
import jax
import jax.numpy as jnp
from jax.experimental import pallas as pl
from jax.experimental.pallas import tpu as pltpu

A = 9          # anchors per position: 3 ratios x 3 scales
MID = 1024     # mid_layers in RPN.__init__
NOUT = 128     # lane-padded fused head width: [18 interleaved cls probs | 36 reg | 74 zero pad]


def rpn_kernel(xa_ref, xb_ref, w1_ref, b1_ref, wh_ref, bh_ref, out_ref):
    """One (batch image, row band) grid step.

    xa_ref : (1, tr, W+2, Cp) bf16  padded-input rows [band, band+tr)
    xb_ref : (1, 2,  W+2, Cp) bf16  halo rows [band+tr, band+tr+2)
    w1_ref : (9, Cp, MID)     bf16  conv tap weights, tap index = kh*3+kw
    b1_ref : (1, MID)         f32
    wh_ref : (MID, NOUT)      bf16  fused (cls-diff | reg) head
    bh_ref : (1, NOUT)        f32
    out_ref: (tr, W, NOUT)    f32
    """
    tr, W, _ = out_ref.shape

    b1 = b1_ref[...]
    wh = wh_ref[...]
    bh = bh_ref[...]
    lane = jax.lax.broadcasted_iota(jnp.int32, (W, NOUT), 1)

    # --- 3x3 conv via in-kernel im2col -------------------------------------------------
    # Tap-outer ("weight stationary") order: the tr row-dots sharing one (Cp, MID) tap
    # weight are issued back to back so the MXU can keep the RHS staged.
    acc = [None] * tr
    for kh in range(3):
        for kw in range(3):
            rhs = w1_ref[kh * 3 + kw]                                   # (Cp, MID) bf16
            for i in range(tr):
                p = i + kh
                src, row = (xa_ref, p) if p < tr else (xb_ref, p - tr)
                lhs = src[0, row, kw:kw + W, :]                         # (W, Cp) bf16
                d = jnp.dot(lhs, rhs, preferred_element_type=jnp.float32)
                acc[i] = d if acc[i] is None else acc[i] + d

    # --- bias + ReLU + fused heads + pairwise softmax (as sigmoid), per row -------------
    # Lanes 2a / 2a+1 hold the cls logit DIFFERENCES (l_{2a}-l_{2a+1}) / (l_{2a+1}-l_{2a}),
    # so softmax over each torch channel pair == elementwise sigmoid.  Lanes 18..53 are the
    # raw reg outputs, lanes 54..127 zero padding (kept for a lane-dense 128-wide store).
    for i in range(tr):
        h = jnp.maximum(acc[i] + b1, 0.0).astype(jnp.bfloat16)          # (W, MID)
        full = jnp.dot(h, wh, preferred_element_type=jnp.float32) + bh  # (W, NOUT) f32
        # sigmoid(d) = 1/(1+exp(-d)); divide -> EUP approximate reciprocal (P0+P1 ~ 1).
        prob = pl.reciprocal(1.0 + jnp.exp(-full), approx=True)
        out_ref[i] = jnp.where(lane < 2 * A, prob, full)                 # dense 128-lane store


def _default_band_rows(H, W, batch, target_rows=512):
    """Even row-band height so tr*W ~ target MXU M rows; prefer an even total grid-step
    count so v7x's two TensorCores split the ("parallel","parallel") grid evenly."""
    tr = max(2, min(H, target_rows // max(W, 1)))
    tr -= tr % 2
    tr = max(tr, 2)
    nb = -(-H // tr)
    if (batch * nb) % 2 and tr > 2:
        alt = tr - 2
        if (batch * (-(-H // alt))) % 2 == 0:
            tr = alt
    return tr


def rpn_forward(x_nchw, params, *, band_rows=None):
    """Pallas implementation of RPN.forward.

    params = (w1_taps (9, Cp, MID) bf16, b1 (1, MID) f32,
              wh (MID, NOUT) bf16,       bh (1, NOUT) f32)
    Returns (cls_softmax (N*H*W*9, 2), reg (N*H*W*9, 4)).
    """
    w1_taps, b1_flat, wh_flat, bh_flat = params
    Cp = w1_taps.shape[1]

    x = jnp.transpose(x_nchw, (0, 2, 3, 1))            # -> NHWC
    B, H, W, C = x.shape

    tr = band_rows if band_rows is not None else _default_band_rows(H, W, B)
    assert tr % 2 == 0, "band_rows must be even (halo block index = (r+1)*tr/2)"
    num_bands = -(-H // tr)
    H_pad = num_bands * tr
    R_pad = H_pad + tr                # >= H_pad + 2 halo rows, and a multiple of tr
    Wp2 = W + 2
    tr_half = tr // 2

    # Single spatial zero-pad (conv padding=1) + channel pad to a multiple of 8; this is
    # the only wrapper-side copy of the feature map (no 9x im2col materialization).
    x_pad = jnp.pad(x, ((0, 0), (1, R_pad - H - 1), (1, 1), (0, Cp - C))).astype(jnp.bfloat16)

    grid = (B, num_bands)
    out = pl.pallas_call(
        rpn_kernel,
        out_shape=jax.ShapeDtypeStruct((B * H_pad, W, NOUT), jnp.float32),
        grid_spec=pltpu.PrefetchScalarGridSpec(
            num_scalar_prefetch=0,
            grid=grid,
            in_specs=[
                # main row band (auto double-buffered -> band DMA overlaps MXU work)
                pl.BlockSpec((1, tr, Wp2, Cp), lambda b, r: (b, r, 0, 0)),
                # 2-row halo = first rows of the NEXT band (same array, 2-row blocks)
                pl.BlockSpec((1, 2, Wp2, Cp), lambda b, r: (b, (r + 1) * tr_half, 0, 0)),
                # resident constant-index operands: single-buffered to save VMEM
                pl.BlockSpec((9, Cp, MID), lambda b, r: (0, 0, 0),
                             pipeline_mode=pl.Buffered(1)),
                pl.BlockSpec((1, MID), lambda b, r: (0, 0),
                             pipeline_mode=pl.Buffered(1)),
                pl.BlockSpec((MID, NOUT), lambda b, r: (0, 0),
                             pipeline_mode=pl.Buffered(1)),
                pl.BlockSpec((1, NOUT), lambda b, r: (0, 0),
                             pipeline_mode=pl.Buffered(1)),
            ],
            out_specs=pl.BlockSpec((tr, W, NOUT),
                                   lambda b, r: (b * num_bands + r, 0, 0))),
        compiler_params=pltpu.CompilerParams(
            dimension_semantics=("parallel", "parallel"),
            vmem_limit_bytes=48 * 1024 * 1024),
    )(x_pad, x_pad, w1_taps, b1_flat, wh_flat, bh_flat)

    # Epilogue: drop padded tail rows.  cls lanes are already pair-interleaved, so the
    # torch .view(-1, 2)/.view(-1, 4) is a pure slice + reshape (no lane gather).
    out = out.reshape(B, H_pad, W, NOUT)[:, :H].reshape(B * H * W, NOUT)
    cls_out = out[:, :2 * A].reshape(-1, 2)
    reg_out = out[:, 2 * A:6 * A].reshape(-1, 4)
    return cls_out, reg_out


def reference_forward(x_nchw, w_conv, b_conv, w_cls, b_cls, w_reg, b_reg):
    """Pure-JAX f32 reference matching the PyTorch forward semantics."""
    h = jax.lax.conv_general_dilated(
        x_nchw, w_conv, (1, 1), 'SAME',
        dimension_numbers=('NCHW', 'OIHW', 'NCHW')) + b_conv[None, :, None, None]
    h = jnp.maximum(h, 0.0)
    cls = jax.lax.conv_general_dilated(
        h, w_cls, (1, 1), 'VALID',
        dimension_numbers=('NCHW', 'OIHW', 'NCHW')) + b_cls[None, :, None, None]
    reg = jax.lax.conv_general_dilated(
        h, w_reg, (1, 1), 'VALID',
        dimension_numbers=('NCHW', 'OIHW', 'NCHW')) + b_reg[None, :, None, None]
    cls = jnp.transpose(cls, (0, 2, 3, 1)).reshape(-1, 2)
    reg = jnp.transpose(reg, (0, 2, 3, 1)).reshape(-1, 4)
    cls = jax.nn.softmax(cls, axis=1)
    return cls, reg


if __name__ == "__main__":
    # Small shapes consistent with the module's forward: NCHW feature map.
    B, in_dim, H, W = 2, 4, 16, 16

    key = jax.random.PRNGKey(0)
    kx, k1, k2, k3, kb1, kb2, kb3 = jax.random.split(key, 7)

    x = jax.random.normal(kx, (B, in_dim, H, W), jnp.float32)

    # Deterministic parameter init (std=0.01 normals, like torch.nn.init.normal_).
    w_conv = 0.01 * jax.random.normal(k1, (MID, in_dim, 3, 3), jnp.float32)
    w_cls = 0.01 * jax.random.normal(k2, (2 * A, MID, 1, 1), jnp.float32)
    w_reg = 0.01 * jax.random.normal(k3, (4 * A, MID, 1, 1), jnp.float32)
    b_conv = 0.01 * jax.random.normal(kb1, (MID,), jnp.float32)
    b_cls = 0.01 * jax.random.normal(kb2, (2 * A,), jnp.float32)
    b_reg = 0.01 * jax.random.normal(kb3, (4 * A,), jnp.float32)

    # --- Repack weights for the kernel --------------------------------------------------
    Cp = max(8, ((in_dim + 7) // 8) * 8)          # pad channels to a multiple of 8
    # conv taps: (O, I, kh, kw) -> (kh*3+kw, I, O), channel-padded, bf16.
    w1_taps = jnp.transpose(w_conv, (2, 3, 1, 0)).reshape(9, in_dim, MID)
    w1_taps = jnp.pad(w1_taps, ((0, 0), (0, Cp - in_dim), (0, 0))).astype(jnp.bfloat16)
    b1_flat = b_conv.reshape(1, MID)

    # cls: torch pairs are channels (2a, 2a+1).  Fold the pairwise softmax into
    # INTERLEAVED logit differences so the kernel does an elementwise sigmoid and the
    # wrapper epilogue is a plain reshape:
    #   lane 2a   -> l_{2a}   - l_{2a+1}   => sigmoid = P for channel 2a
    #   lane 2a+1 -> l_{2a+1} - l_{2a}     => sigmoid = P for channel 2a+1
    perm = np.arange(2 * A).reshape(-1, 2)[:, ::-1].reshape(-1)       # [1,0,3,2,...]
    wc_t = w_cls.reshape(2 * A, MID).T                                # (MID, 18)
    wd = wc_t - wc_t[:, perm]
    wr_t = w_reg.reshape(4 * A, MID).T                                # (MID, 36)
    pad_w = jnp.zeros((MID, NOUT - 6 * A), jnp.float32)
    wh_flat = jnp.concatenate([wd, wr_t, pad_w], axis=1).astype(jnp.bfloat16)

    bd = b_cls - b_cls[perm]
    bh_flat = jnp.concatenate(
        [bd, b_reg, jnp.zeros((NOUT - 6 * A,), jnp.float32)]).reshape(1, NOUT)

    params = (w1_taps, b1_flat, wh_flat, bh_flat)

    # band_rows=6 exercises multi-band grids, the cross-band halo path, and the padded-tail
    # slicing (H=16 is not a multiple of 6); the default targets ~512-row tiles at
    # production feature-map sizes.
    fwd = jax.jit(functools.partial(rpn_forward, band_rows=6))
    cls_out, reg_out = fwd(x, params)
    jax.block_until_ready((cls_out, reg_out))

    cls_ref, reg_ref = reference_forward(x, w_conv, b_conv, w_cls, b_cls, w_reg, b_reg)
    # bf16 inputs/weights + approximate reciprocal -> looser tolerances than the f32 path.
    np.testing.assert_allclose(np.asarray(cls_out), np.asarray(cls_ref), atol=1e-2, rtol=1e-2)
    np.testing.assert_allclose(np.asarray(reg_out), np.asarray(reg_ref), atol=5e-3, rtol=2e-2)

    assert cls_out.shape == (B * H * W * A, 2)
    assert reg_out.shape == (B * H * W * A, 4)

    # TODO(synk): get_target / get_proposals / get_image_anchors / NMS / anchor sampling are
    # host-side numpy utilities (not part of forward); they are intentionally not ported.
    print("KERNEL_OK")
</pallas_src>

<mosaic_0001>
module attributes {stable_mosaic.version = 11 : i64} {
  func.func @rpn_kernel(%arg0: i32, %arg1: i32, %arg2: memref<1x6x18x8xbf16, #tpu.memory_space<vmem>>, %arg3: memref<1x2x18x8xbf16, #tpu.memory_space<vmem>>, %arg4: memref<9x8x1024xbf16, #tpu.memory_space<vmem>>, %arg5: memref<1x1024xf32, #tpu.memory_space<vmem>>, %arg6: memref<1024x128xbf16, #tpu.memory_space<vmem>>, %arg7: memref<1x128xf32, #tpu.memory_space<vmem>>, %arg8: memref<6x16x128xf32, #tpu.memory_space<vmem>>) attributes {dimension_semantics = [#tpu.dimension_semantics<parallel>, #tpu.dimension_semantics<parallel>], iteration_bounds = array<i64: 2, 3>, scalar_prefetch = 0 : i64, scratch_operands = 0 : i64, tpu.core_type = #tpu.core_type<tc>, window_params = [{transform_indices = @transform_0, window_bounds = array<i64: 1, 6, 18, 8>}, {transform_indices = @transform_1, window_bounds = array<i64: 1, 2, 18, 8>}, {pipeline_mode = #tpu.pipeline_mode<synchronous>, transform_indices = @transform_2, window_bounds = array<i64: 9, 8, 1024>}, {pipeline_mode = #tpu.pipeline_mode<synchronous>, transform_indices = @transform_3, window_bounds = array<i64: 1, 1024>}, {pipeline_mode = #tpu.pipeline_mode<synchronous>, transform_indices = @transform_4, window_bounds = array<i64: 1024, 128>}, {pipeline_mode = #tpu.pipeline_mode<synchronous>, transform_indices = @transform_5, window_bounds = array<i64: 1, 128>}, {transform_indices = @transform_6, window_bounds = array<i64: 6, 16, 128>}]} {
    %c0 = arith.constant 0 : index
    %c0_0 = arith.constant 0 : index
    %0 = vector.load %arg5[%c0, %c0_0] : memref<1x1024xf32, #tpu.memory_space<vmem>>, vector<1x1024xf32>
    %c0_1 = arith.constant 0 : index
    %c0_2 = arith.constant 0 : index
    %1 = vector.load %arg6[%c0_1, %c0_2] : memref<1024x128xbf16, #tpu.memory_space<vmem>>, vector<1024x128xbf16>
    %c0_3 = arith.constant 0 : index
    %c0_4 = arith.constant 0 : index
    %2 = vector.load %arg7[%c0_3, %c0_4] : memref<1x128xf32, #tpu.memory_space<vmem>>, vector<1x128xf32>
    %3 = tpu.iota {dimensions = array<i32: 1>} : vector<16x128xi32>
    %c0_5 = arith.constant 0 : index
    %c0_6 = arith.constant 0 : index
    %c0_7 = arith.constant 0 : index
    %4 = vector.load %arg4[%c0_5, %c0_6, %c0_7] : memref<9x8x1024xbf16, #tpu.memory_space<vmem>>, vector<1x8x1024xbf16>
    %5 = vector.shape_cast %4 : vector<1x8x1024xbf16> to vector<8x1024xbf16>
    %c0_8 = arith.constant 0 : index
    %c0_9 = arith.constant 0 : index
    %c0_10 = arith.constant 0 : index
    %c0_11 = arith.constant 0 : index
    %6 = vector.load %arg2[%c0_8, %c0_9, %c0_10, %c0_11] : memref<1x6x18x8xbf16, #tpu.memory_space<vmem>>, vector<1x1x16x8xbf16>
    %7 = vector.shape_cast %6 : vector<1x1x16x8xbf16> to vector<16x8xbf16>
    %cst = arith.constant dense<0.000000e+00> : vector<16x1024xf32>
    %8 = tpu.matmul %7, %5, %cst {dimension_numbers = #tpu.dot_dimension_numbers<[1], [0], [0], [1], [0, 0, 1, 1], [], []>} : vector<16x8xbf16>, vector<8x1024xbf16>, vector<16x1024xf32> -> vector<16x1024xf32>
    %c0_12 = arith.constant 0 : index
    %c1 = arith.constant 1 : index
    %c0_13 = arith.constant 0 : index
    %c0_14 = arith.constant 0 : index
    %9 = vector.load %arg2[%c0_12, %c1, %c0_13, %c0_14] : memref<1x6x18x8xbf16, #tpu.memory_space<vmem>>, vector<1x1x16x8xbf16>
    %10 = vector.shape_cast %9 : vector<1x1x16x8xbf16> to vector<16x8xbf16>
    %cst_15 = arith.constant dense<0.000000e+00> : vector<16x1024xf32>
    %11 = tpu.matmul %10, %5, %cst_15 {dimension_numbers = #tpu.dot_dimension_numbers<[1], [0], [0], [1], [0, 0, 1, 1], [], []>} : vector<16x8xbf16>, vector<8x1024xbf16>, vector<16x1024xf32> -> vector<16x1024xf32>
    %c0_16 = arith.constant 0 : index
    %c2 = arith.constant 2 : index
    %c0_17 = arith.constant 0 : index
    %c0_18 = arith.constant 0 : index
    %12 = vector.load %arg2[%c0_16, %c2, %c0_17, %c0_18] : memref<1x6x18x8xbf16, #tpu.memory_space<vmem>>, vector<1x1x16x8xbf16>
    %13 = vector.shape_cast %12 : vector<1x1x16x8xbf16> to vector<16x8xbf16>
    %cst_19 = arith.constant dense<0.000000e+00> : vector<16x1024xf32>
    %14 = tpu.matmul %13, %5, %cst_19 {dimension_numbers = #tpu.dot_dimension_numbers<[1], [0], [0], [1], [0, 0, 1, 1], [], []>} : vector<16x8xbf16>, vector<8x1024xbf16>, vector<16x1024xf32> -> vector<16x1024xf32>
    %c0_20 = arith.constant 0 : index
    %c3 = arith.constant 3 : index
    %c0_21 = arith.constant 0 : index
    %c0_22 = arith.constant 0 : index
    %15 = vector.load %arg2[%c0_20, %c3, %c0_21, %c0_22] : memref<1x6x18x8xbf16, #tpu.memory_space<vmem>>, vector<1x1x16x8xbf16>
    %16 = vector.shape_cast %15 : vector<1x1x16x8xbf16> to vector<16x8xbf16>
    %cst_23 = arith.constant dense<0.000000e+00> : vector<16x1024xf32>
    %17 = tpu.matmul %16, %5, %cst_23 {dimension_numbers = #tpu.dot_dimension_numbers<[1], [0], [0], [1], [0, 0, 1, 1], [], []>} : vector<16x8xbf16>, vector<8x1024xbf16>, vector<16x1024xf32> -> vector<16x1024xf32>
    %c0_24 = arith.constant 0 : index
    %c4 = arith.constant 4 : index
    %c0_25 = arith.constant 0 : index
    %c0_26 = arith.constant 0 : index
    %18 = vector.load %arg2[%c0_24, %c4, %c0_25, %c0_26] : memref<1x6x18x8xbf16, #tpu.memory_space<vmem>>, vector<1x1x16x8xbf16>
    %19 = vector.shape_cast %18 : vector<1x1x16x8xbf16> to vector<16x8xbf16>
    %cst_27 = arith.constant dense<0.000000e+00> : vector<16x1024xf32>
    %20 = tpu.matmul %19, %5, %cst_27 {dimension_numbers = #tpu.dot_dimension_numbers<[1], [0], [0], [1], [0, 0, 1, 1], [], []>} : vector<16x8xbf16>, vector<8x1024xbf16>, vector<16x1024xf32> -> vector<16x1024xf32>
    %c0_28 = arith.constant 0 : index
    %c5 = arith.constant 5 : index
    %c0_29 = arith.constant 0 : index
    %c0_30 = arith.constant 0 : index
    %21 = vector.load %arg2[%c0_28, %c5, %c0_29, %c0_30] : memref<1x6x18x8xbf16, #tpu.memory_space<vmem>>, vector<1x1x16x8xbf16>
    %22 = vector.shape_cast %21 : vector<1x1x16x8xbf16> to vector<16x8xbf16>
    %cst_31 = arith.constant dense<0.000000e+00> : vector<16x1024xf32>
    %23 = tpu.matmul %22, %5, %cst_31 {dimension_numbers = #tpu.dot_dimension_numbers<[1], [0], [0], [1], [0, 0, 1, 1], [], []>} : vector<16x8xbf16>, vector<8x1024xbf16>, vector<16x1024xf32> -> vector<16x1024xf32>
    %c1_32 = arith.constant 1 : index
    %c0_33 = arith.constant 0 : index
    %c0_34 = arith.constant 0 : index
    %24 = vector.load %arg4[%c1_32, %c0_33, %c0_34] : memref<9x8x1024xbf16, #tpu.memory_space<vmem>>, vector<1x8x1024xbf16>
    %25 = vector.shape_cast %24 : vector<1x8x1024xbf16> to vector<8x1024xbf16>
    %c0_35 = arith.constant 0 : index
    %c0_36 = arith.constant 0 : index
    %c1_37 = arith.constant 1 : index
    %c0_38 = arith.constant 0 : index
    %26 = vector.load %arg2[%c0_35, %c0_36, %c1_37, %c0_38] : memref<1x6x18x8xbf16, #tpu.memory_space<vmem>>, vector<1x1x16x8xbf16>
    %27 = vector.shape_cast %26 : vector<1x1x16x8xbf16> to vector<16x8xbf16>
    %cst_39 = arith.constant dense<0.000000e+00> : vector<16x1024xf32>
    %28 = tpu.matmul %27, %25, %cst_39 {dimension_numbers = #tpu.dot_dimension_numbers<[1], [0], [0], [1], [0, 0, 1, 1], [], []>} : vector<16x8xbf16>, vector<8x1024xbf16>, vector<16x1024xf32> -> vector<16x1024xf32>
    %29 = arith.addf %8, %28 : vector<16x1024xf32>
    %c0_40 = arith.constant 0 : index
    %c1_41 = arith.constant 1 : index
    %c1_42 = arith.constant 1 : index
    %c0_43 = arith.constant 0 : index
    %30 = vector.load %arg2[%c0_40, %c1_41, %c1_42, %c0_43] : memref<1x6x18x8xbf16, #tpu.memory_space<vmem>>, vector<1x1x16x8xbf16>
    %31 = vector.shape_cast %30 : vector<1x1x16x8xbf16> to vector<16x8xbf16>
    %cst_44 = arith.constant dense<0.000000e+00> : vector<16x1024xf32>
    %32 = tpu.matmul %31, %25, %cst_44 {dimension_numbers = #tpu.dot_dimension_numbers<[1], [0], [0], [1], [0, 0, 1, 1], [], []>} : vector<16x8xbf16>, vector<8x1024xbf16>, vector<16x1024xf32> -> vector<16x1024xf32>
    %33 = arith.addf %11, %32 : vector<16x1024xf32>
    %c0_45 = arith.constant 0 : index
    %c2_46 = arith.constant 2 : index
    %c1_47 = arith.constant 1 : index
    %c0_48 = arith.constant 0 : index
    %34 = vector.load %arg2[%c0_45, %c2_46, %c1_47, %c0_48] : memref<1x6x18x8xbf16, #tpu.memory_space<vmem>>, vector<1x1x16x8xbf16>
    %35 = vector.shape_cast %34 : vector<1x1x16x8xbf16> to vector<16x8xbf16>
    %cst_49 = arith.constant dense<0.000000e+00> : vector<16x1024xf32>
    %36 = tpu.matmul %35, %25, %cst_49 {dimension_numbers = #tpu.dot_dimension_numbers<[1], [0], [0], [1], [0, 0, 1, 1], [], []>} : vector<16x8xbf16>, vector<8x1024xbf16>, vector<16x1024xf32> -> vector<16x1024xf32>
    %37 = arith.addf %14, %36 : vector<16x1024xf32>
    %c0_50 = arith.constant 0 : index
    %c3_51 = arith.constant 3 : index
    %c1_52 = arith.constant 1 : index
    %c0_53 = arith.constant 0 : index
    %38 = vector.load %arg2[%c0_50, %c3_51, %c1_52, %c0_53] : memref<1x6x18x8xbf16, #tpu.memory_space<vmem>>, vector<1x1x16x8xbf16>
    %39 = vector.shape_cast %38 : vector<1x1x16x8xbf16> to vector<16x8xbf16>
    %cst_54 = arith.constant dense<0.000000e+00> : vector<16x1024xf32>
    %40 = tpu.matmul %39, %25, %cst_54 {dimension_numbers = #tpu.dot_dimension_numbers<[1], [0], [0], [1], [0, 0, 1, 1], [], []>} : vector<16x8xbf16>, vector<8x1024xbf16>, vector<16x1024xf32> -> vector<16x1024xf32>
    %41 = arith.addf %17, %40 : vector<16x1024xf32>
    %c0_55 = arith.constant 0 : index
    %c4_56 = arith.constant 4 : index
    %c1_57 = arith.constant 1 : index
    %c0_58 = arith.constant 0 : index
    %42 = vector.load %arg2[%c0_55, %c4_56, %c1_57, %c0_58] : memref<1x6x18x8xbf16, #tpu.memory_space<vmem>>, vector<1x1x16x8xbf16>
    %43 = vector.shape_cast %42 : vector<1x1x16x8xbf16> to vector<16x8xbf16>
    %cst_59 = arith.constant dense<0.000000e+00> : vector<16x1024xf32>
    %44 = tpu.matmul %43, %25, %cst_59 {dimension_numbers = #tpu.dot_dimension_numbers<[1], [0], [0], [1], [0, 0, 1, 1], [], []>} : vector<16x8xbf16>, vector<8x1024xbf16>, vector<16x1024xf32> -> vector<16x1024xf32>
    %45 = arith.addf %20, %44 : vector<16x1024xf32>
    %c0_60 = arith.constant 0 : index
    %c5_61 = arith.constant 5 : index
    %c1_62 = arith.constant 1 : index
    %c0_63 = arith.constant 0 : index
    %46 = vector.load %arg2[%c0_60, %c5_61, %c1_62, %c0_63] : memref<1x6x18x8xbf16, #tpu.memory_space<vmem>>, vector<1x1x16x8xbf16>
    %47 = vector.shape_cast %46 : vector<1x1x16x8xbf16> to vector<16x8xbf16>
    %cst_64 = arith.constant dense<0.000000e+00> : vector<16x1024xf32>
    %48 = tpu.matmul %47, %25, %cst_64 {dimension_numbers = #tpu.dot_dimension_numbers<[1], [0], [0], [1], [0, 0, 1, 1], [], []>} : vector<16x8xbf16>, vector<8x1024xbf16>, vector<16x1024xf32> -> vector<16x1024xf32>
    %49 = arith.addf %23, %48 : vector<16x1024xf32>
    %c2_65 = arith.constant 2 : index
    %c0_66 = arith.constant 0 : index
    %c0_67 = arith.constant 0 : index
    %50 = vector.load %arg4[%c2_65, %c0_66, %c0_67] : memref<9x8x1024xbf16, #tpu.memory_space<vmem>>, vector<1x8x1024xbf16>
    %51 = vector.shape_cast %50 : vector<1x8x1024xbf16> to vector<8x1024xbf16>
    %c0_68 = arith.constant 0 : index
    %c0_69 = arith.constant 0 : index
    %c2_70 = arith.constant 2 : index
    %c0_71 = arith.constant 0 : index
    %52 = vector.load %arg2[%c0_68, %c0_69, %c2_70, %c0_71] : memref<1x6x18x8xbf16, #tpu.memory_space<vmem>>, vector<1x1x16x8xbf16>
    %53 = vector.shape_cast %52 : vector<1x1x16x8xbf16> to vector<16x8xbf16>
    %cst_72 = arith.constant dense<0.000000e+00> : vector<16x1024xf32>
    %54 = tpu.matmul %53, %51, %cst_72 {dimension_numbers = #tpu.dot_dimension_numbers<[1], [0], [0], [1], [0, 0, 1, 1], [], []>} : vector<16x8xbf16>, vector<8x1024xbf16>, vector<16x1024xf32> -> vector<16x1024xf32>
    %55 = arith.addf %29, %54 : vector<16x1024xf32>
    %c0_73 = arith.constant 0 : index
    %c1_74 = arith.constant 1 : index
    %c2_75 = arith.constant 2 : index
    %c0_76 = arith.constant 0 : index
    %56 = vector.load %arg2[%c0_73, %c1_74, %c2_75, %c0_76] : memref<1x6x18x8xbf16, #tpu.memory_space<vmem>>, vector<1x1x16x8xbf16>
    %57 = vector.shape_cast %56 : vector<1x1x16x8xbf16> to vector<16x8xbf16>
    %cst_77 = arith.constant dense<0.000000e+00> : vector<16x1024xf32>
    %58 = tpu.matmul %57, %51, %cst_77 {dimension_numbers = #tpu.dot_dimension_numbers<[1], [0], [0], [1], [0, 0, 1, 1], [], []>} : vector<16x8xbf16>, vector<8x1024xbf16>, vector<16x1024xf32> -> vector<16x1024xf32>
    %59 = arith.addf %33, %58 : vector<16x1024xf32>
    %c0_78 = arith.constant 0 : index
    %c2_79 = arith.constant 2 : index
    %c2_80 = arith.constant 2 : index
    %c0_81 = arith.constant 0 : index
    %60 = vector.load %arg2[%c0_78, %c2_79, %c2_80, %c0_81] : memref<1x6x18x8xbf16, #tpu.memory_space<vmem>>, vector<1x1x16x8xbf16>
    %61 = vector.shape_cast %60 : vector<1x1x16x8xbf16> to vector<16x8xbf16>
    %cst_82 = arith.constant dense<0.000000e+00> : vector<16x1024xf32>
    %62 = tpu.matmul %61, %51, %cst_82 {dimension_numbers = #tpu.dot_dimension_numbers<[1], [0], [0], [1], [0, 0, 1, 1], [], []>} : vector<16x8xbf16>, vector<8x1024xbf16>, vector<16x1024xf32> -> vector<16x1024xf32>
    %63 = arith.addf %37, %62 : vector<16x1024xf32>
    %c0_83 = arith.constant 0 : index
    %c3_84 = arith.constant 3 : index
    %c2_85 = arith.constant 2 : index
    %c0_86 = arith.constant 0 : index
    %64 = vector.load %arg2[%c0_83, %c3_84, %c2_85, %c0_86] : memref<1x6x18x8xbf16, #tpu.memory_space<vmem>>, vector<1x1x16x8xbf16>
    %65 = vector.shape_cast %64 : vector<1x1x16x8xbf16> to vector<16x8xbf16>
    %cst_87 = arith.constant dense<0.000000e+00> : vector<16x1024xf32>
    %66 = tpu.matmul %65, %51, %cst_87 {dimension_numbers = #tpu.dot_dimension_numbers<[1], [0], [0], [1], [0, 0, 1, 1], [], []>} : vector<16x8xbf16>, vector<8x1024xbf16>, vector<16x1024xf32> -> vector<16x1024xf32>
    %67 = arith.addf %41, %66 : vector<16x1024xf32>
    %c0_88 = arith.constant 0 : index
    %c4_89 = arith.constant 4 : index
    %c2_90 = arith.constant 2 : index
    %c0_91 = arith.constant 0 : index
    %68 = vector.load %arg2[%c0_88, %c4_89, %c2_90, %c0_91] : memref<1x6x18x8xbf16, #tpu.memory_space<vmem>>, vector<1x1x16x8xbf16>
    %69 = vector.shape_cast %68 : vector<1x1x16x8xbf16> to vector<16x8xbf16>
    %cst_92 = arith.constant dense<0.000000e+00> : vector<16x1024xf32>
    %70 = tpu.matmul %69, %51, %cst_92 {dimension_numbers = #tpu.dot_dimension_numbers<[1], [0], [0], [1], [0, 0, 1, 1], [], []>} : vector<16x8xbf16>, vector<8x1024xbf16>, vector<16x1024xf32> -> vector<16x1024xf32>
    %71 = arith.addf %45, %70 : vector<16x1024xf32>
    %c0_93 = arith.constant 0 : index
    %c5_94 = arith.constant 5 : index
    %c2_95 = arith.constant 2 : index
    %c0_96 = arith.constant 0 : index
    %72 = vector.load %arg2[%c0_93, %c5_94, %c2_95, %c0_96] : memref<1x6x18x8xbf16, #tpu.memory_space<vmem>>, vector<1x1x16x8xbf16>
    %73 = vector.shape_cast %72 : vector<1x1x16x8xbf16> to vector<16x8xbf16>
    %cst_97 = arith.constant dense<0.000000e+00> : vector<16x1024xf32>
    %74 = tpu.matmul %73, %51, %cst_97 {dimension_numbers = #tpu.dot_dimension_numbers<[1], [0], [0], [1], [0, 0, 1, 1], [], []>} : vector<16x8xbf16>, vector<8x1024xbf16>, vector<16x1024xf32> -> vector<16x1024xf32>
    %75 = arith.addf %49, %74 : vector<16x1024xf32>
    %c3_98 = arith.constant 3 : index
    %c0_99 = arith.constant 0 : index
    %c0_100 = arith.constant 0 : index
    %76 = vector.load %arg4[%c3_98, %c0_99, %c0_100] : memref<9x8x1024xbf16, #tpu.memory_space<vmem>>, vector<1x8x1024xbf16>
    %77 = vector.shape_cast %76 : vector<1x8x1024xbf16> to vector<8x1024xbf16>
    %c0_101 = arith.constant 0 : index
    %c1_102 = arith.constant 1 : index
    %c0_103 = arith.constant 0 : index
    %c0_104 = arith.constant 0 : index
    %78 = vector.load %arg2[%c0_101, %c1_102, %c0_103, %c0_104] : memref<1x6x18x8xbf16, #tpu.memory_space<vmem>>, vector<1x1x16x8xbf16>
    %79 = vector.shape_cast %78 : vector<1x1x16x8xbf16> to vector<16x8xbf16>
    %cst_105 = arith.constant dense<0.000000e+00> : vector<16x1024xf32>
    %80 = tpu.matmul %79, %77, %cst_105 {dimension_numbers = #tpu.dot_dimension_numbers<[1], [0], [0], [1], [0, 0, 1, 1], [], []>} : vector<16x8xbf16>, vector<8x1024xbf16>, vector<16x1024xf32> -> vector<16x1024xf32>
    %81 = arith.addf %55, %80 : vector<16x1024xf32>
    %c0_106 = arith.constant 0 : index
    %c2_107 = arith.constant 2 : index
    %c0_108 = arith.constant 0 : index
    %c0_109 = arith.constant 0 : index
    %82 = vector.load %arg2[%c0_106, %c2_107, %c0_108, %c0_109] : memref<1x6x18x8xbf16, #tpu.memory_space<vmem>>, vector<1x1x16x8xbf16>
    %83 = vector.shape_cast %82 : vector<1x1x16x8xbf16> to vector<16x8xbf16>
    %cst_110 = arith.constant dense<0.000000e+00> : vector<16x1024xf32>
    %84 = tpu.matmul %83, %77, %cst_110 {dimension_numbers = #tpu.dot_dimension_numbers<[1], [0], [0], [1], [0, 0, 1, 1], [], []>} : vector<16x8xbf16>, vector<8x1024xbf16>, vector<16x1024xf32> -> vector<16x1024xf32>
    %85 = arith.addf %59, %84 : vector<16x1024xf32>
    %c0_111 = arith.constant 0 : index
    %c3_112 = arith.constant 3 : index
    %c0_113 = arith.constant 0 : index
    %c0_114 = arith.constant 0 : index
    %86 = vector.load %arg2[%c0_111, %c3_112, %c0_113, %c0_114] : memref<1x6x18x8xbf16, #tpu.memory_space<vmem>>, vector<1x1x16x8xbf16>
    %87 = vector.shape_cast %86 : vector<1x1x16x8xbf16> to vector<16x8xbf16>
    %cst_115 = arith.constant dense<0.000000e+00> : vector<16x1024xf32>
    %88 = tpu.matmul %87, %77, %cst_115 {dimension_numbers = #tpu.dot_dimension_numbers<[1], [0], [0], [1], [0, 0, 1, 1], [], []>} : vector<16x8xbf16>, vector<8x1024xbf16>, vector<16x1024xf32> -> vector<16x1024xf32>
    %89 = arith.addf %63, %88 : vector<16x1024xf32>
    %c0_116 = arith.constant 0 : index
    %c4_117 = arith.constant 4 : index
    %c0_118 = arith.constant 0 : index
    %c0_119 = arith.constant 0 : index
    %90 = vector.load %arg2[%c0_116, %c4_117, %c0_118, %c0_119] : memref<1x6x18x8xbf16, #tpu.memory_space<vmem>>, vector<1x1x16x8xbf16>
    %91 = vector.shape_cast %90 : vector<1x1x16x8xbf16> to vector<16x8xbf16>
    %cst_120 = arith.constant dense<0.000000e+00> : vector<16x1024xf32>
    %92 = tpu.matmul %91, %77, %cst_120 {dimension_numbers = #tpu.dot_dimension_numbers<[1], [0], [0], [1], [0, 0, 1, 1], [], []>} : vector<16x8xbf16>, vector<8x1024xbf16>, vector<16x1024xf32> -> vector<16x1024xf32>
    %93 = arith.addf %67, %92 : vector<16x1024xf32>
    %c0_121 = arith.constant 0 : index
    %c5_122 = arith.constant 5 : index
    %c0_123 = arith.constant 0 : index
    %c0_124 = arith.constant 0 : index
    %94 = vector.load %arg2[%c0_121, %c5_122, %c0_123, %c0_124] : memref<1x6x18x8xbf16, #tpu.memory_space<vmem>>, vector<1x1x16x8xbf16>
    %95 = vector.shape_cast %94 : vector<1x1x16x8xbf16> to vector<16x8xbf16>
    %cst_125 = arith.constant dense<0.000000e+00> : vector<16x1024xf32>
    %96 = tpu.matmul %95, %77, %cst_125 {dimension_numbers = #tpu.dot_dimension_numbers<[1], [0], [0], [1], [0, 0, 1, 1], [], []>} : vector<16x8xbf16>, vector<8x1024xbf16>, vector<16x1024xf32> -> vector<16x1024xf32>
    %97 = arith.addf %71, %96 : vector<16x1024xf32>
    %c0_126 = arith.constant 0 : index
    %c0_127 = arith.constant 0 : index
    %c0_128 = arith.constant 0 : index
    %c0_129 = arith.constant 0 : index
    %98 = vector.load %arg3[%c0_126, %c0_127, %c0_128, %c0_129] : memref<1x2x18x8xbf16, #tpu.memory_space<vmem>>, vector<1x1x16x8xbf16>
    %99 = vector.shape_cast %98 : vector<1x1x16x8xbf16> to vector<16x8xbf16>
    %cst_130 = arith.constant dense<0.000000e+00> : vector<16x1024xf32>
    %100 = tpu.matmul %99, %77, %cst_130 {dimension_numbers = #tpu.dot_dimension_numbers<[1], [0], [0], [1], [0, 0, 1, 1], [], []>} : vector<16x8xbf16>, vector<8x1024xbf16>, vector<16x1024xf32> -> vector<16x1024xf32>
    %101 = arith.addf %75, %100 : vector<16x1024xf32>
    %c4_131 = arith.constant 4 : index
    %c0_132 = arith.constant 0 : index
    %c0_133 = arith.constant 0 : index
    %102 = vector.load %arg4[%c4_131, %c0_132, %c0_133] : memref<9x8x1024xbf16, #tpu.memory_space<vmem>>, vector<1x8x1024xbf16>
    %103 = vector.shape_cast %102 : vector<1x8x1024xbf16> to vector<8x1024xbf16>
    %c0_134 = arith.constant 0 : index
    %c1_135 = arith.constant 1 : index
    %c1_136 = arith.constant 1 : index
    %c0_137 = arith.constant 0 : index
    %104 = vector.load %arg2[%c0_134, %c1_135, %c1_136, %c0_137] : memref<1x6x18x8xbf16, #tpu.memory_space<vmem>>, vector<1x1x16x8xbf16>
    %105 = vector.shape_cast %104 : vector<1x1x16x8xbf16> to vector<16x8xbf16>
    %cst_138 = arith.constant dense<0.000000e+00> : vector<16x1024xf32>
    %106 = tpu.matmul %105, %103, %cst_138 {dimension_numbers = #tpu.dot_dimension_numbers<[1], [0], [0], [1], [0, 0, 1, 1], [], []>} : vector<16x8xbf16>, vector<8x1024xbf16>, vector<16x1024xf32> -> vector<16x1024xf32>
    %107 = arith.addf %81, %106 : vector<16x1024xf32>
    %c0_139 = arith.constant 0 : index
    %c2_140 = arith.constant 2 : index
    %c1_141 = arith.constant 1 : index
    %c0_142 = arith.constant 0 : index
    %108 = vector.load %arg2[%c0_139, %c2_140, %c1_141, %c0_142] : memref<1x6x18x8xbf16, #tpu.memory_space<vmem>>, vector<1x1x16x8xbf16>
    %109 = vector.shape_cast %108 : vector<1x1x16x8xbf16> to vector<16x8xbf16>
    %cst_143 = arith.constant dense<0.000000e+00> : vector<16x1024xf32>
    %110 = tpu.matmul %109, %103, %cst_143 {dimension_numbers = #tpu.dot_dimension_numbers<[1], [0], [0], [1], [0, 0, 1, 1], [], []>} : vector<16x8xbf16>, vector<8x1024xbf16>, vector<16x1024xf32> -> vector<16x1024xf32>
    %111 = arith.addf %85, %110 : vector<16x1024xf32>
    %c0_144 = arith.constant 0 : index
    %c3_145 = arith.constant 3 : index
    %c1_146 = arith.constant 1 : index
    %c0_147 = arith.constant 0 : index
    %112 = vector.load %arg2[%c0_144, %c3_145, %c1_146, %c0_147] : memref<1x6x18x8xbf16, #tpu.memory_space<vmem>>, vector<1x1x16x8xbf16>
    %113 = vector.shape_cast %112 : vector<1x1x16x8xbf16> to vector<16x8xbf16>
    %cst_148 = arith.constant dense<0.000000e+00> : vector<16x1024xf32>
    %114 = tpu.matmul %113, %103, %cst_148 {dimension_numbers = #tpu.dot_dimension_numbers<[1], [0], [0], [1], [0, 0, 1, 1], [], []>} : vector<16x8xbf16>, vector<8x1024xbf16>, vector<16x1024xf32> -> vector<16x1024xf32>
    %115 = arith.addf %89, %114 : vector<16x1024xf32>
    %c0_149 = arith.constant 0 : index
    %c4_150 = arith.constant 4 : index
    %c1_151 = arith.constant 1 : index
    %c0_152 = arith.constant 0 : index
    %116 = vector.load %arg2[%c0_149, %c4_150, %c1_151, %c0_152] : memref<1x6x18x8xbf16, #tpu.memory_space<vmem>>, vector<1x1x16x8xbf16>
    %117 = vector.shape_cast %116 : vector<1x1x16x8xbf16> to vector<16x8xbf16>
    %cst_153 = arith.constant dense<0.000000e+00> : vector<16x1024xf32>
    %118 = tpu.matmul %117, %103, %cst_153 {dimension_numbers = #tpu.dot_dimension_numbers<[1], [0], [0], [1], [0, 0, 1, 1], [], []>} : vector<16x8xbf16>, vector<8x1024xbf16>, vector<16x1024xf32> -> vector<16x1024xf32>
    %119 = arith.addf %93, %118 : vector<16x1024xf32>
    %c0_154 = arith.constant 0 : index
    %c5_155 = arith.constant 5 : index
    %c1_156 = arith.constant 1 : index
    %c0_157 = arith.constant 0 : index
    %120 = vector.load %arg2[%c0_154, %c5_155, %c1_156, %c0_157] : memref<1x6x18x8xbf16, #tpu.memory_space<vmem>>, vector<1x1x16x8xbf16>
    %121 = vector.shape_cast %120 : vector<1x1x16x8xbf16> to vector<16x8xbf16>
    %cst_158 = arith.constant dense<0.000000e+00> : vector<16x1024xf32>
    %122 = tpu.matmul %121, %103, %cst_158 {dimension_numbers = #tpu.dot_dimension_numbers<[1], [0], [0], [1], [0, 0, 1, 1], [], []>} : vector<16x8xbf16>, vector<8x1024xbf16>, vector<16x1024xf32> -> vector<16x1024xf32>
    %123 = arith.addf %97, %122 : vector<16x1024xf32>
    %c0_159 = arith.constant 0 : index
    %c0_160 = arith.constant 0 : index
    %c1_161 = arith.constant 1 : index
    %c0_162 = arith.constant 0 : index
    %124 = vector.load %arg3[%c0_159, %c0_160, %c1_161, %c0_162] : memref<1x2x18x8xbf16, #tpu.memory_space<vmem>>, vector<1x1x16x8xbf16>
    %125 = vector.shape_cast %124 : vector<1x1x16x8xbf16> to vector<16x8xbf16>
    %cst_163 = arith.constant dense<0.000000e+00> : vector<16x1024xf32>
    %126 = tpu.matmul %125, %103, %cst_163 {dimension_numbers = #tpu.dot_dimension_numbers<[1], [0], [0], [1], [0, 0, 1, 1], [], []>} : vector<16x8xbf16>, vector<8x1024xbf16>, vector<16x1024xf32> -> vector<16x1024xf32>
    %127 = arith.addf %101, %126 : vector<16x1024xf32>
    %c5_164 = arith.constant 5 : index
    %c0_165 = arith.constant 0 : index
    %c0_166 = arith.constant 0 : index
    %128 = vector.load %arg4[%c5_164, %c0_165, %c0_166] : memref<9x8x1024xbf16, #tpu.memory_space<vmem>>, vector<1x8x1024xbf16>
    %129 = vector.shape_cast %128 : vector<1x8x1024xbf16> to vector<8x1024xbf16>
    %c0_167 = arith.constant 0 : index
    %c1_168 = arith.constant 1 : index
    %c2_169 = arith.constant 2 : index
    %c0_170 = arith.constant 0 : index
    %130 = vector.load %arg2[%c0_167, %c1_168, %c2_169, %c0_170] : memref<1x6x18x8xbf16, #tpu.memory_space<vmem>>, vector<1x1x16x8xbf16>
    %131 = vector.shape_cast %130 : vector<1x1x16x8xbf16> to vector<16x8xbf16>
    %cst_171 = arith.constant dense<0.000000e+00> : vector<16x1024xf32>
    %132 = tpu.matmul %131, %129, %cst_171 {dimension_numbers = #tpu.dot_dimension_numbers<[1], [0], [0], [1], [0, 0, 1, 1], [], []>} : vector<16x8xbf16>, vector<8x1024xbf16>, vector<16x1024xf32> -> vector<16x1024xf32>
    %133 = arith.addf %107, %132 : vector<16x1024xf32>
    %c0_172 = arith.constant 0 : index
    %c2_173 = arith.constant 2 : index
    %c2_174 = arith.constant 2 : index
    %c0_175 = arith.constant 0 : index
    %134 = vector.load %arg2[%c0_172, %c2_173, %c2_174, %c0_175] : memref<1x6x18x8xbf16, #tpu.memory_space<vmem>>, vector<1x1x16x8xbf16>
    %135 = vector.shape_cast %134 : vector<1x1x16x8xbf16> to vector<16x8xbf16>
    %cst_176 = arith.constant dense<0.000000e+00> : vector<16x1024xf32>
    %136 = tpu.matmul %135, %129, %cst_176 {dimension_numbers = #tpu.dot_dimension_numbers<[1], [0], [0], [1], [0, 0, 1, 1], [], []>} : vector<16x8xbf16>, vector<8x1024xbf16>, vector<16x1024xf32> -> vector<16x1024xf32>
    %137 = arith.addf %111, %136 : vector<16x1024xf32>
    %c0_177 = arith.constant 0 : index
    %c3_178 = arith.constant 3 : index
    %c2_179 = arith.constant 2 : index
    %c0_180 = arith.constant 0 : index
    %138 = vector.load %arg2[%c0_177, %c3_178, %c2_179, %c0_180] : memref<1x6x18x8xbf16, #tpu.memory_space<vmem>>, vector<1x1x16x8xbf16>
    %139 = vector.shape_cast %138 : vector<1x1x16x8xbf16> to vector<16x8xbf16>
    %cst_181 = arith.constant dense<0.000000e+00> : vector<16x1024xf32>
    %140 = tpu.matmul %139, %129, %cst_181 {dimension_numbers = #tpu.dot_dimension_numbers<[1], [0], [0], [1], [0, 0, 1, 1], [], []>} : vector<16x8xbf16>, vector<8x1024xbf16>, vector<16x1024xf32> -> vector<16x1024xf32>
    %141 = arith.addf %115, %140 : vector<16x1024xf32>
    %c0_182 = arith.constant 0 : index
    %c4_183 = arith.constant 4 : index
    %c2_184 = arith.constant 2 : index
    %c0_185 = arith.constant 0 : index
    %142 = vector.load %arg2[%c0_182, %c4_183, %c2_184, %c0_185] : memref<1x6x18x8xbf16, #tpu.memory_space<vmem>>, vector<1x1x16x8xbf16>
    %143 = vector.shape_cast %142 : vector<1x1x16x8xbf16> to vector<16x8xbf16>
    %cst_186 = arith.constant dense<0.000000e+00> : vector<16x1024xf32>
    %144 = tpu.matmul %143, %129, %cst_186 {dimension_numbers = #tpu.dot_dimension_numbers<[1], [0], [0], [1], [0, 0, 1, 1], [], []>} : vector<16x8xbf16>, vector<8x1024xbf16>, vector<16x1024xf32> -> vector<16x1024xf32>
    %145 = arith.addf %119, %144 : vector<16x1024xf32>
    %c0_187 = arith.constant 0 : index
    %c5_188 = arith.constant 5 : index
    %c2_189 = arith.constant 2 : index
    %c0_190 = arith.constant 0 : index
    %146 = vector.load %arg2[%c0_187, %c5_188, %c2_189, %c0_190] : memref<1x6x18x8xbf16, #tpu.memory_space<vmem>>, vector<1x1x16x8xbf16>
    %147 = vector.shape_cast %146 : vector<1x1x16x8xbf16> to vector<16x8xbf16>
    %cst_191 = arith.constant dense<0.000000e+00> : vector<16x1024xf32>
    %148 = tpu.matmul %147, %129, %cst_191 {dimension_numbers = #tpu.dot_dimension_numbers<[1], [0], [0], [1], [0, 0, 1, 1], [], []>} : vector<16x8xbf16>, vector<8x1024xbf16>, vector<16x1024xf32> -> vector<16x1024xf32>
    %149 = arith.addf %123, %148 : vector<16x1024xf32>
    %c0_192 = arith.constant 0 : index
    %c0_193 = arith.constant 0 : index
    %c2_194 = arith.constant 2 : index
    %c0_195 = arith.constant 0 : index
    %150 = vector.load %arg3[%c0_192, %c0_193, %c2_194, %c0_195] : memref<1x2x18x8xbf16, #tpu.memory_space<vmem>>, vector<1x1x16x8xbf16>
    %151 = vector.shape_cast %150 : vector<1x1x16x8xbf16> to vector<16x8xbf16>
    %cst_196 = arith.constant dense<0.000000e+00> : vector<16x1024xf32>
    %152 = tpu.matmul %151, %129, %cst_196 {dimension_numbers = #tpu.dot_dimension_numbers<[1], [0], [0], [1], [0, 0, 1, 1], [], []>} : vector<16x8xbf16>, vector<8x1024xbf16>, vector<16x1024xf32> -> vector<16x1024xf32>
    %153 = arith.addf %127, %152 : vector<16x1024xf32>
    %c6 = arith.constant 6 : index
    %c0_197 = arith.constant 0 : index
    %c0_198 = arith.constant 0 : index
    %154 = vector.load %arg4[%c6, %c0_197, %c0_198] : memref<9x8x1024xbf16, #tpu.memory_space<vmem>>, vector<1x8x1024xbf16>
    %155 = vector.shape_cast %154 : vector<1x8x1024xbf16> to vector<8x1024xbf16>
    %c0_199 = arith.constant 0 : index
    %c2_200 = arith.constant 2 : index
    %c0_201 = arith.constant 0 : index
    %c0_202 = arith.constant 0 : index
    %156 = vector.load %arg2[%c0_199, %c2_200, %c0_201, %c0_202] : memref<1x6x18x8xbf16, #tpu.memory_space<vmem>>, vector<1x1x16x8xbf16>
    %157 = vector.shape_cast %156 : vector<1x1x16x8xbf16> to vector<16x8xbf16>
    %cst_203 = arith.constant dense<0.000000e+00> : vector<16x1024xf32>
    %158 = tpu.matmul %157, %155, %cst_203 {dimension_numbers = #tpu.dot_dimension_numbers<[1], [0], [0], [1], [0, 0, 1, 1], [], []>} : vector<16x8xbf16>, vector<8x1024xbf16>, vector<16x1024xf32> -> vector<16x1024xf32>
    %159 = arith.addf %133, %158 : vector<16x1024xf32>
    %c0_204 = arith.constant 0 : index
    %c3_205 = arith.constant 3 : index
    %c0_206 = arith.constant 0 : index
    %c0_207 = arith.constant 0 : index
    %160 = vector.load %arg2[%c0_204, %c3_205, %c0_206, %c0_207] : memref<1x6x18x8xbf16, #tpu.memory_space<vmem>>, vector<1x1x16x8xbf16>
    %161 = vector.shape_cast %160 : vector<1x1x16x8xbf16> to vector<16x8xbf16>
    %cst_208 = arith.constant dense<0.000000e+00> : vector<16x1024xf32>
    %162 = tpu.matmul %161, %155, %cst_208 {dimension_numbers = #tpu.dot_dimension_numbers<[1], [0], [0], [1], [0, 0, 1, 1], [], []>} : vector<16x8xbf16>, vector<8x1024xbf16>, vector<16x1024xf32> -> vector<16x1024xf32>
    %163 = arith.addf %137, %162 : vector<16x1024xf32>
    %c0_209 = arith.constant 0 : index
    %c4_210 = arith.constant 4 : index
    %c0_211 = arith.constant 0 : index
    %c0_212 = arith.constant 0 : index
    %164 = vector.load %arg2[%c0_209, %c4_210, %c0_211, %c0_212] : memref<1x6x18x8xbf16, #tpu.memory_space<vmem>>, vector<1x1x16x8xbf16>
    %165 = vector.shape_cast %164 : vector<1x1x16x8xbf16> to vector<16x8xbf16>
    %cst_213 = arith.constant dense<0.000000e+00> : vector<16x1024xf32>
    %166 = tpu.matmul %165, %155, %cst_213 {dimension_numbers = #tpu.dot_dimension_numbers<[1], [0], [0], [1], [0, 0, 1, 1], [], []>} : vector<16x8xbf16>, vector<8x1024xbf16>, vector<16x1024xf32> -> vector<16x1024xf32>
    %167 = arith.addf %141, %166 : vector<16x1024xf32>
    %c0_214 = arith.constant 0 : index
    %c5_215 = arith.constant 5 : index
    %c0_216 = arith.constant 0 : index
    %c0_217 = arith.constant 0 : index
    %168 = vector.load %arg2[%c0_214, %c5_215, %c0_216, %c0_217] : memref<1x6x18x8xbf16, #tpu.memory_space<vmem>>, vector<1x1x16x8xbf16>
    %169 = vector.shape_cast %168 : vector<1x1x16x8xbf16> to vector<16x8xbf16>
    %cst_218 = arith.constant dense<0.000000e+00> : vector<16x1024xf32>
    %170 = tpu.matmul %169, %155, %cst_218 {dimension_numbers = #tpu.dot_dimension_numbers<[1], [0], [0], [1], [0, 0, 1, 1], [], []>} : vector<16x8xbf16>, vector<8x1024xbf16>, vector<16x1024xf32> -> vector<16x1024xf32>
    %171 = arith.addf %145, %170 : vector<16x1024xf32>
    %c0_219 = arith.constant 0 : index
    %c0_220 = arith.constant 0 : index
    %c0_221 = arith.constant 0 : index
    %c0_222 = arith.constant 0 : index
    %172 = vector.load %arg3[%c0_219, %c0_220, %c0_221, %c0_222] : memref<1x2x18x8xbf16, #tpu.memory_space<vmem>>, vector<1x1x16x8xbf16>
    %173 = vector.shape_cast %172 : vector<1x1x16x8xbf16> to vector<16x8xbf16>
    %cst_223 = arith.constant dense<0.000000e+00> : vector<16x1024xf32>
    %174 = tpu.matmul %173, %155, %cst_223 {dimension_numbers = #tpu.dot_dimension_numbers<[1], [0], [0], [1], [0, 0, 1, 1], [], []>} : vector<16x8xbf16>, vector<8x1024xbf16>, vector<16x1024xf32> -> vector<16x1024xf32>
    %175 = arith.addf %149, %174 : vector<16x1024xf32>
    %c0_224 = arith.constant 0 : index
    %c1_225 = arith.constant 1 : index
    %c0_226 = arith.constant 0 : index
    %c0_227 = arith.constant 0 : index
    %176 = vector.load %arg3[%c0_224, %c1_225, %c0_226, %c0_227] : memref<1x2x18x8xbf16, #tpu.memory_space<vmem>>, vector<1x1x16x8xbf16>
    %177 = vector.shape_cast %176 : vector<1x1x16x8xbf16> to vector<16x8xbf16>
    %cst_228 = arith.constant dense<0.000000e+00> : vector<16x1024xf32>
    %178 = tpu.matmul %177, %155, %cst_228 {dimension_numbers = #tpu.dot_dimension_numbers<[1], [0], [0], [1], [0, 0, 1, 1], [], []>} : vector<16x8xbf16>, vector<8x1024xbf16>, vector<16x1024xf32> -> vector<16x1024xf32>
    %179 = arith.addf %153, %178 : vector<16x1024xf32>
    %c7 = arith.constant 7 : index
    %c0_229 = arith.constant 0 : index
    %c0_230 = arith.constant 0 : index
    %180 = vector.load %arg4[%c7, %c0_229, %c0_230] : memref<9x8x1024xbf16, #tpu.memory_space<vmem>>, vector<1x8x1024xbf16>
    %181 = vector.shape_cast %180 : vector<1x8x1024xbf16> to vector<8x1024xbf16>
    %c0_231 = arith.constant 0 : index
    %c2_232 = arith.constant 2 : index
    %c1_233 = arith.constant 1 : index
    %c0_234 = arith.constant 0 : index
    %182 = vector.load %arg2[%c0_231, %c2_232, %c1_233, %c0_234] : memref<1x6x18x8xbf16, #tpu.memory_space<vmem>>, vector<1x1x16x8xbf16>
    %183 = vector.shape_cast %182 : vector<1x1x16x8xbf16> to vector<16x8xbf16>
    %cst_235 = arith.constant dense<0.000000e+00> : vector<16x1024xf32>
    %184 = tpu.matmul %183, %181, %cst_235 {dimension_numbers = #tpu.dot_dimension_numbers<[1], [0], [0], [1], [0, 0, 1, 1], [], []>} : vector<16x8xbf16>, vector<8x1024xbf16>, vector<16x1024xf32> -> vector<16x1024xf32>
    %185 = arith.addf %159, %184 : vector<16x1024xf32>
    %c0_236 = arith.constant 0 : index
    %c3_237 = arith.constant 3 : index
    %c1_238 = arith.constant 1 : index
    %c0_239 = arith.constant 0 : index
    %186 = vector.load %arg2[%c0_236, %c3_237, %c1_238, %c0_239] : memref<1x6x18x8xbf16, #tpu.memory_space<vmem>>, vector<1x1x16x8xbf16>
    %187 = vector.shape_cast %186 : vector<1x1x16x8xbf16> to vector<16x8xbf16>
    %cst_240 = arith.constant dense<0.000000e+00> : vector<16x1024xf32>
    %188 = tpu.matmul %187, %181, %cst_240 {dimension_numbers = #tpu.dot_dimension_numbers<[1], [0], [0], [1], [0, 0, 1, 1], [], []>} : vector<16x8xbf16>, vector<8x1024xbf16>, vector<16x1024xf32> -> vector<16x1024xf32>
    %189 = arith.addf %163, %188 : vector<16x1024xf32>
    %c0_241 = arith.constant 0 : index
    %c4_242 = arith.constant 4 : index
    %c1_243 = arith.constant 1 : index
    %c0_244 = arith.constant 0 : index
    %190 = vector.load %arg2[%c0_241, %c4_242, %c1_243, %c0_244] : memref<1x6x18x8xbf16, #tpu.memory_space<vmem>>, vector<1x1x16x8xbf16>
    %191 = vector.shape_cast %190 : vector<1x1x16x8xbf16> to vector<16x8xbf16>
    %cst_245 = arith.constant dense<0.000000e+00> : vector<16x1024xf32>
    %192 = tpu.matmul %191, %181, %cst_245 {dimension_numbers = #tpu.dot_dimension_numbers<[1], [0], [0], [1], [0, 0, 1, 1], [], []>} : vector<16x8xbf16>, vector<8x1024xbf16>, vector<16x1024xf32> -> vector<16x1024xf32>
    %193 = arith.addf %167, %192 : vector<16x1024xf32>
    %c0_246 = arith.constant 0 : index
    %c5_247 = arith.constant 5 : index
    %c1_248 = arith.constant 1 : index
    %c0_249 = arith.constant 0 : index
    %194 = vector.load %arg2[%c0_246, %c5_247, %c1_248, %c0_249] : memref<1x6x18x8xbf16, #tpu.memory_space<vmem>>, vector<1x1x16x8xbf16>
    %195 = vector.shape_cast %194 : vector<1x1x16x8xbf16> to vector<16x8xbf16>
    %cst_250 = arith.constant dense<0.000000e+00> : vector<16x1024xf32>
    %196 = tpu.matmul %195, %181, %cst_250 {dimension_numbers = #tpu.dot_dimension_numbers<[1], [0], [0], [1], [0, 0, 1, 1], [], []>} : vector<16x8xbf16>, vector<8x1024xbf16>, vector<16x1024xf32> -> vector<16x1024xf32>
    %197 = arith.addf %171, %196 : vector<16x1024xf32>
    %c0_251 = arith.constant 0 : index
    %c0_252 = arith.constant 0 : index
    %c1_253 = arith.constant 1 : index
    %c0_254 = arith.constant 0 : index
    %198 = vector.load %arg3[%c0_251, %c0_252, %c1_253, %c0_254] : memref<1x2x18x8xbf16, #tpu.memory_space<vmem>>, vector<1x1x16x8xbf16>
    %199 = vector.shape_cast %198 : vector<1x1x16x8xbf16> to vector<16x8xbf16>
    %cst_255 = arith.constant dense<0.000000e+00> : vector<16x1024xf32>
    %200 = tpu.matmul %199, %181, %cst_255 {dimension_numbers = #tpu.dot_dimension_numbers<[1], [0], [0], [1], [0, 0, 1, 1], [], []>} : vector<16x8xbf16>, vector<8x1024xbf16>, vector<16x1024xf32> -> vector<16x1024xf32>
    %201 = arith.addf %175, %200 : vector<16x1024xf32>
    %c0_256 = arith.constant 0 : index
    %c1_257 = arith.constant 1 : index
    %c1_258 = arith.constant 1 : index
    %c0_259 = arith.constant 0 : index
    %202 = vector.load %arg3[%c0_256, %c1_257, %c1_258, %c0_259] : memref<1x2x18x8xbf16, #tpu.memory_space<vmem>>, vector<1x1x16x8xbf16>
    %203 = vector.shape_cast %202 : vector<1x1x16x8xbf16> to vector<16x8xbf16>
    %cst_260 = arith.constant dense<0.000000e+00> : vector<16x1024xf32>
    %204 = tpu.matmul %203, %181, %cst_260 {dimension_numbers = #tpu.dot_dimension_numbers<[1], [0], [0], [1], [0, 0, 1, 1], [], []>} : vector<16x8xbf16>, vector<8x1024xbf16>, vector<16x1024xf32> -> vector<16x1024xf32>
    %205 = arith.addf %179, %204 : vector<16x1024xf32>
    %c8 = arith.constant 8 : index
    %c0_261 = arith.constant 0 : index
    %c0_262 = arith.constant 0 : index
    %206 = vector.load %arg4[%c8, %c0_261, %c0_262] : memref<9x8x1024xbf16, #tpu.memory_space<vmem>>, vector<1x8x1024xbf16>
    %207 = vector.shape_cast %206 : vector<1x8x1024xbf16> to vector<8x1024xbf16>
    %c0_263 = arith.constant 0 : index
    %c2_264 = arith.constant 2 : index
    %c2_265 = arith.constant 2 : index
    %c0_266 = arith.constant 0 : index
    %208 = vector.load %arg2[%c0_263, %c2_264, %c2_265, %c0_266] : memref<1x6x18x8xbf16, #tpu.memory_space<vmem>>, vector<1x1x16x8xbf16>
    %209 = vector.shape_cast %208 : vector<1x1x16x8xbf16> to vector<16x8xbf16>
    %cst_267 = arith.constant dense<0.000000e+00> : vector<16x1024xf32>
    %210 = tpu.matmul %209, %207, %cst_267 {dimension_numbers = #tpu.dot_dimension_numbers<[1], [0], [0], [1], [0, 0, 1, 1], [], []>} : vector<16x8xbf16>, vector<8x1024xbf16>, vector<16x1024xf32> -> vector<16x1024xf32>
    %211 = arith.addf %185, %210 : vector<16x1024xf32>
    %c0_268 = arith.constant 0 : index
    %c3_269 = arith.constant 3 : index
    %c2_270 = arith.constant 2 : index
    %c0_271 = arith.constant 0 : index
    %212 = vector.load %arg2[%c0_268, %c3_269, %c2_270, %c0_271] : memref<1x6x18x8xbf16, #tpu.memory_space<vmem>>, vector<1x1x16x8xbf16>
    %213 = vector.shape_cast %212 : vector<1x1x16x8xbf16> to vector<16x8xbf16>
    %cst_272 = arith.constant dense<0.000000e+00> : vector<16x1024xf32>
    %214 = tpu.matmul %213, %207, %cst_272 {dimension_numbers = #tpu.dot_dimension_numbers<[1], [0], [0], [1], [0, 0, 1, 1], [], []>} : vector<16x8xbf16>, vector<8x1024xbf16>, vector<16x1024xf32> -> vector<16x1024xf32>
    %215 = arith.addf %189, %214 : vector<16x1024xf32>
    %c0_273 = arith.constant 0 : index
    %c4_274 = arith.constant 4 : index
    %c2_275 = arith.constant 2 : index
    %c0_276 = arith.constant 0 : index
    %216 = vector.load %arg2[%c0_273, %c4_274, %c2_275, %c0_276] : memref<1x6x18x8xbf16, #tpu.memory_space<vmem>>, vector<1x1x16x8xbf16>
    %217 = vector.shape_cast %216 : vector<1x1x16x8xbf16> to vector<16x8xbf16>
    %cst_277 = arith.constant dense<0.000000e+00> : vector<16x1024xf32>
    %218 = tpu.matmul %217, %207, %cst_277 {dimension_numbers = #tpu.dot_dimension_numbers<[1], [0], [0], [1], [0, 0, 1, 1], [], []>} : vector<16x8xbf16>, vector<8x1024xbf16>, vector<16x1024xf32> -> vector<16x1024xf32>
    %219 = arith.addf %193, %218 : vector<16x1024xf32>
    %c0_278 = arith.constant 0 : index
    %c5_279 = arith.constant 5 : index
    %c2_280 = arith.constant 2 : index
    %c0_281 = arith.constant 0 : index
    %220 = vector.load %arg2[%c0_278, %c5_279, %c2_280, %c0_281] : memref<1x6x18x8xbf16, #tpu.memory_space<vmem>>, vector<1x1x16x8xbf16>
    %221 = vector.shape_cast %220 : vector<1x1x16x8xbf16> to vector<16x8xbf16>
    %cst_282 = arith.constant dense<0.000000e+00> : vector<16x1024xf32>
    %222 = tpu.matmul %221, %207, %cst_282 {dimension_numbers = #tpu.dot_dimension_numbers<[1], [0], [0], [1], [0, 0, 1, 1], [], []>} : vector<16x8xbf16>, vector<8x1024xbf16>, vector<16x1024xf32> -> vector<16x1024xf32>
    %223 = arith.addf %197, %222 : vector<16x1024xf32>
    %c0_283 = arith.constant 0 : index
    %c0_284 = arith.constant 0 : index
    %c2_285 = arith.constant 2 : index
    %c0_286 = arith.constant 0 : index
    %224 = vector.load %arg3[%c0_283, %c0_284, %c2_285, %c0_286] : memref<1x2x18x8xbf16, #tpu.memory_space<vmem>>, vector<1x1x16x8xbf16>
    %225 = vector.shape_cast %224 : vector<1x1x16x8xbf16> to vector<16x8xbf16>
    %cst_287 = arith.constant dense<0.000000e+00> : vector<16x1024xf32>
    %226 = tpu.matmul %225, %207, %cst_287 {dimension_numbers = #tpu.dot_dimension_numbers<[1], [0], [0], [1], [0, 0, 1, 1], [], []>} : vector<16x8xbf16>, vector<8x1024xbf16>, vector<16x1024xf32> -> vector<16x1024xf32>
    %227 = arith.addf %201, %226 : vector<16x1024xf32>
    %c0_288 = arith.constant 0 : index
    %c1_289 = arith.constant 1 : index
    %c2_290 = arith.constant 2 : index
    %c0_291 = arith.constant 0 : index
    %228 = vector.load %arg3[%c0_288, %c1_289, %c2_290, %c0_291] : memref<1x2x18x8xbf16, #tpu.memory_space<vmem>>, vector<1x1x16x8xbf16>
    %229 = vector.shape_cast %228 : vector<1x1x16x8xbf16> to vector<16x8xbf16>
    %cst_292 = arith.constant dense<0.000000e+00> : vector<16x1024xf32>
    %230 = tpu.matmul %229, %207, %cst_292 {dimension_numbers = #tpu.dot_dimension_numbers<[1], [0], [0], [1], [0, 0, 1, 1], [], []>} : vector<16x8xbf16>, vector<8x1024xbf16>, vector<16x1024xf32> -> vector<16x1024xf32>
    %231 = arith.addf %205, %230 : vector<16x1024xf32>
    %232 = vector.broadcast %0 : vector<1x1024xf32> to vector<16x1024xf32>
    %233 = arith.addf %211, %232 : vector<16x1024xf32>
    %cst_293 = arith.constant 0.000000e+00 : f32
    %234 = vector.broadcast %cst_293 : f32 to vector<16x1024xf32>
    %235 = arith.maximumf %233, %234 : vector<16x1024xf32>
    %236 = arith.truncf %235 : vector<16x1024xf32> to vector<16x1024xbf16>
    %cst_294 = arith.constant dense<0.000000e+00> : vector<16x128xf32>
    %237 = tpu.matmul %236, %1, %cst_294 {dimension_numbers = #tpu.dot_dimension_numbers<[1], [0], [0], [1], [0, 0, 1, 1], [], []>} : vector<16x1024xbf16>, vector<1024x128xbf16>, vector<16x128xf32> -> vector<16x128xf32>
    %238 = vector.broadcast %2 : vector<1x128xf32> to vector<16x128xf32>
    %239 = arith.addf %237, %238 : vector<16x128xf32>
    %cst_295 = arith.constant 0.000000e+00 : f32
    %240 = vector.broadcast %cst_295 : f32 to vector<16x128xf32>
    %241 = arith.subf %240, %239 : vector<16x128xf32>
    %242 = math.exp %241 : vector<16x128xf32>
    %cst_296 = arith.constant 1.000000e+00 : f32
    %243 = vector.broadcast %cst_296 : f32 to vector<16x128xf32>
    %244 = arith.addf %243, %242 : vector<16x128xf32>
    %245 = tpu.reciprocal %244 {approx = true} : vector<16x128xf32> -> vector<16x128xf32>
    %c18_i32 = arith.constant 18 : i32
    %246 = vector.broadcast %c18_i32 : i32 to vector<16x128xi32>
    %247 = arith.cmpi slt, %3, %246 : vector<16x128xi32>
    %248 = arith.select %247, %245, %239 : vector<16x128xi1>, vector<16x128xf32>
    %c0_297 = arith.constant 0 : index
    %c0_298 = arith.constant 0 : index
    %c0_299 = arith.constant 0 : index
    %249 = vector.load %arg8[%c0_297, %c0_298, %c0_299] : memref<6x16x128xf32, #tpu.memory_space<vmem>>, vector<1x16x128xf32>
    %250 = vector.shape_cast %249 : vector<1x16x128xf32> to vector<16x128xf32>
    %251 = vector.shape_cast %248 : vector<16x128xf32> to vector<1x16x128xf32>
    tpu.vector_store %arg8[%c0_297, %c0_298, %c0_299], %251 {strides = array<i32>} : memref<6x16x128xf32, #tpu.memory_space<vmem>>, vector<1x16x128xf32>,
    %252 = vector.broadcast %0 : vector<1x1024xf32> to vector<16x1024xf32>
    %253 = arith.addf %215, %252 : vector<16x1024xf32>
    %cst_300 = arith.constant 0.000000e+00 : f32
    %254 = vector.broadcast %cst_300 : f32 to vector<16x1024xf32>
    %255 = arith.maximumf %253, %254 : vector<16x1024xf32>
    %256 = arith.truncf %255 : vector<16x1024xf32> to vector<16x1024xbf16>
    %cst_301 = arith.constant dense<0.000000e+00> : vector<16x128xf32>
    %257 = tpu.matmul %256, %1, %cst_301 {dimension_numbers = #tpu.dot_dimension_numbers<[1], [0], [0], [1], [0, 0, 1, 1], [], []>} : vector<16x1024xbf16>, vector<1024x128xbf16>, vector<16x128xf32> -> vector<16x128xf32>
    %258 = vector.broadcast %2 : vector<1x128xf32> to vector<16x128xf32>
    %259 = arith.addf %257, %258 : vector<16x128xf32>
    %cst_302 = arith.constant 0.000000e+00 : f32
    %260 = vector.broadcast %cst_302 : f32 to vector<16x128xf32>
    %261 = arith.subf %260, %259 : vector<16x128xf32>
    %262 = math.exp %261 : vector<16x128xf32>
    %cst_303 = arith.constant 1.000000e+00 : f32
    %263 = vector.broadcast %cst_303 : f32 to vector<16x128xf32>
    %264 = arith.addf %263, %262 : vector<16x128xf32>
    %265 = tpu.reciprocal %264 {approx = true} : vector<16x128xf32> -> vector<16x128xf32>
    %c18_i32_304 = arith.constant 18 : i32
    %266 = vector.broadcast %c18_i32_304 : i32 to vector<16x128xi32>
    %267 = arith.cmpi slt, %3, %266 : vector<16x128xi32>
    %268 = arith.select %267, %265, %259 : vector<16x128xi1>, vector<16x128xf32>
    %c1_305 = arith.constant 1 : index
    %c0_306 = arith.constant 0 : index
    %c0_307 = arith.constant 0 : index
    %269 = vector.load %arg8[%c1_305, %c0_306, %c0_307] : memref<6x16x128xf32, #tpu.memory_space<vmem>>, vector<1x16x128xf32>
    %270 = vector.shape_cast %269 : vector<1x16x128xf32> to vector<16x128xf32>
    %271 = vector.shape_cast %268 : vector<16x128xf32> to vector<1x16x128xf32>
    tpu.vector_store %arg8[%c1_305, %c0_306, %c0_307], %271 {strides = array<i32>} : memref<6x16x128xf32, #tpu.memory_space<vmem>>, vector<1x16x128xf32>,
    %272 = vector.broadcast %0 : vector<1x1024xf32> to vector<16x1024xf32>
    %273 = arith.addf %219, %272 : vector<16x1024xf32>
    %cst_308 = arith.constant 0.000000e+00 : f32
    %274 = vector.broadcast %cst_308 : f32 to vector<16x1024xf32>
    %275 = arith.maximumf %273, %274 : vector<16x1024xf32>
    %276 = arith.truncf %275 : vector<16x1024xf32> to vector<16x1024xbf16>
    %cst_309 = arith.constant dense<0.000000e+00> : vector<16x128xf32>
    %277 = tpu.matmul %276, %1, %cst_309 {dimension_numbers = #tpu.dot_dimension_numbers<[1], [0], [0], [1], [0, 0, 1, 1], [], []>} : vector<16x1024xbf16>, vector<1024x128xbf16>, vector<16x128xf32> -> vector<16x128xf32>
    %278 = vector.broadcast %2 : vector<1x128xf32> to vector<16x128xf32>
    %279 = arith.addf %277, %278 : vector<16x128xf32>
    %cst_310 = arith.constant 0.000000e+00 : f32
    %280 = vector.broadcast %cst_310 : f32 to vector<16x128xf32>
    %281 = arith.subf %280, %279 : vector<16x128xf32>
    %282 = math.exp %281 : vector<16x128xf32>
    %cst_311 = arith.constant 1.000000e+00 : f32
    %283 = vector.broadcast %cst_311 : f32 to vector<16x128xf32>
    %284 = arith.addf %283, %282 : vector<16x128xf32>
    %285 = tpu.reciprocal %284 {approx = true} : vector<16x128xf32> -> vector<16x128xf32>
    %c18_i32_312 = arith.constant 18 : i32
    %286 = vector.broadcast %c18_i32_312 : i32 to vector<16x128xi32>
    %287 = arith.cmpi slt, %3, %286 : vector<16x128xi32>
    %288 = arith.select %287, %285, %279 : vector<16x128xi1>, vector<16x128xf32>
    %c2_313 = arith.constant 2 : index
    %c0_314 = arith.constant 0 : index
    %c0_315 = arith.constant 0 : index
    %289 = vector.load %arg8[%c2_313, %c0_314, %c0_315] : memref<6x16x128xf32, #tpu.memory_space<vmem>>, vector<1x16x128xf32>
    %290 = vector.shape_cast %289 : vector<1x16x128xf32> to vector<16x128xf32>
    %291 = vector.shape_cast %288 : vector<16x128xf32> to vector<1x16x128xf32>
    tpu.vector_store %arg8[%c2_313, %c0_314, %c0_315], %291 {strides = array<i32>} : memref<6x16x128xf32, #tpu.memory_space<vmem>>, vector<1x16x128xf32>,
    %292 = vector.broadcast %0 : vector<1x1024xf32> to vector<16x1024xf32>
    %293 = arith.addf %223, %292 : vector<16x1024xf32>
    %cst_316 = arith.constant 0.000000e+00 : f32
    %294 = vector.broadcast %cst_316 : f32 to vector<16x1024xf32>
    %295 = arith.maximumf %293, %294 : vector<16x1024xf32>
    %296 = arith.truncf %295 : vector<16x1024xf32> to vector<16x1024xbf16>
    %cst_317 = arith.constant dense<0.000000e+00> : vector<16x128xf32>
    %297 = tpu.matmul %296, %1, %cst_317 {dimension_numbers = #tpu.dot_dimension_numbers<[1], [0], [0], [1], [0, 0, 1, 1], [], []>} : vector<16x1024xbf16>, vector<1024x128xbf16>, vector<16x128xf32> -> vector<16x128xf32>
    %298 = vector.broadcast %2 : vector<1x128xf32> to vector<16x128xf32>
    %299 = arith.addf %297, %298 : vector<16x128xf32>
    %cst_318 = arith.constant 0.000000e+00 : f32
    %300 = vector.broadcast %cst_318 : f32 to vector<16x128xf32>
    %301 = arith.subf %300, %299 : vector<16x128xf32>
    %302 = math.exp %301 : vector<16x128xf32>
    %cst_319 = arith.constant 1.000000e+00 : f32
    %303 = vector.broadcast %cst_319 : f32 to vector<16x128xf32>
    %304 = arith.addf %303, %302 : vector<16x128xf32>
    %305 = tpu.reciprocal %304 {approx = true} : vector<16x128xf32> -> vector<16x128xf32>
    %c18_i32_320 = arith.constant 18 : i32
    %306 = vector.broadcast %c18_i32_320 : i32 to vector<16x128xi32>
    %307 = arith.cmpi slt, %3, %306 : vector<16x128xi32>
    %308 = arith.select %307, %305, %299 : vector<16x128xi1>, vector<16x128xf32>
    %c3_321 = arith.constant 3 : index
    %c0_322 = arith.constant 0 : index
    %c0_323 = arith.constant 0 : index
    %309 = vector.load %arg8[%c3_321, %c0_322, %c0_323] : memref<6x16x128xf32, #tpu.memory_space<vmem>>, vector<1x16x128xf32>
    %310 = vector.shape_cast %309 : vector<1x16x128xf32> to vector<16x128xf32>
    %311 = vector.shape_cast %308 : vector<16x128xf32> to vector<1x16x128xf32>
    tpu.vector_store %arg8[%c3_321, %c0_322, %c0_323], %311 {strides = array<i32>} : memref<6x16x128xf32, #tpu.memory_space<vmem>>, vector<1x16x128xf32>,
    %312 = vector.broadcast %0 : vector<1x1024xf32> to vector<16x1024xf32>
    %313 = arith.addf %227, %312 : vector<16x1024xf32>
    %cst_324 = arith.constant 0.000000e+00 : f32
    %314 = vector.broadcast %cst_324 : f32 to vector<16x1024xf32>
    %315 = arith.maximumf %313, %314 : vector<16x1024xf32>
    %316 = arith.truncf %315 : vector<16x1024xf32> to vector<16x1024xbf16>
    %cst_325 = arith.constant dense<0.000000e+00> : vector<16x128xf32>
    %317 = tpu.matmul %316, %1, %cst_325 {dimension_numbers = #tpu.dot_dimension_numbers<[1], [0], [0], [1], [0, 0, 1, 1], [], []>} : vector<16x1024xbf16>, vector<1024x128xbf16>, vector<16x128xf32> -> vector<16x128xf32>
    %318 = vector.broadcast %2 : vector<1x128xf32> to vector<16x128xf32>
    %319 = arith.addf %317, %318 : vector<16x128xf32>
    %cst_326 = arith.constant 0.000000e+00 : f32
    %320 = vector.broadcast %cst_326 : f32 to vector<16x128xf32>
    %321 = arith.subf %320, %319 : vector<16x128xf32>
    %322 = math.exp %321 : vector<16x128xf32>
    %cst_327 = arith.constant 1.000000e+00 : f32
    %323 = vector.broadcast %cst_327 : f32 to vector<16x128xf32>
    %324 = arith.addf %323, %322 : vector<16x128xf32>
    %325 = tpu.reciprocal %324 {approx = true} : vector<16x128xf32> -> vector<16x128xf32>
    %c18_i32_328 = arith.constant 18 : i32
    %326 = vector.broadcast %c18_i32_328 : i32 to vector<16x128xi32>
    %327 = arith.cmpi slt, %3, %326 : vector<16x128xi32>
    %328 = arith.select %327, %325, %319 : vector<16x128xi1>, vector<16x128xf32>
    %c4_329 = arith.constant 4 : index
    %c0_330 = arith.constant 0 : index
    %c0_331 = arith.constant 0 : index
    %329 = vector.load %arg8[%c4_329, %c0_330, %c0_331] : memref<6x16x128xf32, #tpu.memory_space<vmem>>, vector<1x16x128xf32>
    %330 = vector.shape_cast %329 : vector<1x16x128xf32> to vector<16x128xf32>
    %331 = vector.shape_cast %328 : vector<16x128xf32> to vector<1x16x128xf32>
    tpu.vector_store %arg8[%c4_329, %c0_330, %c0_331], %331 {strides = array<i32>} : memref<6x16x128xf32, #tpu.memory_space<vmem>>, vector<1x16x128xf32>,
    %332 = vector.broadcast %0 : vector<1x1024xf32> to vector<16x1024xf32>
    %333 = arith.addf %231, %332 : vector<16x1024xf32>
    %cst_332 = arith.constant 0.000000e+00 : f32
    %334 = vector.broadcast %cst_332 : f32 to vector<16x1024xf32>
    %335 = arith.maximumf %333, %334 : vector<16x1024xf32>
    %336 = arith.truncf %335 : vector<16x1024xf32> to vector<16x1024xbf16>
    %cst_333 = arith.constant dense<0.000000e+00> : vector<16x128xf32>
    %337 = tpu.matmul %336, %1, %cst_333 {dimension_numbers = #tpu.dot_dimension_numbers<[1], [0], [0], [1], [0, 0, 1, 1], [], []>} : vector<16x1024xbf16>, vector<1024x128xbf16>, vector<16x128xf32> -> vector<16x128xf32>
    %338 = vector.broadcast %2 : vector<1x128xf32> to vector<16x128xf32>
    %339 = arith.addf %337, %338 : vector<16x128xf32>
    %cst_334 = arith.constant 0.000000e+00 : f32
    %340 = vector.broadcast %cst_334 : f32 to vector<16x128xf32>
    %341 = arith.subf %340, %339 : vector<16x128xf32>
    %342 = math.exp %341 : vector<16x128xf32>
    %cst_335 = arith.constant 1.000000e+00 : f32
    %343 = vector.broadcast %cst_335 : f32 to vector<16x128xf32>
    %344 = arith.addf %343, %342 : vector<16x128xf32>
    %345 = tpu.reciprocal %344 {approx = true} : vector<16x128xf32> -> vector<16x128xf32>
    %c18_i32_336 = arith.constant 18 : i32
    %346 = vector.broadcast %c18_i32_336 : i32 to vector<16x128xi32>
    %347 = arith.cmpi slt, %3, %346 : vector<16x128xi32>
    %348 = arith.select %347, %345, %339 : vector<16x128xi1>, vector<16x128xf32>
    %c5_337 = arith.constant 5 : index
    %c0_338 = arith.constant 0 : index
    %c0_339 = arith.constant 0 : index
    %349 = vector.load %arg8[%c5_337, %c0_338, %c0_339] : memref<6x16x128xf32, #tpu.memory_space<vmem>>, vector<1x16x128xf32>
    %350 = vector.shape_cast %349 : vector<1x16x128xf32> to vector<16x128xf32>
    %351 = vector.shape_cast %348 : vector<16x128xf32> to vector<1x16x128xf32>
    tpu.vector_store %arg8[%c5_337, %c0_338, %c0_339], %351 {strides = array<i32>} : memref<6x16x128xf32, #tpu.memory_space<vmem>>, vector<1x16x128xf32>,
    return
  }
  func.func @transform_0(%arg0: i32, %arg1: i32) -> (i32, i32, i32, i32) {
    %c0_i32 = arith.constant 0 : i32
    %c0_i32_0 = arith.constant 0 : i32
    %c0_i32_1 = arith.constant 0 : i32
    return %arg0, %arg1, %c0_i32, %c0_i32_0 : i32, i32, i32, i32
  }
  func.func @transform_1(%arg0: i32, %arg1: i32) -> (i32, i32, i32, i32) {
    %c1_i32 = arith.constant 1 : i32
    %0 = arith.addi %arg1, %c1_i32 : i32
    %c3_i32 = arith.constant 3 : i32
    %1 = arith.muli %0, %c3_i32 : i32
    %c0_i32 = arith.constant 0 : i32
    %c0_i32_0 = arith.constant 0 : i32
    %c0_i32_1 = arith.constant 0 : i32
    return %arg0, %1, %c0_i32, %c0_i32_0 : i32, i32, i32, i32
  }
  func.func @transform_2(%arg0: i32, %arg1: i32) -> (i32, i32, i32) {
    %c0_i32 = arith.constant 0 : i32
    %c0_i32_0 = arith.constant 0 : i32
    %c0_i32_1 = arith.constant 0 : i32
    %c0_i32_2 = arith.constant 0 : i32
    return %c0_i32, %c0_i32_0, %c0_i32_1 : i32, i32, i32
  }
  func.func @transform_3(%arg0: i32, %arg1: i32) -> (i32, i32) {
    %c0_i32 = arith.constant 0 : i32
    %c0_i32_0 = arith.constant 0 : i32
    %c0_i32_1 = arith.constant 0 : i32
    return %c0_i32, %c0_i32_0 : i32, i32
  }
  func.func @transform_4(%arg0: i32, %arg1: i32) -> (i32, i32) {
    %c0_i32 = arith.constant 0 : i32
    %c0_i32_0 = arith.constant 0 : i32
    %c0_i32_1 = arith.constant 0 : i32
    return %c0_i32, %c0_i32_0 : i32, i32
  }
  func.func @transform_5(%arg0: i32, %arg1: i32) -> (i32, i32) {
    %c0_i32 = arith.constant 0 : i32
    %c0_i32_0 = arith.constant 0 : i32
    %c0_i32_1 = arith.constant 0 : i32
    return %c0_i32, %c0_i32_0 : i32, i32
  }
  func.func @transform_6(%arg0: i32, %arg1: i32) -> (i32, i32, i32) {
    %c3_i32 = arith.constant 3 : i32
    %0 = arith.muli %arg0, %c3_i32 : i32
    %1 = arith.addi %0, %arg1 : i32
    %c0_i32 = arith.constant 0 : i32
    %c0_i32_0 = arith.constant 0 : i32
    %c0_i32_1 = arith.constant 0 : i32
    return %1, %c0_i32, %c0_i32_0 : i32, i32, i32
  }
}

</mosaic_0001>

<bundles_post_ra>
// kernel: rpn_forward.1
= control target key start
LH: loop header
LB: loop body
LE: loop exit
PB: predicated region body
PF: predicated region fallthrough
CT: control target
= control target key end

     0   :  { %s18484_s0 = inlined_call_operand.vmem [shape: bf16[2,24,18,8], index: 0, kind: input, shape index: {}, may-alias: {0,1}]   ;;  %s18485_s1 = inlined_call_operand.vmem [shape: bf16[2,24,18,8], index: 1, kind: input, shape index: {}, may-alias: {0,1}]   ;;  %s18486_s2 = inlined_call_operand.hbm [shape: bf16[9,8,1024], index: 2, kind: input, shape index: {}]   ;;  %s18487_s3 = inlined_call_operand.hbm [shape: f32[1,1024], index: 3, kind: input, shape index: {}]   ;;  %s18488_s4 = inlined_call_operand.hbm [shape: bf16[1024,128], index: 4, kind: input, shape index: {}]   ;;  %s18489_s5 = inlined_call_operand.hbm [shape: f32[1,128], index: 5, kind: input, shape index: {}]   ;;  %s18490_s6 = inlined_call_operand.vmem [shape: f32[36,16,128], index: 6, kind: output, shape index: {}]  }
   0x1   :  { %18595 = sst [smem:[#allocation58_spill]] %s18487_s3 }
   0x2   :  { %11 = vsyncpa [#allocation3], 0 }
   0x3   :  { %12 = vsyncpa [#allocation5], 0 }
   0x4   :  { %13 = vsyncpa [#allocation8], 0  ;;  %s15742_s21 = smov 0   ;;  %s15744_s22 = smov 0  }
   0x5   :  { %s15746_s23 = smov 0   ;;  %s15748_s24 = smov 0  }
   0x6   :  { %s15750_s25 = smov 0  }
   0x7 LB: > { %s15698_s26 = smov [#allocation4]   ;;  %s13199_s28 = sadd.s32 4294967295, %s15696_s25   ;;  %s15696_s25 = sphi %s15750_s25, %s19_s25   ;;  %s15692_s24 = sphi %s15748_s24, %s18784_s24   ;;  %s15688_s23 = sphi %s15746_s23, %s18783_s23   ;;  %s15684_s22 = sphi %s15744_s22, %s18782_s22   ;;  %s15680_s21 = sphi %s15742_s21, %s18781_s21  }
   0x8   : > { %s236_s27 = sshll.u32 %s15698_s26, 4  ;;  %p13201_p0 = scmp.ge.s32.totalorder %s15696_s25, 1  ;;  %s237_s27 = int_to_ptr.vmem [resolvable:$true] %s236_s27 }
   0x9   : > { %p210_p1 = scmp.lt.s32.totalorder %s15696_s25, 7  ;;  %p15770_p2 = scmp.eq.s32.totalorder %s13199_s28, 0 }
   0xa   : > { %s28_s8 = sadd.s32 1, %s15688_s23  ;;  %s18600_s3 = sld [smem:[#allocation58_spill]] }
   0xb   : > { %s18596_s29 = scalar_select %p15770_p2, 1, 0 }
   0xc   : > { %p15774_p3 = pnand %p13201_p0, %p210_p1  ;;  %p15787_p6 = scmp.ge.s32.totalorder %s28_s8, 3 }
   0xe   : > { %s18597_s30 = scalar_select %p15774_p3, 1, 0 }
   0xf   : > { %p15181_p4 = pneg %p15774_p3 }
  0x10   : > { %s18599_s9 = scalar_select %p15787_p6, 1, 0 }
  0x11   : > { %p15782_p5 = pnand %p15770_p2, %p15181_p4  ;;  %s15534_s12 = scalar_lea.hbm %s18600_s3, 128 }
  0x12   : > { %p15535_p7 = scmp.ne.s32.totalorder %s18600_s3, %s15534_s12  ;;  %p15541_p11 = scmp.lt.u32.totalorder %s15534_s12, %s18600_s3 }
  0x13   : > { %p15799_p8 = pneg %p15782_p5 }
  0x15   : > { %p15537_p9 = pnand %p15799_p8, %p15535_p7 }
  0x17   : > { %p15538_p10 = pneg %p15537_p9 }
  0x19   : > { %p15543_p12 = pnand %p15541_p11, %p15538_p10 }
  0x1b   : > { %15546 = shalt.err (!%p15543_p12)
}
  0x1c   : > { %s15547_s18 = scalar_lea.vmem %s237_s27, 128  ;;  %p15555_p4 = scmp.lt.s32.totalorder %s237_s27, %s237_s27 }
  0x1d   : > { %p15548_p13 = scmp.ne.s32.totalorder %s237_s27, %s15547_s18  ;;  %p15556_p2 = scmp.lt.s32.totalorder %s15547_s18, %s15547_s18 }
  0x1f   : > { %p15550_p0 = pnand %p15548_p13, %p15799_p8  ;;  %p15557_p3 = por %p15556_p2, %p15555_p4 }
  0x21   : > { %p15551_p1 = pneg %p15550_p0 }
  0x23   : > { %p15558_p6 = pnand %p15557_p3, %p15551_p1 }
  0x25   : > { %15561 = shalt.err (!%p15558_p6)
}
  0x26   : > { %15187 = dma.hbm_to_vmem [thread:$0]  (!%p15782_p5), %s18600_s3, 128, %s237_s27, [#allocation5]  }
  0x27   : > { %p18602_p7 = scmp.ne.s32.totalorder %s18599_s9, 0  ;;  %s31_s26 = sadd.s32 1, %s15692_s24 }
  0x28   : > { %s15699_s28 = smov [#allocation2]   ;;  %s15562_s13 = scalar_lea.hbm %s18486_s2, 4608 }
  0x29   : > { %s18786_s8 = smov (%p18602_p7, %s28_s8), 0  ;;  %s18788_s26 = smov (!%p18602_p7, %s31_s26), %s15692_s24 }
  0x2a   : > { %s222_s10 = sshll.u32 %s15699_s28, 4  ;;  %p33_p2 = scmp.ge.s32.totalorder %s18788_s26, 2  ;;  %s223_s10 = int_to_ptr.vmem [resolvable:$true] %s222_s10 }
  0x2b   : > { %p15563_p3 = scmp.ne.s32.totalorder %s18486_s2, %s15562_s13  ;;  %p15569_p10 = scmp.lt.u32.totalorder %s15562_s13, %s18486_s2 }
  0x2c   : > { %s18790_s26 = smov (%p33_p2, %s18788_s26), 0 }
  0x2d   : > { %p15565_p6 = pnand %p15563_p3, %p15799_p8 }
  0x2f   : > { %p15566_p9 = pneg %p15565_p6 }
  0x31   : > { %p15571_p11 = pnand %p15569_p10, %p15566_p9 }
  0x33   : > { %15574 = shalt.err (!%p15571_p11)
}
  0x34   : > { %s15575_s17 = scalar_lea.vmem %s223_s10, 4608  ;;  %p15583_p1 = scmp.lt.s32.totalorder %s223_s10, %s223_s10 }
  0x35   : > { %p15576_p12 = scmp.ne.s32.totalorder %s223_s10, %s15575_s17  ;;  %p15584_p4 = scmp.lt.s32.totalorder %s15575_s17, %s15575_s17 }
  0x37   : > { %p15578_p13 = pnand %p15576_p12, %p15799_p8  ;;  %p15585_p7 = por %p15584_p4, %p15583_p1 }
  0x39   : > { %p15579_p0 = pneg %p15578_p13 }
  0x3b   : > { %p15586_p2 = pnand %p15585_p7, %p15579_p0 }
  0x3d   : > { %15589 = shalt.err (!%p15586_p2)
}
  0x3e   : > { %s15700_s18 = smov 512   ;;  %s15701_s19 = smov 32  }
  0x3f   : > { %15184 = dma.hbm_to_vmem [thread:$0]  (!%p15782_p5), %s18486_s2, 4608, %s223_s10, [#allocation3], %s15700_s18, %s15700_s18, %s15701_s19  }
  0x40   : > { %s15702_s11 = smov [#allocation6]   ;;  %s15590_s16 = scalar_lea.hbm %s18488_s4, 8192 }
  0x41   : > { %s246_s12 = sshll.u32 %s15702_s11, 4  ;;  %p15591_p3 = scmp.ne.s32.totalorder %s18488_s4, %s15590_s16  ;;  %s247_s12 = int_to_ptr.vmem [resolvable:$true] %s246_s12 }
  0x42   : > { %p15597_p10 = scmp.lt.u32.totalorder %s15590_s16, %s18488_s4 }
  0x43   : > { %p15593_p6 = pnand %p15591_p3, %p15799_p8 }
  0x45   : > { %p15594_p9 = pneg %p15593_p6 }
  0x47   : > { %p15599_p11 = pnand %p15597_p10, %p15594_p9 }
  0x49   : > { %15602 = shalt.err (!%p15599_p11)
}
  0x4a   : > { %s15603_s10 = scalar_lea.vmem %s247_s12, 8192  ;;  %p15611_p1 = scmp.lt.s32.totalorder %s247_s12, %s247_s12 }
  0x4b   : > { %p15604_p12 = scmp.ne.s32.totalorder %s247_s12, %s15603_s10  ;;  %p15612_p4 = scmp.lt.s32.totalorder %s15603_s10, %s15603_s10 }
  0x4d   : > { %p15606_p13 = pnand %p15604_p12, %p15799_p8  ;;  %p15613_p7 = por %p15612_p4, %p15611_p1 }
  0x4f   : > { %p15607_p0 = pneg %p15606_p13 }
  0x51   : > { %p15614_p2 = pnand %p15613_p7, %p15607_p0 }
  0x53   : > { %15617 = shalt.err (!%p15614_p2)
}
  0x54   : > { %s15703_s18 = smov 64   ;;  %s15704_s19 = smov 4  }
  0x55   : > { %15190 = dma.hbm_to_vmem [thread:$0]  (!%p15782_p5), %s18488_s4, 8192, %s247_s12, [#allocation5], %s15703_s18, %s15703_s18, %s15704_s19  }
  0x56   : > { %s15705_s28 = smov [#allocation7]   ;;  %s15618_s16 = scalar_lea.hbm %s18489_s5, 16 }
  0x57   : > { %s260_s11 = sshll.u32 %s15705_s28, 4  ;;  %p15619_p3 = scmp.ne.s32.totalorder %s18489_s5, %s15618_s16  ;;  %s261_s11 = int_to_ptr.vmem [resolvable:$true] %s260_s11 }
  0x58   : > { %p15625_p10 = scmp.lt.u32.totalorder %s15618_s16, %s18489_s5 }
  0x59   : > { %p15621_p6 = pnand %p15619_p3, %p15799_p8 }
  0x5b   : > { %p15622_p9 = pneg %p15621_p6 }
  0x5d   : > { %p15627_p11 = pnand %p15625_p10, %p15622_p9 }
  0x5f   : > { %15630 = shalt.err (!%p15627_p11)
}
  0x60   : > { %s15631_s12 = scalar_lea.vmem %s261_s11, 16  ;;  %s15638_s18 = scalar_lea.vmem %s261_s11, 32 }
  0x61   : > { %p15632_p12 = scmp.ne.s32.totalorder %s261_s11, %s15631_s12  ;;  %p15639_p1 = scmp.lt.s32.totalorder %s261_s11, %s261_s11 }
  0x62   : > { %p15640_p4 = scmp.lt.s32.totalorder %s15638_s18, %s15631_s12 }
  0x63   : > { %p15634_p13 = pnand %p15632_p12, %p15799_p8 }
  0x64   : > { %p15641_p7 = por %p15640_p4, %p15639_p1 }
  0x65   : > { %p15635_p0 = pneg %p15634_p13 }
  0x67   : > { %p15642_p2 = pnand %p15641_p7, %p15635_p0 }
  0x69   : > { %15645 = shalt.err (!%p15642_p2)
}
  0x6a   : > { %15193 = dma.hbm_to_vmem [thread:$0]  (!%p15782_p5), %s18489_s5, 16, %s261_s11, [#allocation8]  }
  0x6b   : > { %p18603_p3 = scmp.ne.s32.totalorder %s18597_s30, 0 }
  0x6d   : > { %305 = sbr.rel (%p18603_p3) target bundleno = 1737 (0x6c9), region = 44 }
  0x74   : > { %p18604_p6 = scmp.ne.s32.totalorder %s18596_s29, 0 }
  0x76   : > { %15667 = dma.done.wait (%p18604_p6), [#allocation3], 4608  }
  0x77   : > { %15669 = vsyncadd (%p18604_p6), [#allocation3], 4294962688 }
  0x78   : > { %15671 = dma.done.wait (%p18604_p6), [#allocation5], 8320  }
  0x79   : > { %15673 = vsyncadd (%p18604_p6), [#allocation5], 4294958976 }
  0x7a   : > { %15675 = dma.done.wait (%p18604_p6), [#allocation8], 16  }
  0x7b   : > { %15677 = vsyncadd (%p18604_p6), [#allocation8], 4294967280  ;;  %s367_s30 = smul.u32 6, %s15680_s21  ;;  %p368_p5 = scmp.lt.s32.totalorder %s15684_s22, 1  ;;  %v15706_v0 = vmov 0   ;;  %v559_v1 = vld [vmem:[#allocation2 + $0x20] sm:$0xff] }
  0x7c   : > { %666 = vmatprep.mubr.bf16.mxu0 %v15706_v0  ;;  %709 = vmatprep.mubr.bf16.mxu1 %v15706_v0  ;;  %vm609_vm0 = vcmask 1043456   ;;  %v560_v2 = vld [vmem:[#allocation2 + $0x28] sm:$0xff]  ;;  %v561_v3 = vld [vmem:[#allocation2 + $0x30] sm:$0xff]  ;;  %v15901_v4 = vcombine.high %v559_v1, %v559_v1  ;;  %v13229_v5 = vcombine.low %v559_v1, %v559_v1  ;;  %v562_v8 = vld [vmem:[#allocation2 + $0x38] sm:$0xff]  ;;  %vm572_vm1 = vsmask.f32 7424 }
  0x7d   : > { %s15898_s7 = scalar_select %p368_p5, %s15684_s22, 1  ;;  %v15903_v6 = vcombine.high %v560_v2, %v560_v2  ;;  %v13231_v7 = vcombine.low %v560_v2, %v560_v2  ;;  %v15905_v9 = vcombine.high %v561_v3, %v561_v3  ;;  %v15909_v10 = vcombine.high %v562_v8, %v562_v8  ;;  %v537_v24 = vld [vmem:[#allocation2] sm:$0xff]  ;;  %v538_v25 = vld [vmem:[#allocation2 + $0x8] sm:$0xff]  ;;  %v539_v27 = vld [vmem:[#allocation2 + $0x10] sm:$0xff] }
  0x7e   : > { %p370_p8 = scmp.lt.s32.totalorder %s367_s30, 23  ;;  %13237 = vmatprep.subr.msk.bf16.mxu0 %vm609_vm0, %v15901_v4  ;;  %v15914_v11 = vsel %vm609_vm0, %v13229_v5, 0  ;;  %v13233_v20 = vcombine.low %v561_v3, %v561_v3  ;;  %v13235_v21 = vcombine.low %v562_v8, %v562_v8  ;;  %vm605_vm2 = vcmask 64512   ;;  %v540_v38 = vld [vmem:[#allocation2 + $0x18] sm:$0xff]  ;;  %s378_s16 = sadd.s32 1, %s15680_s21 }
  0x7f   : > { %s15163_s15 = smul.u32 72, %s15898_s7  ;;  %13239 = vmatprep.subr.msk.bf16.mxu1 %vm609_vm0, %v15903_v6  ;;  %v15919_v12 = vsel %vm609_vm0, %v13231_v7, 0  ;;  %635 = vmatpush1.bf16.msra.mxu0 %v15914_v11  ;;  %v15952_v31 = vcombine.high %v537_v24, %v537_v24  ;;  %v15954_v32 = vcombine.high %v538_v25, %v538_v25  ;;  %v13245_v35 = vcombine.low %v537_v24, %v537_v24 }
  0x80   : > { %s18792_s30 = smov (!%p370_p8, %s367_s30), 23  ;;  %678 = vmatpush1.bf16.msra.mxu1 %v15919_v12  ;;  %13241 = vmatprep.subr.msk.bf16.mxu0 %vm609_vm0, %v15905_v9  ;;  %v15946_v28 = vsel %vm609_vm0, %v13233_v20, 0  ;;  %v15949_v29 = vsel %vm609_vm0, %v13235_v21, 0  ;;  %v13247_v36 = vcombine.low %v538_v25, %v538_v25  ;;  %v13249_v37 = vcombine.low %v539_v27, %v539_v27  ;;  %s13213_s27 = smul.u32 6, %s378_s16 }
  0x81   : > { %s15162_s29 = smul.u32 3, %s18792_s30  ;;  %13243 = vmatprep.subr.msk.bf16.mxu1 %vm609_vm0, %v15909_v10  ;;  %v15972_v40 = vsel %vm609_vm0, %v13245_v35, 0  ;;  %v13251_v41 = vcombine.low %v540_v38, %v540_v38  ;;  %v15983_v46 = vcombine.high %v539_v27, %v539_v27  ;;  %v15985_v47 = vcombine.high %v540_v38, %v540_v38 }
  0x82   : > { %v15975_v42 = vsel %vm609_vm0, %v13247_v36, 0  ;;  %v15978_v43 = vsel %vm609_vm0, %v13249_v37, 0  ;;  %vm2923_vm3 = vcmask 1046528   ;;  %p383_p9 = scmp.lt.s32.totalorder %s13213_s27, 23  ;;  %s393_s3 = smul.u32 3, %s15684_s22 }
  0x83   : > { %s374_s20 = sadd.s32 %s15163_s15, %s15162_s29  ;;  %v15990_v48 = vsel %vm609_vm0, %v13251_v41, 0 }
  0x84   : > { %s13212_s28 = sshll.u32 %s374_s20, 2  ;;  %s18794_s27 = smov (!%p383_p9, %s13213_s27), 23 }
  0x85   : > { %s15926_s14 = scalar_lea.vmem %s18484_s0, %s13212_s28  ;;  %s15164_s9 = smul.u32 3, %s18794_s27 }
  0x86   : > { %v541_v13 = vld [vmem:[%s15926_s14] sm:$0xf]  ;;  %v15932_v14 = vld [vmem:[%s15926_s14 + $0x4] sm:$0xf]  ;;  %v13261_v33 = vld [vmem:[%s15926_s14 + $0xc] sm:$0xf]  ;;  %s394_s30 = sadd.s32 %s15680_s21, %s393_s3 }
  0x87   : > { %v15937_v15 = vcombine.low %v541_v13, %v15932_v14  ;;  %v15940_v16 = vld [vmem:[%s15926_s14 + $0x8] ss:$0 sps:$4 sm:$0x11]   ;;  %v15958_v34 = vld [vmem:[%s15926_s14 + $0x10] sm:$0xf]  ;;  %v16120_v8 = vld [vmem:[%s15926_s14 + $0x18] sm:$0xff]   ;;  %s387_s17 = sadd.s32 %s15164_s9, %s15163_s15 }
  0x88   : > { %v581_v19 = vshll.u32 %v15940_v16, 16  ;;  %v13264_v39 = vcombine.low %v13261_v33, %v15958_v34  ;;  %v15981_v44 = vld [vmem:[%s15926_s14 + $0x14] ss:$0 sps:$4 sm:$0x11]   ;;  %v13283_v55 = vld [vmem:[%s15926_s14 + $0x18] sm:$0xf] }
  0x89   : > { %v574_v17 = vshrl.u32 %v15937_v15, 16  ;;  %v576_v18 = vshll.u32 %v15937_v15, 16  ;;  %v1043_v51 = vshll.u32 %v15981_v44, 16  ;;  %v16038_v56 = vld [vmem:[%s15926_s14 + $0x1c] sm:$0xf]  ;;  %v16056_v58 = vld [vmem:[%s15926_s14 + $0xc] sm:$0xff]  }
  0x8a   : > { %v583_v23 = vrot.slane %v581_v19, 1  ;;  %v1038_v45 = vshll.u32 %v13264_v39, 16  ;;  %v1036_v49 = vshrl.u32 %v13264_v39, 16  ;;  %v13286_v57 = vcombine.low %v13283_v55, %v16038_v56  ;;  %v16061_v60 = vld [vmem:[%s15926_s14 + $0x20] ss:$0 sps:$4 sm:$0x11]  }
  0x8b   : > { %v578_v22 = vrot.slane %v576_v18, 1  ;;  %v1045_v53 = vrot.slane %v1043_v51, 1  ;;  %v1421_v63 = vshll.u32 %v16061_v60, 16  ;;  %v13305_v5 = vld [vmem:[%s15926_s14 + $0x24] sm:$0xf]  ;;  %s13214_s10 = sshll.u32 %s387_s17, 2 }
  0x8c   : > { %v1040_v50 = vrot.slane %v1038_v45, 1  ;;  %v1416_v59 = vshll.u32 %v13286_v57, 16  ;;  %v1414_v61 = vshrl.u32 %v13286_v57, 16  ;;  %v16113_v7 = vld [vmem:[%s15926_s14 + $0x28] sm:$0xf]  ;;  %s16447_s19 = scalar_lea.vmem %s18485_s1, %s13214_s10  ;;  %s395_s22 = smul.u32 6, %s394_s30 }
  0x8d   : > { %v579_v26 = vor.u32 %v578_v22, %v574_v17  ;;  %v1423_v2 = vrot.slane %v1421_v63, 1  ;;  %v13308_v13 = vcombine.low %v13305_v5, %v16113_v7  ;;  %v13327_v24 = vld [vmem:[%s15926_s14 + $0x30] sm:$0xf]  ;;  %v16176_v25 = vld [vmem:[%s15926_s14 + $0x34] sm:$0xf]  ;;  %v2925_v63 = vrot.slane %v15940_v16, 1 }
  0x8e   : > { %v1041_v52 = vor.u32 %v1040_v50, %v1036_v49  ;;  %v1418_v62 = vrot.slane %v1416_v59, 1  ;;  %v13330_v27 = vcombine.low %v13327_v24, %v16176_v25  ;;  %v13349_v45 = vld [vmem:[%s15926_s14 + $0x3c] sm:$0xf]  ;;  %v16239_v49 = vld [vmem:[%s15926_s14 + $0x40] sm:$0xf]  ;;  %v16246_v50 = vld [vmem:[%s15926_s14 + $0x30] sm:$0xff]  }
  0x8f   : > { %v584_v30 = vsel %vm572_vm1, %v579_v26, %v583_v23  ;;  %v1794_v17 = vshll.u32 %v13308_v13, 16  ;;  %v1792_v18 = vshrl.u32 %v13308_v13, 16  ;;  %v16183_v26 = vld [vmem:[%s15926_s14 + $0x24] sm:$0xff]   ;;  %v13352_v51 = vcombine.low %v13349_v45, %v16239_v49  ;;  %p396_p10 = scmp.lt.s32.totalorder %s395_s22, 35 }
  0x90   : > { %13238 = vmatmul.mubr.msk.bf16.vlgmr.msra.gmra.mrb[0].mxu0 %vm605_vm2, %v584_v30  ;;  %13240 = vmatmul.mubr.msk.bf16.vlgmr.msra.gmra.mrb[0].mxu1 %vm605_vm2, %v584_v30  ;;  %v16026_v54 = vsel %vm572_vm1, %v1041_v52, %v1045_v53  ;;  %v1419_v1 = vor.u32 %v1418_v62, %v1414_v61  ;;  %v2172_v33 = vshll.u32 %v13330_v27, 16  ;;  %v2170_v35 = vshrl.u32 %v13330_v27, 16  ;;  %v16256_v52 = vld [vmem:[%s15926_s14 + $0x44] ss:$0 sps:$4 sm:$0x11]  }
  0x91   : > { %721 = vmatpush1.bf16.msra.mxu0 %v15946_v28  ;;  %764 = vmatpush1.bf16.msra.mxu1 %v15949_v29  ;;  %v1796_v19 = vrot.slane %v1794_v17, 1  ;;  %v2550_v53 = vshll.u32 %v13352_v51, 16  ;;  %v2548_v55 = vshrl.u32 %v13352_v51, 16  ;;  %v2555_v59 = vshll.u32 %v16256_v52, 16  ;;  %v13388_v17 = vld [vmem:[%s15926_s14 + $0xc] sm:$0xe] }
  0x92   : > { %752 = vmatprep.mubr.bf16.mxu0 %v15706_v0  ;;  %795 = vmatprep.mubr.bf16.mxu1 %v15706_v0  ;;  %v16089_v3 = vsel %vm572_vm1, %v1419_v1, %v1423_v2  ;;  %v2174_v36 = vrot.slane %v2172_v33, 1  ;;  %v3365_v24 = vrot.slane %v16061_v60, 1  ;;  %v13408_v60 = vld [vmem:[%s15926_s14 + $0x24] sm:$0xe]  ;;  %v3959_v51 = vrot.slane %v16256_v52, 1  ;;  %s18796_s22 = smov (!%p396_p10, %s395_s22), 35 }
  0x93   : > { %13253 = vmatprep.subr.msk.bf16.mxu0 %vm609_vm0, %v15952_v31  ;;  %13255 = vmatprep.subr.msk.bf16.mxu1 %vm609_vm0, %v15954_v32  ;;  %v1797_v21 = vor.u32 %v1796_v19, %v1792_v18  ;;  %v2552_v57 = vrot.slane %v2550_v53, 1  ;;  %v2557_v62 = vrot.slane %v2555_v59, 1  ;;  %v13389_v18 = vcombine.low %v13388_v17, %v15958_v34  ;;  %v4154_v53 = vld [vmem:[#allocation2 + $0x68] sm:$0xff]  ;;  %v16814_v17 = vld [vmem:[%s16447_s19 + $0x4] sm:$0xf]  ;;  %s13865_s21 = sshll.u32 %s18796_s22, 4 }
  0x94   : > { %v2175_v38 = vor.u32 %v2174_v36, %v2170_v35  ;;  %v13409_v27 = vcombine.low %v13408_v60, %v16113_v7  ;;  %v16511_v59 = vcombine.high %v4154_v53, %v4154_v53  ;;  %s18311_s29 = scalar_lea.vmem %s18490_s6, %s13865_s21 }
  0x95   : > { %v2553_v61 = vor.u32 %v2552_v57, %v2548_v55  ;;  %v3166_v19 = vrot.slane %v13389_v18, 1 }
  0x96   : > { %v3562_v33 = vrot.slane %v13409_v27, 1  ;;  %v6543_v27 = vld [vmem:[#allocation2 + $0xa0] sm:$0xff] }
  0x98   : > { %13242 = vmatmul.mubr.msk.bf16.vlgmr.msra.gmra.mrb[4].mxu0 %vm605_vm2, %v584_v30  ;;  %13244 = vmatmul.mubr.msk.bf16.vlgmr.msra.gmra.mrb[4].mxu1 %vm605_vm2, %v584_v30  ;;  %v16193_v30 = vld [vmem:[%s15926_s14 + $0x38] ss:$0 sps:$4 sm:$0x11]  }
  0x99   : > { %853 = vmatpush1.bf16.msra.mxu0 %v15972_v40  ;;  %896 = vmatpush1.bf16.msra.mxu1 %v15975_v42  ;;  %v2177_v37 = vshll.u32 %v16193_v30, 16 }
  0x9a   : > { %884 = vmatprep.mubr.bf16.mxu0 %v15706_v0  ;;  %927 = vmatprep.mubr.bf16.mxu1 %v15706_v0 }
  0x9b   : > { %13257 = vmatprep.subr.msk.bf16.mxu0 %vm609_vm0, %v15983_v46  ;;  %13259 = vmatprep.subr.msk.bf16.mxu1 %vm609_vm0, %v15985_v47  ;;  %v2179_v39 = vrot.slane %v2177_v37, 1 }
  0x9d   : > { %v16215_v41 = vsel %vm572_vm1, %v2175_v38, %v2179_v39  ;;  %v3761_v38 = vrot.slane %v16193_v30, 1  ;;  %v13428_v30 = vld [vmem:[%s15926_s14 + $0x3c] sm:$0xe] }
  0x9e   : > { %v13429_v39 = vcombine.low %v13428_v30, %v16239_v49  ;;  %v4153_v49 = vld [vmem:[#allocation2 + $0x60] sm:$0xff]  ;;  %v6545_v30 = vld [vmem:[#allocation2 + $0xb0] sm:$0xff] }
  0x9f   : > { %v16509_v57 = vcombine.high %v4153_v49, %v4153_v49  ;;  %v13438_v52 = vcombine.low %v4153_v49, %v4153_v49  ;;  %v16874_v49 = vcombine.high %v6545_v30, %v6545_v30 }
  0xa0   : > { %13254 = vmatmul.mubr.msk.bf16.vlgmr.msra.gmra.mrb[0].mxu0 %vm605_vm2, %v15937_v15  ;;  %13256 = vmatmul.mubr.msk.bf16.vlgmr.msra.gmra.mrb[0].mxu1 %vm605_vm2, %v15937_v15  ;;  %v3958_v45 = vrot.slane %v13429_v39, 1  ;;  %v6546_v39 = vld [vmem:[#allocation2 + $0xb8] sm:$0xff] }
  0xa1   : > { %939 = vmatpush1.bf16.msra.mxu0 %v15978_v43  ;;  %982 = vmatpush1.bf16.msra.mxu1 %v15990_v48 }
  0xa2   : > { %970 = vmatprep.mubr.bf16.mxu0 %v15706_v0  ;;  %1013 = vmatprep.mubr.bf16.mxu1 %v15706_v0  ;;  %v16507_v55 = vsel %vm2923_vm3, %v3958_v45, %v3959_v51 }
  0xa3   : > { %13266 = vmatprep.subr.msk.bf16.mxu0 %vm609_vm0, %v15901_v4  ;;  %13268 = vmatprep.subr.msk.bf16.mxu1 %vm609_vm0, %v15903_v6 }
  0xa8   : > { %13258 = vmatmul.mubr.msk.bf16.vlgmr.msra.gmra.mrb[4].mxu0 %vm605_vm2, %v15937_v15  ;;  %13260 = vmatmul.mubr.msk.bf16.vlgmr.msra.gmra.mrb[4].mxu1 %vm605_vm2, %v15937_v15  ;;  %v16130_v15 = vld [vmem:[%s15926_s14 + $0x2c] ss:$0 sps:$4 sm:$0x11]  }
  0xa9   : > { %1051 = vmatpush1.bf16.msra.mxu0 %v15914_v11  ;;  %1094 = vmatpush1.bf16.msra.mxu1 %v15919_v12  ;;  %v1799_v20 = vshll.u32 %v16130_v15, 16  ;;  %v3563_v35 = vrot.slane %v16130_v15, 1  ;;  %v13418_v15 = vld [vmem:[%s15926_s14 + $0x30] sm:$0xe] }
  0xaa   : > { %1082 = vmatprep.mubr.bf16.mxu0 %v15706_v0  ;;  %1125 = vmatprep.mubr.bf16.mxu1 %v15706_v0  ;;  %v13419_v36 = vcombine.low %v13418_v15, %v16176_v25  ;;  %v16852_v15 = vcombine.high %v6543_v27, %v6543_v27 }
  0xab   : > { %13270 = vmatprep.subr.msk.bf16.mxu0 %vm609_vm0, %v15905_v9  ;;  %13272 = vmatprep.subr.msk.bf16.mxu1 %vm609_vm0, %v15909_v10  ;;  %v1801_v22 = vrot.slane %v1799_v20, 1  ;;  %v3167_v20 = vrot.slane %v15981_v44, 1  ;;  %v13398_v44 = vld [vmem:[%s15926_s14 + $0x18] sm:$0xe]  ;;  %v16442_v7 = vsel %vm2923_vm3, %v3562_v33, %v3563_v35  ;;  %v6544_v33 = vld [vmem:[#allocation2 + $0xa8] sm:$0xff] }
  0xac   : > { %v3760_v37 = vrot.slane %v13419_v36, 1  ;;  %v16854_v36 = vcombine.high %v6544_v33, %v6544_v33 }
  0xad   : > { %v16152_v23 = vsel %vm572_vm1, %v1797_v21, %v1801_v22  ;;  %v16379_v34 = vsel %vm2923_vm3, %v3166_v19, %v3167_v20  ;;  %v13399_v21 = vcombine.low %v13398_v44, %v16038_v56  ;;  %v16828_v19 = vld [vmem:[%s16447_s19 + $0x8] ss:$0 sps:$4 sm:$0x11]  }
  0xae   : > { %v16477_v25 = vsel %vm2923_vm3, %v3760_v37, %v3761_v38  ;;  %v13553_v37 = vcombine.low %v6543_v27, %v6543_v27  ;;  %v13555_v38 = vcombine.low %v6544_v33, %v6544_v33 }
  0xaf   : > { %v3364_v22 = vrot.slane %v13399_v21, 1 }
  0xb0   : > { %13267 = vmatmul.mubr.msk.bf16.vlgmr.msra.gmra.mrb[8].mxu0 %vm605_vm2, %v16026_v54  ;;  %13269 = vmatmul.mubr.msk.bf16.vlgmr.msra.gmra.mrb[8].mxu1 %vm605_vm2, %v16026_v54  ;;  %v16869_v45 = vsel %vm609_vm0, %v13553_v37, 0  ;;  %v16872_v51 = vsel %vm609_vm0, %v13555_v38, 0 }
  0xb1   : > { %1137 = vmatpush1.bf16.msra.mxu0 %v15946_v28  ;;  %1180 = vmatpush1.bf16.msra.mxu1 %v15949_v29  ;;  %v16409_v56 = vsel %vm2923_vm3, %v3364_v22, %v3365_v24  ;;  %v6347_v22 = vshll.u32 %v16828_v19, 16 }
  0xb2   : > { %1168 = vmatprep.mubr.bf16.mxu0 %v15706_v0  ;;  %1211 = vmatprep.mubr.bf16.mxu1 %v15706_v0 }
  0xb3   : > { %13275 = vmatprep.subr.msk.bf16.mxu0 %vm609_vm0, %v15952_v31  ;;  %13277 = vmatprep.subr.msk.bf16.mxu1 %vm609_vm0, %v15954_v32  ;;  %v6349_v60 = vrot.slane %v6347_v22, 1 }
  0xb8   : > { %13271 = vmatmul.mubr.msk.bf16.vlgmr.msra.gmra.mrb[12].mxu0 %vm605_vm2, %v16026_v54  ;;  %13273 = vmatmul.mubr.msk.bf16.vlgmr.msra.gmra.mrb[12].mxu1 %vm605_vm2, %v16026_v54 }
  0xb9   : > { %1231 = vmatpush1.bf16.msra.mxu0 %v15972_v40  ;;  %1274 = vmatpush1.bf16.msra.mxu1 %v15975_v42 }
  0xba   : > { %1262 = vmatprep.mubr.bf16.mxu0 %v15706_v0  ;;  %1305 = vmatprep.mubr.bf16.mxu1 %v15706_v0 }
  0xbb   : > { %13279 = vmatprep.subr.msk.bf16.mxu0 %vm609_vm0, %v15983_v46  ;;  %13281 = vmatprep.subr.msk.bf16.mxu1 %vm609_vm0, %v15985_v47 }
  0xc0   : > { %13276 = vmatmul.mubr.msk.bf16.vlgmr.msra.gmra.mrb[8].mxu0 %vm605_vm2, %v16056_v58  ;;  %13278 = vmatmul.mubr.msk.bf16.vlgmr.msra.gmra.mrb[8].mxu1 %vm605_vm2, %v16056_v58 }
  0xc1   : > { %1317 = vmatpush1.bf16.msra.mxu0 %v15978_v43  ;;  %1360 = vmatpush1.bf16.msra.mxu1 %v15990_v48 }
  0xc2   : > { %1348 = vmatprep.mubr.bf16.mxu0 %v15706_v0  ;;  %1391 = vmatprep.mubr.bf16.mxu1 %v15706_v0 }
  0xc3   : > { %13288 = vmatprep.subr.msk.bf16.mxu0 %vm609_vm0, %v15901_v4  ;;  %13290 = vmatprep.subr.msk.bf16.mxu1 %vm609_vm0, %v15903_v6 }
  0xc8   : > { %13280 = vmatmul.mubr.msk.bf16.vlgmr.msra.gmra.mrb[12].mxu0 %vm605_vm2, %v16056_v58  ;;  %13282 = vmatmul.mubr.msk.bf16.vlgmr.msra.gmra.mrb[12].mxu1 %vm605_vm2, %v16056_v58 }
  0xc9   : > { %1429 = vmatpush1.bf16.msra.mxu0 %v15914_v11  ;;  %1472 = vmatpush1.bf16.msra.mxu1 %v15919_v12 }
  0xca   : > { %1460 = vmatprep.mubr.bf16.mxu0 %v15706_v0  ;;  %1503 = vmatprep.mubr.bf16.mxu1 %v15706_v0 }
  0xcb   : > { %13292 = vmatprep.subr.msk.bf16.mxu0 %vm609_vm0, %v15905_v9  ;;  %13294 = vmatprep.subr.msk.bf16.mxu1 %vm609_vm0, %v15909_v10 }
  0xd0   : > { %13289 = vmatmul.mubr.msk.bf16.vlgmr.msra.gmra.mrb[16].mxu0 %vm605_vm2, %v16089_v3  ;;  %13291 = vmatmul.mubr.msk.bf16.vlgmr.msra.gmra.mrb[16].mxu1 %vm605_vm2, %v16089_v3 }
  0xd1   : > { %1515 = vmatpush1.bf16.msra.mxu0 %v15946_v28  ;;  %1558 = vmatpush1.bf16.msra.mxu1 %v15949_v29 }
  0xd2   : > { %1546 = vmatprep.mubr.bf16.mxu0 %v15706_v0  ;;  %1589 = vmatprep.mubr.bf16.mxu1 %v15706_v0 }
  0xd3   : > { %13297 = vmatprep.subr.msk.bf16.mxu0 %vm609_vm0, %v15952_v31  ;;  %13299 = vmatprep.subr.msk.bf16.mxu1 %vm609_vm0, %v15954_v32 }
  0xd8   : > { %13293 = vmatmul.mubr.msk.bf16.vlgmr.msra.gmra.mrb[20].mxu0 %vm605_vm2, %v16089_v3  ;;  %13295 = vmatmul.mubr.msk.bf16.vlgmr.msra.gmra.mrb[20].mxu1 %vm605_vm2, %v16089_v3 }
  0xd9   : > { %1609 = vmatpush1.bf16.msra.mxu0 %v15972_v40  ;;  %1652 = vmatpush1.bf16.msra.mxu1 %v15975_v42 }
  0xda   : > { %1640 = vmatprep.mubr.bf16.mxu0 %v15706_v0  ;;  %1683 = vmatprep.mubr.bf16.mxu1 %v15706_v0 }
  0xdb   : > { %13301 = vmatprep.subr.msk.bf16.mxu0 %vm609_vm0, %v15983_v46  ;;  %13303 = vmatprep.subr.msk.bf16.mxu1 %vm609_vm0, %v15985_v47 }
  0xe0   : > { %13298 = vmatmul.mubr.msk.bf16.vlgmr.msra.gmra.mrb[16].mxu0 %vm605_vm2, %v16120_v8  ;;  %13300 = vmatmul.mubr.msk.bf16.vlgmr.msra.gmra.mrb[16].mxu1 %vm605_vm2, %v16120_v8 }
  0xe1   : > { %1695 = vmatpush1.bf16.msra.mxu0 %v15978_v43  ;;  %1738 = vmatpush1.bf16.msra.mxu1 %v15990_v48 }
  0xe2   : > { %1726 = vmatprep.mubr.bf16.mxu0 %v15706_v0  ;;  %1769 = vmatprep.mubr.bf16.mxu1 %v15706_v0 }
  0xe3   : > { %13310 = vmatprep.subr.msk.bf16.mxu0 %vm609_vm0, %v15901_v4  ;;  %13312 = vmatprep.subr.msk.bf16.mxu1 %vm609_vm0, %v15903_v6 }
  0xe8   : > { %13302 = vmatmul.mubr.msk.bf16.vlgmr.msra.gmra.mrb[20].mxu0 %vm605_vm2, %v16120_v8  ;;  %13304 = vmatmul.mubr.msk.bf16.vlgmr.msra.gmra.mrb[20].mxu1 %vm605_vm2, %v16120_v8 }
  0xe9   : > { %1807 = vmatpush1.bf16.msra.mxu0 %v15914_v11  ;;  %1850 = vmatpush1.bf16.msra.mxu1 %v15919_v12 }
  0xea   : > { %1838 = vmatprep.mubr.bf16.mxu0 %v15706_v0  ;;  %1881 = vmatprep.mubr.bf16.mxu1 %v15706_v0 }
  0xeb   : > { %13314 = vmatprep.subr.msk.bf16.mxu0 %vm609_vm0, %v15905_v9  ;;  %13316 = vmatprep.subr.msk.bf16.mxu1 %vm609_vm0, %v15909_v10 }
  0xf0   : > { %13311 = vmatmul.mubr.msk.bf16.vlgmr.msra.gmra.mrb[24].mxu0 %vm605_vm2, %v16152_v23  ;;  %13313 = vmatmul.mubr.msk.bf16.vlgmr.msra.gmra.mrb[24].mxu1 %vm605_vm2, %v16152_v23 }
  0xf1   : > { %1893 = vmatpush1.bf16.msra.mxu0 %v15946_v28  ;;  %1936 = vmatpush1.bf16.msra.mxu1 %v15949_v29 }
  0xf2   : > { %1924 = vmatprep.mubr.bf16.mxu0 %v15706_v0  ;;  %1967 = vmatprep.mubr.bf16.mxu1 %v15706_v0 }
  0xf3   : > { %13319 = vmatprep.subr.msk.bf16.mxu0 %vm609_vm0, %v15952_v31  ;;  %13321 = vmatprep.subr.msk.bf16.mxu1 %vm609_vm0, %v15954_v32 }
  0xf8   : > { %13315 = vmatmul.mubr.msk.bf16.vlgmr.msra.gmra.mrb[28].mxu0 %vm605_vm2, %v16152_v23  ;;  %13317 = vmatmul.mubr.msk.bf16.vlgmr.msra.gmra.mrb[28].mxu1 %vm605_vm2, %v16152_v23 }
  0xf9   : > { %1987 = vmatpush1.bf16.msra.mxu0 %v15972_v40  ;;  %2030 = vmatpush1.bf16.msra.mxu1 %v15975_v42 }
  0xfa   : > { %2018 = vmatprep.mubr.bf16.mxu0 %v15706_v0  ;;  %2061 = vmatprep.mubr.bf16.mxu1 %v15706_v0 }
  0xfb   : > { %13323 = vmatprep.subr.msk.bf16.mxu0 %vm609_vm0, %v15983_v46  ;;  %13325 = vmatprep.subr.msk.bf16.mxu1 %vm609_vm0, %v15985_v47 }
 0x100   : > { %13320 = vmatmul.mubr.msk.bf16.vlgmr.msra.gmra.mrb[24].mxu0 %vm605_vm2, %v16183_v26  ;;  %13322 = vmatmul.mubr.msk.bf16.vlgmr.msra.gmra.mrb[24].mxu1 %vm605_vm2, %v16183_v26 }
 0x101   : > { %2073 = vmatpush1.bf16.msra.mxu0 %v15978_v43  ;;  %2116 = vmatpush1.bf16.msra.mxu1 %v15990_v48 }
 0x102   : > { %2104 = vmatprep.mubr.bf16.mxu0 %v15706_v0  ;;  %2147 = vmatprep.mubr.bf16.mxu1 %v15706_v0 }
 0x103   : > { %13332 = vmatprep.subr.msk.bf16.mxu0 %vm609_vm0, %v15901_v4  ;;  %13334 = vmatprep.subr.msk.bf16.mxu1 %vm609_vm0, %v15903_v6 }
 0x108   : > { %13324 = vmatmul.mubr.msk.bf16.vlgmr.msra.gmra.mrb[28].mxu0 %vm605_vm2, %v16183_v26  ;;  %13326 = vmatmul.mubr.msk.bf16.vlgmr.msra.gmra.mrb[28].mxu1 %vm605_vm2, %v16183_v26 }
 0x109   : > { %2185 = vmatpush1.bf16.msra.mxu0 %v15914_v11  ;;  %2228 = vmatpush1.bf16.msra.mxu1 %v15919_v12 }
 0x10a   : > { %2216 = vmatprep.mubr.bf16.mxu0 %v15706_v0  ;;  %2259 = vmatprep.mubr.bf16.mxu1 %v15706_v0 }
 0x10b   : > { %13336 = vmatprep.subr.msk.bf16.mxu0 %vm609_vm0, %v15905_v9  ;;  %13338 = vmatprep.subr.msk.bf16.mxu1 %vm609_vm0, %v15909_v10 }
 0x110   : > { %13333 = vmatmul.mubr.msk.bf16.vlgmr.msra.gmra.mrb[32].mxu0 %vm605_vm2, %v16215_v41  ;;  %13335 = vmatmul.mubr.msk.bf16.vlgmr.msra.gmra.mrb[32].mxu1 %vm605_vm2, %v16215_v41 }
 0x111   : > { %2271 = vmatpush1.bf16.msra.mxu0 %v15946_v28  ;;  %2314 = vmatpush1.bf16.msra.mxu1 %v15949_v29 }
 0x112   : > { %2302 = vmatprep.mubr.bf16.mxu0 %v15706_v0  ;;  %2345 = vmatprep.mubr.bf16.mxu1 %v15706_v0 }
 0x113   : > { %13341 = vmatprep.subr.msk.bf16.mxu0 %vm609_vm0, %v15952_v31  ;;  %13343 = vmatprep.subr.msk.bf16.mxu1 %vm609_vm0, %v15954_v32 }
 0x118   : > { %13337 = vmatmul.mubr.msk.bf16.vlgmr.msra.gmra.mrb[36].mxu0 %vm605_vm2, %v16215_v41  ;;  %13339 = vmatmul.mubr.msk.bf16.vlgmr.msra.gmra.mrb[36].mxu1 %vm605_vm2, %v16215_v41 }
 0x119   : > { %2365 = vmatpush1.bf16.msra.mxu0 %v15972_v40  ;;  %2408 = vmatpush1.bf16.msra.mxu1 %v15975_v42 }
 0x11a   : > { %2396 = vmatprep.mubr.bf16.mxu0 %v15706_v0  ;;  %2439 = vmatprep.mubr.bf16.mxu1 %v15706_v0 }
 0x11b   : > { %13345 = vmatprep.subr.msk.bf16.mxu0 %vm609_vm0, %v15983_v46  ;;  %13347 = vmatprep.subr.msk.bf16.mxu1 %vm609_vm0, %v15985_v47 }
 0x120   : > { %13342 = vmatmul.mubr.msk.bf16.vlgmr.msra.gmra.mrb[32].mxu0 %vm605_vm2, %v16246_v50  ;;  %13344 = vmatmul.mubr.msk.bf16.vlgmr.msra.gmra.mrb[32].mxu1 %vm605_vm2, %v16246_v50 }
 0x121   : > { %2451 = vmatpush1.bf16.msra.mxu0 %v15978_v43  ;;  %2494 = vmatpush1.bf16.msra.mxu1 %v15990_v48 }
 0x122   : > { %2482 = vmatprep.mubr.bf16.mxu0 %v15706_v0  ;;  %2525 = vmatprep.mubr.bf16.mxu1 %v15706_v0 }
 0x123   : > { %13354 = vmatprep.subr.msk.bf16.mxu0 %vm609_vm0, %v15901_v4  ;;  %13356 = vmatprep.subr.msk.bf16.mxu1 %vm609_vm0, %v15903_v6  ;;  %v16278_v4 = vsel %vm572_vm1, %v2553_v61, %v2557_v62  ;;  %v16305_v6 = vld [vmem:[%s15926_s14 + $0x3c] sm:$0xff]   ;;  %v13440_v61 = vcombine.low %v4154_v53, %v4154_v53  ;;  %v4155_v62 = vld [vmem:[#allocation2 + $0x70] sm:$0xff]  ;;  %v16876_v53 = vcombine.high %v6546_v39, %v6546_v39 }
 0x128   : > { %13346 = vmatmul.mubr.msk.bf16.vlgmr.msra.gmra.mrb[36].mxu0 %vm605_vm2, %v16246_v50  ;;  %13348 = vmatmul.mubr.msk.bf16.vlgmr.msra.gmra.mrb[36].mxu1 %vm605_vm2, %v16246_v50 }
 0x129   : > { %2563 = vmatpush1.bf16.msra.mxu0 %v15914_v11  ;;  %2606 = vmatpush1.bf16.msra.mxu1 %v15919_v12 }
 0x12a   : > { %2594 = vmatprep.mubr.bf16.mxu0 %v15706_v0  ;;  %2637 = vmatprep.mubr.bf16.mxu1 %v15706_v0 }
 0x12b   : > { %13358 = vmatprep.subr.msk.bf16.mxu0 %vm609_vm0, %v15905_v9  ;;  %13360 = vmatprep.subr.msk.bf16.mxu1 %vm609_vm0, %v15909_v10  ;;  %v2915_v9 = vld [vmem:[#allocation2 + $0x40] sm:$0xff]  ;;  %v2916_v10 = vld [vmem:[#allocation2 + $0x48] sm:$0xff] }
 0x12c   : > { %v16307_v11 = vcombine.high %v2915_v9, %v2915_v9  ;;  %v16309_v12 = vcombine.high %v2916_v10, %v2916_v10 }
 0x130   : > { %13355 = vmatmul.mubr.msk.bf16.vlgmr.msra.gmra.mrb[40].mxu0 %vm605_vm2, %v16278_v4  ;;  %13357 = vmatmul.mubr.msk.bf16.vlgmr.msra.gmra.mrb[40].mxu1 %vm605_vm2, %v16278_v4 }
 0x131   : > { %2649 = vmatpush1.bf16.msra.mxu0 %v15946_v28  ;;  %2692 = vmatpush1.bf16.msra.mxu1 %v15949_v29  ;;  %v13372_v28 = vcombine.low %v2915_v9, %v2915_v9  ;;  %v13374_v29 = vcombine.low %v2916_v10, %v2916_v10  ;;  %v4156_v9 = vld [vmem:[#allocation2 + $0x78] sm:$0xff]  ;;  %v16526_v10 = vsel %vm609_vm0, %v13438_v52, 0 }
 0x132   : > { %2680 = vmatprep.mubr.bf16.mxu0 %v15706_v0  ;;  %2723 = vmatprep.mubr.bf16.mxu1 %v15706_v0 }
 0x133   : > { %13363 = vmatprep.subr.msk.bf16.mxu0 %vm609_vm0, %v15952_v31  ;;  %13365 = vmatprep.subr.msk.bf16.mxu1 %vm609_vm0, %v15954_v32  ;;  %v2919_v31 = vld [vmem:[%s15926_s14] sm:$0xe]  ;;  %v2917_v32 = vld [vmem:[#allocation2 + $0x50] sm:$0xff] }
 0x134   : > { %v13376_v1 = vcombine.low %v2917_v32, %v2917_v32 }
 0x136   : > { %v16350_v13 = vsel %vm609_vm0, %v13376_v1, 0 }
 0x138   : > { %13359 = vmatmul.mubr.msk.bf16.vlgmr.msra.gmra.mrb[44].mxu0 %vm605_vm2, %v16278_v4  ;;  %13361 = vmatmul.mubr.msk.bf16.vlgmr.msra.gmra.mrb[44].mxu1 %vm605_vm2, %v16278_v4 }
 0x139   : > { %2743 = vmatpush1.bf16.msra.mxu0 %v15972_v40  ;;  %2786 = vmatpush1.bf16.msra.mxu1 %v15975_v42  ;;  %v2918_v40 = vld [vmem:[#allocation2 + $0x58] sm:$0xff]  ;;  %v13371_v42 = vcombine.low %v2919_v31, %v15932_v14  ;;  %v13444_v31 = vcombine.low %v4156_v9, %v4156_v9 }
 0x13a   : > { %2774 = vmatprep.mubr.bf16.mxu0 %v15706_v0  ;;  %2817 = vmatprep.mubr.bf16.mxu1 %v15706_v0  ;;  %v13378_v2 = vcombine.low %v2918_v40, %v2918_v40 }
 0x13b   : > { %13367 = vmatprep.subr.msk.bf16.mxu0 %vm609_vm0, %v15983_v46  ;;  %13369 = vmatprep.subr.msk.bf16.mxu1 %vm609_vm0, %v15985_v47  ;;  %v16329_v46 = vsel %vm609_vm0, %v13374_v29, 0  ;;  %v16331_v47 = vcombine.high %v2917_v32, %v2917_v32  ;;  %v2924_v14 = vrot.slane %v13371_v42, 1  ;;  %v13442_v29 = vcombine.low %v4155_v62, %v4155_v62 }
 0x13c   : > { %v16353_v16 = vsel %vm609_vm0, %v13378_v2, 0 }
 0x13d   : > { %v2926_v5 = vsel %vm2923_vm3, %v2924_v14, %v2925_v63  ;;  %v16548_v32 = vsel %vm609_vm0, %v13442_v29, 0 }
 0x140   : > { %13364 = vmatmul.mubr.msk.bf16.vlgmr.msra.gmra.mrb[40].mxu0 %vm605_vm2, %v16305_v6  ;;  %13366 = vmatmul.mubr.msk.bf16.vlgmr.msra.gmra.mrb[40].mxu1 %vm605_vm2, %v16305_v6 }
 0x141   : > { %2829 = vmatpush1.bf16.msra.mxu0 %v15978_v43  ;;  %2872 = vmatpush1.bf16.msra.mxu1 %v15990_v48  ;;  %v16326_v43 = vsel %vm609_vm0, %v13372_v28, 0  ;;  %v16333_v48 = vcombine.high %v2918_v40, %v2918_v40  ;;  %v16533_v28 = vcombine.high %v4156_v9, %v4156_v9  ;;  %v16551_v40 = vsel %vm609_vm0, %v13444_v31, 0 }
 0x142   : > { %2860 = vmatprep.mubr.bf16.mxu0 %v15706_v0  ;;  %2903 = vmatprep.mubr.bf16.mxu1 %v15706_v0 }
 0x143   : > { %13380 = vmatprep.subr.msk.bf16.mxu0 %vm609_vm0, %v16307_v11  ;;  %13382 = vmatprep.subr.msk.bf16.mxu1 %vm609_vm0, %v16309_v12 }
 0x148   : > { %13368 = vmatmul.mubr.msk.bf16.vlgmr.msra.gmra.mrb[44].mxu0 %vm605_vm2, %v16305_v6  ;;  %13370 = vmatmul.mubr.msk.bf16.vlgmr.msra.gmra.mrb[44].mxu1 %vm605_vm2, %v16305_v6 }
 0x149   : > { %2975 = vmatpush1.bf16.msra.mxu0 %v16326_v43  ;;  %3018 = vmatpush1.bf16.msra.mxu1 %v16329_v46 }
 0x14a   : > { %3006 = vmatprep.mubr.bf16.mxu0 %v15706_v0  ;;  %3049 = vmatprep.mubr.bf16.mxu1 %v15706_v0 }
 0x14b   : > { %13384 = vmatprep.subr.msk.bf16.mxu0 %vm609_vm0, %v16331_v47  ;;  %13386 = vmatprep.subr.msk.bf16.mxu1 %vm609_vm0, %v16333_v48 }
 0x150   : > { %13381 = vmatmul.mubr.msk.bf16.vlgmr.msra.gmra.mrb[0].mxu0 %vm605_vm2, %v2926_v5  ;;  %13383 = vmatmul.mubr.msk.bf16.vlgmr.msra.gmra.mrb[0].mxu1 %vm605_vm2, %v2926_v5 }
 0x151   : > { %3061 = vmatpush1.bf16.msra.mxu0 %v16350_v13  ;;  %3104 = vmatpush1.bf16.msra.mxu1 %v16353_v16 }
 0x152   : > { %3092 = vmatprep.mubr.bf16.mxu0 %v15706_v0  ;;  %3135 = vmatprep.mubr.bf16.mxu1 %v15706_v0 }
 0x153   : > { %13390 = vmatprep.subr.msk.bf16.mxu0 %vm609_vm0, %v16307_v11  ;;  %13392 = vmatprep.subr.msk.bf16.mxu1 %vm609_vm0, %v16309_v12 }
 0x158   : > { %13385 = vmatmul.mubr.msk.bf16.vlgmr.msra.gmra.mrb[4].mxu0 %vm605_vm2, %v2926_v5  ;;  %13387 = vmatmul.mubr.msk.bf16.vlgmr.msra.gmra.mrb[4].mxu1 %vm605_vm2, %v2926_v5 }
 0x159   : > { %3173 = vmatpush1.bf16.msra.mxu0 %v16326_v43  ;;  %3216 = vmatpush1.bf16.msra.mxu1 %v16329_v46 }
 0x15a   : > { %3204 = vmatprep.mubr.bf16.mxu0 %v15706_v0  ;;  %3247 = vmatprep.mubr.bf16.mxu1 %v15706_v0 }
 0x15b   : > { %13394 = vmatprep.subr.msk.bf16.mxu0 %vm609_vm0, %v16331_v47  ;;  %13396 = vmatprep.subr.msk.bf16.mxu1 %vm609_vm0, %v16333_v48 }
 0x160   : > { %13391 = vmatmul.mubr.msk.bf16.vlgmr.msra.gmra.mrb[8].mxu0 %vm605_vm2, %v16379_v34  ;;  %13393 = vmatmul.mubr.msk.bf16.vlgmr.msra.gmra.mrb[8].mxu1 %vm605_vm2, %v16379_v34 }
 0x161   : > { %3259 = vmatpush1.bf16.msra.mxu0 %v16350_v13  ;;  %3302 = vmatpush1.bf16.msra.mxu1 %v16353_v16 }
 0x162   : > { %3290 = vmatprep.mubr.bf16.mxu0 %v15706_v0  ;;  %3333 = vmatprep.mubr.bf16.mxu1 %v15706_v0 }
 0x163   : > { %13400 = vmatprep.subr.msk.bf16.mxu0 %vm609_vm0, %v16307_v11  ;;  %13402 = vmatprep.subr.msk.bf16.mxu1 %vm609_vm0, %v16309_v12 }
 0x168   : > { %13395 = vmatmul.mubr.msk.bf16.vlgmr.msra.gmra.mrb[12].mxu0 %vm605_vm2, %v16379_v34  ;;  %13397 = vmatmul.mubr.msk.bf16.vlgmr.msra.gmra.mrb[12].mxu1 %vm605_vm2, %v16379_v34 }
 0x169   : > { %3371 = vmatpush1.bf16.msra.mxu0 %v16326_v43  ;;  %3414 = vmatpush1.bf16.msra.mxu1 %v16329_v46 }
 0x16a   : > { %3402 = vmatprep.mubr.bf16.mxu0 %v15706_v0  ;;  %3445 = vmatprep.mubr.bf16.mxu1 %v15706_v0 }
 0x16b   : > { %13404 = vmatprep.subr.msk.bf16.mxu0 %vm609_vm0, %v16331_v47  ;;  %13406 = vmatprep.subr.msk.bf16.mxu1 %vm609_vm0, %v16333_v48 }
 0x170   : > { %13401 = vmatmul.mubr.msk.bf16.vlgmr.msra.gmra.mrb[16].mxu0 %vm605_vm2, %v16409_v56  ;;  %13403 = vmatmul.mubr.msk.bf16.vlgmr.msra.gmra.mrb[16].mxu1 %vm605_vm2, %v16409_v56 }
 0x171   : > { %3457 = vmatpush1.bf16.msra.mxu0 %v16350_v13  ;;  %3500 = vmatpush1.bf16.msra.mxu1 %v16353_v16 }
 0x172   : > { %3488 = vmatprep.mubr.bf16.mxu0 %v15706_v0  ;;  %3531 = vmatprep.mubr.bf16.mxu1 %v15706_v0 }
 0x173   : > { %13410 = vmatprep.subr.msk.bf16.mxu0 %vm609_vm0, %v16307_v11  ;;  %13412 = vmatprep.subr.msk.bf16.mxu1 %vm609_vm0, %v16309_v12 }
 0x178   : > { %13405 = vmatmul.mubr.msk.bf16.vlgmr.msra.gmra.mrb[20].mxu0 %vm605_vm2, %v16409_v56  ;;  %13407 = vmatmul.mubr.msk.bf16.vlgmr.msra.gmra.mrb[20].mxu1 %vm605_vm2, %v16409_v56 }
 0x179   : > { %3569 = vmatpush1.bf16.msra.mxu0 %v16326_v43  ;;  %3612 = vmatpush1.bf16.msra.mxu1 %v16329_v46 }
 0x17a   : > { %3600 = vmatprep.mubr.bf16.mxu0 %v15706_v0  ;;  %3643 = vmatprep.mubr.bf16.mxu1 %v15706_v0 }
 0x17b   : > { %13414 = vmatprep.subr.msk.bf16.mxu0 %vm609_vm0, %v16331_v47  ;;  %13416 = vmatprep.subr.msk.bf16.mxu1 %vm609_vm0, %v16333_v48 }
 0x180   : > { %13411 = vmatmul.mubr.msk.bf16.vlgmr.msra.gmra.mrb[24].mxu0 %vm605_vm2, %v16442_v7  ;;  %13413 = vmatmul.mubr.msk.bf16.vlgmr.msra.gmra.mrb[24].mxu1 %vm605_vm2, %v16442_v7 }
 0x181   : > { %3655 = vmatpush1.bf16.msra.mxu0 %v16350_v13  ;;  %3698 = vmatpush1.bf16.msra.mxu1 %v16353_v16 }
 0x182   : > { %3686 = vmatprep.mubr.bf16.mxu0 %v15706_v0  ;;  %3729 = vmatprep.mubr.bf16.mxu1 %v15706_v0 }
 0x183   : > { %13420 = vmatprep.subr.msk.bf16.mxu0 %vm609_vm0, %v16307_v11  ;;  %13422 = vmatprep.subr.msk.bf16.mxu1 %vm609_vm0, %v16309_v12 }
 0x188   : > { %13415 = vmatmul.mubr.msk.bf16.vlgmr.msra.gmra.mrb[28].mxu0 %vm605_vm2, %v16442_v7  ;;  %13417 = vmatmul.mubr.msk.bf16.vlgmr.msra.gmra.mrb[28].mxu1 %vm605_vm2, %v16442_v7 }
 0x189   : > { %3767 = vmatpush1.bf16.msra.mxu0 %v16326_v43  ;;  %3810 = vmatpush1.bf16.msra.mxu1 %v16329_v46 }
 0x18a   : > { %3798 = vmatprep.mubr.bf16.mxu0 %v15706_v0  ;;  %3841 = vmatprep.mubr.bf16.mxu1 %v15706_v0 }
 0x18b   : > { %13424 = vmatprep.subr.msk.bf16.mxu0 %vm609_vm0, %v16331_v47  ;;  %13426 = vmatprep.subr.msk.bf16.mxu1 %vm609_vm0, %v16333_v48 }
 0x190   : > { %13421 = vmatmul.mubr.msk.bf16.vlgmr.msra.gmra.mrb[32].mxu0 %vm605_vm2, %v16477_v25  ;;  %13423 = vmatmul.mubr.msk.bf16.vlgmr.msra.gmra.mrb[32].mxu1 %vm605_vm2, %v16477_v25 }
 0x191   : > { %3853 = vmatpush1.bf16.msra.mxu0 %v16350_v13  ;;  %3896 = vmatpush1.bf16.msra.mxu1 %v16353_v16 }
 0x192   : > { %3884 = vmatprep.mubr.bf16.mxu0 %v15706_v0  ;;  %3927 = vmatprep.mubr.bf16.mxu1 %v15706_v0 }
 0x193   : > { %13430 = vmatprep.subr.msk.bf16.mxu0 %vm609_vm0, %v16307_v11  ;;  %13432 = vmatprep.subr.msk.bf16.mxu1 %vm609_vm0, %v16309_v12  ;;  %v16529_v11 = vsel %vm609_vm0, %v13440_v61, 0  ;;  %v16531_v12 = vcombine.high %v4155_v62, %v4155_v62 }
 0x198   : > { %13425 = vmatmul.mubr.msk.bf16.vlgmr.msra.gmra.mrb[36].mxu0 %vm605_vm2, %v16477_v25  ;;  %13427 = vmatmul.mubr.msk.bf16.vlgmr.msra.gmra.mrb[36].mxu1 %vm605_vm2, %v16477_v25 }
 0x199   : > { %3965 = vmatpush1.bf16.msra.mxu0 %v16326_v43  ;;  %4008 = vmatpush1.bf16.msra.mxu1 %v16329_v46  ;;  %v5342_v46 = vld [vmem:[#allocation2 + $0x90] sm:$0xff] }
 0x19a   : > { %3996 = vmatprep.mubr.bf16.mxu0 %v15706_v0  ;;  %4039 = vmatprep.mubr.bf16.mxu1 %v15706_v0  ;;  %v16698_v63 = vcombine.high %v5342_v46, %v5342_v46  ;;  %v13499_v2 = vcombine.low %v5342_v46, %v5342_v46 }
 0x19b   : > { %13434 = vmatprep.subr.msk.bf16.mxu0 %vm609_vm0, %v16331_v47  ;;  %13436 = vmatprep.subr.msk.bf16.mxu1 %vm609_vm0, %v16333_v48  ;;  %v5343_v47 = vld [vmem:[#allocation2 + $0x98] sm:$0xff] }
 0x19c   : > { %v16700_v1 = vcombine.high %v5343_v47, %v5343_v47  ;;  %v13501_v5 = vcombine.low %v5343_v47, %v5343_v47 }
 0x1a0   : > { %13431 = vmatmul.mubr.msk.bf16.vlgmr.msra.gmra.mrb[40].mxu0 %vm605_vm2, %v16507_v55  ;;  %13433 = vmatmul.mubr.msk.bf16.vlgmr.msra.gmra.mrb[40].mxu1 %vm605_vm2, %v16507_v55 }
 0x1a1   : > { %4051 = vmatpush1.bf16.msra.mxu0 %v16350_v13  ;;  %4094 = vmatpush1.bf16.msra.mxu1 %v16353_v16  ;;  %v16715_v13 = vsel %vm609_vm0, %v13499_v2, 0  ;;  %v16718_v16 = vsel %vm609_vm0, %v13501_v5, 0  ;;  %v15468_v2 = vld [vmem:[%s15926_s14 + $0x30] sm:$0xff]   ;;  %v15469_v5 = vld [vmem:[%s15926_s14 + $0x3c] sm:$0xff]  }
 0x1a2   : > { %4082 = vmatprep.mubr.bf16.mxu0 %v15706_v0  ;;  %4125 = vmatprep.mubr.bf16.mxu1 %v15706_v0 }
 0x1a3   : > { %13446 = vmatprep.subr.msk.bf16.mxu0 %vm609_vm0, %v16509_v57  ;;  %13448 = vmatprep.subr.msk.bf16.mxu1 %vm609_vm0, %v16511_v59 }
 0x1a8   : > { %13435 = vmatmul.mubr.msk.bf16.vlgmr.msra.gmra.mrb[44].mxu0 %vm605_vm2, %v16507_v55  ;;  %13437 = vmatmul.mubr.msk.bf16.vlgmr.msra.gmra.mrb[44].mxu1 %vm605_vm2, %v16507_v55 }
 0x1a9   : > { %4202 = vmatpush1.bf16.msra.mxu0 %v16526_v10  ;;  %4245 = vmatpush1.bf16.msra.mxu1 %v16529_v11 }
 0x1aa   : > { %4233 = vmatprep.mubr.bf16.mxu0 %v15706_v0  ;;  %4276 = vmatprep.mubr.bf16.mxu1 %v15706_v0 }
 0x1ab   : > { %13450 = vmatprep.subr.msk.bf16.mxu0 %vm609_vm0, %v16531_v12  ;;  %13452 = vmatprep.subr.msk.bf16.mxu1 %vm609_vm0, %v16533_v28 }
 0x1b0   : > { %13447 = vmatmul.mubr.msk.bf16.vlgmr.msra.gmra.mrb[0].mxu0 %vm605_vm2, %v16056_v58  ;;  %13449 = vmatmul.mubr.msk.bf16.vlgmr.msra.gmra.mrb[0].mxu1 %vm605_vm2, %v16056_v58 }
 0x1b1   : > { %4288 = vmatpush1.bf16.msra.mxu0 %v16548_v32  ;;  %4331 = vmatpush1.bf16.msra.mxu1 %v16551_v40 }
 0x1b2   : > { %4319 = vmatprep.mubr.bf16.mxu0 %v15706_v0  ;;  %4362 = vmatprep.mubr.bf16.mxu1 %v15706_v0 }
 0x1b3   : > { %13454 = vmatprep.subr.msk.bf16.mxu0 %vm609_vm0, %v16509_v57  ;;  %13456 = vmatprep.subr.msk.bf16.mxu1 %vm609_vm0, %v16511_v59 }
 0x1b8   : > { %13451 = vmatmul.mubr.msk.bf16.vlgmr.msra.gmra.mrb[4].mxu0 %vm605_vm2, %v16056_v58  ;;  %13453 = vmatmul.mubr.msk.bf16.vlgmr.msra.gmra.mrb[4].mxu1 %vm605_vm2, %v16056_v58  ;;  %v16674_v58 = vld [vmem:[%s16447_s19] sm:$0xff]  }
 0x1b9   : > { %4390 = vmatpush1.bf16.msra.mxu0 %v16526_v10  ;;  %4433 = vmatpush1.bf16.msra.mxu1 %v16529_v11 }
 0x1ba   : > { %4421 = vmatprep.mubr.bf16.mxu0 %v15706_v0  ;;  %4464 = vmatprep.mubr.bf16.mxu1 %v15706_v0 }
 0x1bb   : > { %13458 = vmatprep.subr.msk.bf16.mxu0 %vm609_vm0, %v16531_v12  ;;  %13460 = vmatprep.subr.msk.bf16.mxu1 %vm609_vm0, %v16533_v28 }
 0x1c0   : > { %13455 = vmatmul.mubr.msk.bf16.vlgmr.msra.gmra.mrb[8].mxu0 %vm605_vm2, %v16120_v8  ;;  %13457 = vmatmul.mubr.msk.bf16.vlgmr.msra.gmra.mrb[8].mxu1 %vm605_vm2, %v16120_v8 }
 0x1c1   : > { %4476 = vmatpush1.bf16.msra.mxu0 %v16548_v32  ;;  %4519 = vmatpush1.bf16.msra.mxu1 %v16551_v40 }
 0x1c2   : > { %4507 = vmatprep.mubr.bf16.mxu0 %v15706_v0  ;;  %4550 = vmatprep.mubr.bf16.mxu1 %v15706_v0 }
 0x1c3   : > { %13462 = vmatprep.subr.msk.bf16.mxu0 %vm609_vm0, %v16509_v57  ;;  %13464 = vmatprep.subr.msk.bf16.mxu1 %vm609_vm0, %v16511_v59 }
 0x1c8   : > { %13459 = vmatmul.mubr.msk.bf16.vlgmr.msra.gmra.mrb[12].mxu0 %vm605_vm2, %v16120_v8  ;;  %13461 = vmatmul.mubr.msk.bf16.vlgmr.msra.gmra.mrb[12].mxu1 %vm605_vm2, %v16120_v8  ;;  %v5340_v8 = vld [vmem:[#allocation2 + $0x80] sm:$0xff] }
 0x1c9   : > { %4578 = vmatpush1.bf16.msra.mxu0 %v16526_v10  ;;  %4621 = vmatpush1.bf16.msra.mxu1 %v16529_v11  ;;  %v13495_v42 = vcombine.low %v5340_v8, %v5340_v8 }
 0x1ca   : > { %4609 = vmatprep.mubr.bf16.mxu0 %v15706_v0  ;;  %4652 = vmatprep.mubr.bf16.mxu1 %v15706_v0 }
 0x1cb   : > { %13466 = vmatprep.subr.msk.bf16.mxu0 %vm609_vm0, %v16531_v12  ;;  %13468 = vmatprep.subr.msk.bf16.mxu1 %vm609_vm0, %v16533_v28  ;;  %v16693_v48 = vsel %vm609_vm0, %v13495_v42, 0 }
 0x1d0   : > { %13463 = vmatmul.mubr.msk.bf16.vlgmr.msra.gmra.mrb[16].mxu0 %vm605_vm2, %v16183_v26  ;;  %13465 = vmatmul.mubr.msk.bf16.vlgmr.msra.gmra.mrb[16].mxu1 %vm605_vm2, %v16183_v26 }
 0x1d1   : > { %4664 = vmatpush1.bf16.msra.mxu0 %v16548_v32  ;;  %4707 = vmatpush1.bf16.msra.mxu1 %v16551_v40 }
 0x1d2   : > { %4695 = vmatprep.mubr.bf16.mxu0 %v15706_v0  ;;  %4738 = vmatprep.mubr.bf16.mxu1 %v15706_v0 }
 0x1d3   : > { %13470 = vmatprep.subr.msk.bf16.mxu0 %vm609_vm0, %v16509_v57  ;;  %13472 = vmatprep.subr.msk.bf16.mxu1 %vm609_vm0, %v16511_v59 }
 0x1d8   : > { %13467 = vmatmul.mubr.msk.bf16.vlgmr.msra.gmra.mrb[20].mxu0 %vm605_vm2, %v16183_v26  ;;  %13469 = vmatmul.mubr.msk.bf16.vlgmr.msra.gmra.mrb[20].mxu1 %vm605_vm2, %v16183_v26  ;;  %v5341_v26 = vld [vmem:[#allocation2 + $0x88] sm:$0xff] }
 0x1d9   : > { %4766 = vmatpush1.bf16.msra.mxu0 %v16526_v10  ;;  %4809 = vmatpush1.bf16.msra.mxu1 %v16529_v11  ;;  %v13497_v43 = vcombine.low %v5341_v26, %v5341_v26 }
 0x1da   : > { %4797 = vmatprep.mubr.bf16.mxu0 %v15706_v0  ;;  %4840 = vmatprep.mubr.bf16.mxu1 %v15706_v0 }
 0x1db   : > { %13474 = vmatprep.subr.msk.bf16.mxu0 %vm609_vm0, %v16531_v12  ;;  %13476 = vmatprep.subr.msk.bf16.mxu1 %vm609_vm0, %v16533_v28  ;;  %v16696_v14 = vsel %vm609_vm0, %v13497_v43, 0 }
 0x1e0   : > { %13471 = vmatmul.mubr.msk.bf16.vlgmr.msra.gmra.mrb[24].mxu0 %vm605_vm2, %v16246_v50  ;;  %13473 = vmatmul.mubr.msk.bf16.vlgmr.msra.gmra.mrb[24].mxu1 %vm605_vm2, %v16246_v50 }
 0x1e1   : > { %4852 = vmatpush1.bf16.msra.mxu0 %v16548_v32  ;;  %4895 = vmatpush1.bf16.msra.mxu1 %v16551_v40 }
 0x1e2   : > { %4883 = vmatprep.mubr.bf16.mxu0 %v15706_v0  ;;  %4926 = vmatprep.mubr.bf16.mxu1 %v15706_v0 }
 0x1e3   : > { %13478 = vmatprep.subr.msk.bf16.mxu0 %vm609_vm0, %v16509_v57  ;;  %13480 = vmatprep.subr.msk.bf16.mxu1 %vm609_vm0, %v16511_v59 }
 0x1e8   : > { %13475 = vmatmul.mubr.msk.bf16.vlgmr.msra.gmra.mrb[28].mxu0 %vm605_vm2, %v16246_v50  ;;  %13477 = vmatmul.mubr.msk.bf16.vlgmr.msra.gmra.mrb[28].mxu1 %vm605_vm2, %v16246_v50  ;;  %v16676_v50 = vcombine.high %v5340_v8, %v5340_v8  ;;  %v7732_v8 = vld [vmem:[#allocation2 + $0xd0] sm:$0xff] }
 0x1e9   : > { %4954 = vmatpush1.bf16.msra.mxu0 %v16526_v10  ;;  %4997 = vmatpush1.bf16.msra.mxu1 %v16529_v11  ;;  %v17044_v42 = vcombine.high %v7732_v8, %v7732_v8  ;;  %v13614_v46 = vcombine.low %v7732_v8, %v7732_v8 }
 0x1ea   : > { %4985 = vmatprep.mubr.bf16.mxu0 %v15706_v0  ;;  %5028 = vmatprep.mubr.bf16.mxu1 %v15706_v0 }
 0x1eb   : > { %13482 = vmatprep.subr.msk.bf16.mxu0 %vm609_vm0, %v16531_v12  ;;  %13484 = vmatprep.subr.msk.bf16.mxu1 %vm609_vm0, %v16533_v28 }
 0x1f0   : > { %13479 = vmatmul.mubr.msk.bf16.vlgmr.msra.gmra.mrb[32].mxu0 %vm605_vm2, %v16305_v6  ;;  %13481 = vmatmul.mubr.msk.bf16.vlgmr.msra.gmra.mrb[32].mxu1 %vm605_vm2, %v16305_v6 }
 0x1f1   : > { %5040 = vmatpush1.bf16.msra.mxu0 %v16548_v32  ;;  %5083 = vmatpush1.bf16.msra.mxu1 %v16551_v40 }
 0x1f2   : > { %5071 = vmatprep.mubr.bf16.mxu0 %v15706_v0  ;;  %5114 = vmatprep.mubr.bf16.mxu1 %v15706_v0 }
 0x1f3   : > { %13487 = vmatprep.subr.msk.bf16.mxu0 %vm609_vm0, %v16509_v57  ;;  %13489 = vmatprep.subr.msk.bf16.mxu1 %vm609_vm0, %v16511_v59  ;;  %v13557_v57 = vcombine.low %v6545_v30, %v6545_v30  ;;  %v13559_v59 = vcombine.low %v6546_v39, %v6546_v39 }
 0x1f5   : > { %v16891_v52 = vsel %vm609_vm0, %v13557_v57, 0  ;;  %v16894_v61 = vsel %vm609_vm0, %v13559_v59, 0 }
 0x1f8   : > { %13483 = vmatmul.mubr.msk.bf16.vlgmr.msra.gmra.mrb[36].mxu0 %vm605_vm2, %v16305_v6  ;;  %13485 = vmatmul.mubr.msk.bf16.vlgmr.msra.gmra.mrb[36].mxu1 %vm605_vm2, %v16305_v6  ;;  %v16678_v6 = vcombine.high %v5341_v26, %v5341_v26  ;;  %v7733_v26 = vld [vmem:[#allocation2 + $0xd8] sm:$0xff] }
 0x1f9   : > { %5152 = vmatpush1.bf16.msra.mxu0 %v16526_v10  ;;  %5195 = vmatpush1.bf16.msra.mxu1 %v16529_v11  ;;  %v7536_v10 = vrot.slane %v16828_v19, 1  ;;  %v7730_v11 = vld [vmem:[#allocation2 + $0xc0] sm:$0xff]  ;;  %v17046_v43 = vcombine.high %v7733_v26, %v7733_v26  ;;  %v13616_v47 = vcombine.low %v7733_v26, %v7733_v26  ;;  %v17511_v26 = vld [vmem:[#allocation6 + $0xc0] sm:$0xff]  }
 0x1fa   : > { %5183 = vmatprep.mubr.bf16.mxu0 %v15706_v0  ;;  %5226 = vmatprep.mubr.bf16.mxu1 %v15706_v0  ;;  %v17022_v29 = vcombine.high %v7730_v11, %v7730_v11 }
 0x1fb   : > { %13491 = vmatprep.subr.msk.bf16.mxu0 %vm609_vm0, %v16531_v12  ;;  %13493 = vmatprep.subr.msk.bf16.mxu1 %vm609_vm0, %v16533_v28  ;;  %v7731_v12 = vld [vmem:[#allocation2 + $0xc8] sm:$0xff] }
 0x1fc   : > { %v17024_v31 = vcombine.high %v7731_v12, %v7731_v12 }
 0x200   : > { %13488 = vmatmul.mubr.msk.bf16.vlgmr.msra.gmra.mrb[40].mxu0 %vm605_vm2, %v16674_v58  ;;  %13490 = vmatmul.mubr.msk.bf16.vlgmr.msra.gmra.mrb[40].mxu1 %vm605_vm2, %v16674_v58 }
 0x201   : > { %5238 = vmatpush1.bf16.msra.mxu0 %v16548_v32  ;;  %5281 = vmatpush1.bf16.msra.mxu1 %v16551_v40  ;;  %v13610_v32 = vcombine.low %v7730_v11, %v7730_v11  ;;  %v13612_v40 = vcombine.low %v7731_v12, %v7731_v12 }
 0x202   : > { %5269 = vmatprep.mubr.bf16.mxu0 %v15706_v0  ;;  %5312 = vmatprep.mubr.bf16.mxu1 %v15706_v0 }
 0x203   : > { %13503 = vmatprep.subr.msk.bf16.mxu0 %vm609_vm0, %v16676_v50  ;;  %13505 = vmatprep.subr.msk.bf16.mxu1 %vm609_vm0, %v16678_v6 }
 0x208   : > { %13492 = vmatmul.mubr.msk.bf16.vlgmr.msra.gmra.mrb[44].mxu0 %vm605_vm2, %v16674_v58  ;;  %13494 = vmatmul.mubr.msk.bf16.vlgmr.msra.gmra.mrb[44].mxu1 %vm605_vm2, %v16674_v58 }
 0x209   : > { %5389 = vmatpush1.bf16.msra.mxu0 %v16693_v48  ;;  %5432 = vmatpush1.bf16.msra.mxu1 %v16696_v14 }
 0x20a   : > { %5420 = vmatprep.mubr.bf16.mxu0 %v15706_v0  ;;  %5463 = vmatprep.mubr.bf16.mxu1 %v15706_v0 }
 0x20b   : > { %13507 = vmatprep.subr.msk.bf16.mxu0 %vm609_vm0, %v16698_v63  ;;  %13509 = vmatprep.subr.msk.bf16.mxu1 %vm609_vm0, %v16700_v1 }
 0x210   : > { %13504 = vmatmul.mubr.msk.bf16.vlgmr.msra.gmra.mrb[0].mxu0 %vm605_vm2, %v16026_v54  ;;  %13506 = vmatmul.mubr.msk.bf16.vlgmr.msra.gmra.mrb[0].mxu1 %vm605_vm2, %v16026_v54 }
 0x211   : > { %5475 = vmatpush1.bf16.msra.mxu0 %v16715_v13  ;;  %5518 = vmatpush1.bf16.msra.mxu1 %v16718_v16 }
 0x212   : > { %5506 = vmatprep.mubr.bf16.mxu0 %v15706_v0  ;;  %5549 = vmatprep.mubr.bf16.mxu1 %v15706_v0 }
 0x213   : > { %13511 = vmatprep.subr.msk.bf16.mxu0 %vm609_vm0, %v16676_v50  ;;  %13513 = vmatprep.subr.msk.bf16.mxu1 %vm609_vm0, %v16678_v6 }
 0x218   : > { %13508 = vmatmul.mubr.msk.bf16.vlgmr.msra.gmra.mrb[4].mxu0 %vm605_vm2, %v16026_v54  ;;  %13510 = vmatmul.mubr.msk.bf16.vlgmr.msra.gmra.mrb[4].mxu1 %vm605_vm2, %v16026_v54  ;;  %v6328_v54 = vld [vmem:[%s16447_s19] sm:$0xf] }
 0x219   : > { %5577 = vmatpush1.bf16.msra.mxu0 %v16693_v48  ;;  %5620 = vmatpush1.bf16.msra.mxu1 %v16696_v14  ;;  %v13543_v18 = vcombine.low %v6328_v54, %v16814_v17  ;;  %v8919_v54 = vld [vmem:[#allocation2 + $0xe8] sm:$0xff] }
 0x21a   : > { %5608 = vmatprep.mubr.bf16.mxu0 %v15706_v0  ;;  %5651 = vmatprep.mubr.bf16.mxu1 %v15706_v0  ;;  %v13671_v19 = vcombine.low %v8919_v54, %v8919_v54 }
 0x21b   : > { %13515 = vmatprep.subr.msk.bf16.mxu0 %vm609_vm0, %v16698_v63  ;;  %13517 = vmatprep.subr.msk.bf16.mxu1 %vm609_vm0, %v16700_v1  ;;  %v6342_v20 = vshll.u32 %v13543_v18, 16  ;;  %v6340_v44 = vshrl.u32 %v13543_v18, 16 }
 0x21c   : > { %v17193_v22 = vsel %vm609_vm0, %v13671_v19, 0  ;;  %v17577_v19 = vld [vmem:[#allocation6 + $0xe8] sm:$0xff]  }
 0x21d   : > { %v6344_v21 = vrot.slane %v6342_v20, 1  ;;  %v8920_v20 = vld [vmem:[#allocation2 + $0xf0] sm:$0xff] }
 0x21e   : > { %v13673_v27 = vcombine.low %v8920_v20, %v8920_v20 }
 0x21f   : > { %v6345_v24 = vor.u32 %v6344_v21, %v6340_v44  ;;  %v8921_v44 = vld [vmem:[#allocation2 + $0xf8] sm:$0xff] }
 0x220   : > { %13512 = vmatmul.mubr.msk.bf16.vlgmr.msra.gmra.mrb[8].mxu0 %vm605_vm2, %v16089_v3  ;;  %13514 = vmatmul.mubr.msk.bf16.vlgmr.msra.gmra.mrb[8].mxu1 %vm605_vm2, %v16089_v3  ;;  %v13675_v33 = vcombine.low %v8921_v44, %v8921_v44 }
 0x221   : > { %5663 = vmatpush1.bf16.msra.mxu0 %v16715_v13  ;;  %5706 = vmatpush1.bf16.msra.mxu1 %v16718_v16  ;;  %v16850_v35 = vsel %vm572_vm1, %v6345_v24, %v6349_v60  ;;  %v17195_v24 = vcombine.high %v8920_v20, %v8920_v20  ;;  %v17197_v60 = vcombine.high %v8921_v44, %v8921_v44  ;;  %v17581_v20 = vld [vmem:[#allocation6 + $0x28] sm:$0xff]  }
 0x222   : > { %5694 = vmatprep.mubr.bf16.mxu0 %v15706_v0  ;;  %5737 = vmatprep.mubr.bf16.mxu1 %v15706_v0  ;;  %v17583_v44 = vld [vmem:[#allocation6 + $0xa8] sm:$0xff]  }
 0x223   : > { %13519 = vmatprep.subr.msk.bf16.mxu0 %vm609_vm0, %v16676_v50  ;;  %13521 = vmatprep.subr.msk.bf16.mxu1 %vm609_vm0, %v16678_v6 }
 0x228   : > { %13516 = vmatmul.mubr.msk.bf16.vlgmr.msra.gmra.mrb[12].mxu0 %vm605_vm2, %v16089_v3  ;;  %13518 = vmatmul.mubr.msk.bf16.vlgmr.msra.gmra.mrb[12].mxu1 %vm605_vm2, %v16089_v3 }
 0x229   : > { %5765 = vmatpush1.bf16.msra.mxu0 %v16693_v48  ;;  %5808 = vmatpush1.bf16.msra.mxu1 %v16696_v14 }
 0x22a   : > { %5796 = vmatprep.mubr.bf16.mxu0 %v15706_v0  ;;  %5839 = vmatprep.mubr.bf16.mxu1 %v15706_v0 }
 0x22b   : > { %13523 = vmatprep.subr.msk.bf16.mxu0 %vm609_vm0, %v16698_v63  ;;  %13525 = vmatprep.subr.msk.bf16.mxu1 %vm609_vm0, %v16700_v1 }
 0x230   : > { %13520 = vmatmul.mubr.msk.bf16.vlgmr.msra.gmra.mrb[16].mxu0 %vm605_vm2, %v16152_v23  ;;  %13522 = vmatmul.mubr.msk.bf16.vlgmr.msra.gmra.mrb[16].mxu1 %vm605_vm2, %v16152_v23 }
 0x231   : > { %5851 = vmatpush1.bf16.msra.mxu0 %v16715_v13  ;;  %5894 = vmatpush1.bf16.msra.mxu1 %v16718_v16 }
 0x232   : > { %5882 = vmatprep.mubr.bf16.mxu0 %v15706_v0  ;;  %5925 = vmatprep.mubr.bf16.mxu1 %v15706_v0 }
 0x233   : > { %13527 = vmatprep.subr.msk.bf16.mxu0 %vm609_vm0, %v16676_v50  ;;  %13529 = vmatprep.subr.msk.bf16.mxu1 %vm609_vm0, %v16678_v6 }
 0x238   : > { %13524 = vmatmul.mubr.msk.bf16.vlgmr.msra.gmra.mrb[20].mxu0 %vm605_vm2, %v16152_v23  ;;  %13526 = vmatmul.mubr.msk.bf16.vlgmr.msra.gmra.mrb[20].mxu1 %vm605_vm2, %v16152_v23 }
 0x239   : > { %5953 = vmatpush1.bf16.msra.mxu0 %v16693_v48  ;;  %5996 = vmatpush1.bf16.msra.mxu1 %v16696_v14 }
 0x23a   : > { %5984 = vmatprep.mubr.bf16.mxu0 %v15706_v0  ;;  %6027 = vmatprep.mubr.bf16.mxu1 %v15706_v0 }
 0x23b   : > { %13531 = vmatprep.subr.msk.bf16.mxu0 %vm609_vm0, %v16698_v63  ;;  %13533 = vmatprep.subr.msk.bf16.mxu1 %vm609_vm0, %v16700_v1 }
 0x240   : > { %13528 = vmatmul.mubr.msk.bf16.vlgmr.msra.gmra.mrb[24].mxu0 %vm605_vm2, %v16215_v41  ;;  %13530 = vmatmul.mubr.msk.bf16.vlgmr.msra.gmra.mrb[24].mxu1 %vm605_vm2, %v16215_v41 }
 0x241   : > { %6039 = vmatpush1.bf16.msra.mxu0 %v16715_v13  ;;  %6082 = vmatpush1.bf16.msra.mxu1 %v16718_v16 }
 0x242   : > { %6070 = vmatprep.mubr.bf16.mxu0 %v15706_v0  ;;  %6113 = vmatprep.mubr.bf16.mxu1 %v15706_v0 }
 0x243   : > { %13535 = vmatprep.subr.msk.bf16.mxu0 %vm609_vm0, %v16676_v50  ;;  %13537 = vmatprep.subr.msk.bf16.mxu1 %vm609_vm0, %v16678_v6 }
 0x248   : > { %13532 = vmatmul.mubr.msk.bf16.vlgmr.msra.gmra.mrb[28].mxu0 %vm605_vm2, %v16215_v41  ;;  %13534 = vmatmul.mubr.msk.bf16.vlgmr.msra.gmra.mrb[28].mxu1 %vm605_vm2, %v16215_v41 }
 0x249   : > { %6141 = vmatpush1.bf16.msra.mxu0 %v16693_v48  ;;  %6184 = vmatpush1.bf16.msra.mxu1 %v16696_v14 }
 0x24a   : > { %6172 = vmatprep.mubr.bf16.mxu0 %v15706_v0  ;;  %6215 = vmatprep.mubr.bf16.mxu1 %v15706_v0 }
 0x24b   : > { %13539 = vmatprep.subr.msk.bf16.mxu0 %vm609_vm0, %v16698_v63  ;;  %13541 = vmatprep.subr.msk.bf16.mxu1 %vm609_vm0, %v16700_v1 }
 0x250   : > { %13536 = vmatmul.mubr.msk.bf16.vlgmr.msra.gmra.mrb[32].mxu0 %vm605_vm2, %v16278_v4  ;;  %13538 = vmatmul.mubr.msk.bf16.vlgmr.msra.gmra.mrb[32].mxu1 %vm605_vm2, %v16278_v4 }
 0x251   : > { %6227 = vmatpush1.bf16.msra.mxu0 %v16715_v13  ;;  %6270 = vmatpush1.bf16.msra.mxu1 %v16718_v16 }
 0x252   : > { %6258 = vmatprep.mubr.bf16.mxu0 %v15706_v0  ;;  %6301 = vmatprep.mubr.bf16.mxu1 %v15706_v0 }
 0x253   : > { %13545 = vmatprep.subr.msk.bf16.mxu0 %vm609_vm0, %v16676_v50  ;;  %13547 = vmatprep.subr.msk.bf16.mxu1 %vm609_vm0, %v16678_v6  ;;  %v17039_v50 = vsel %vm609_vm0, %v13610_v32, 0  ;;  %v17042_v6 = vsel %vm609_vm0, %v13612_v40, 0 }
 0x258   : > { %13540 = vmatmul.mubr.msk.bf16.vlgmr.msra.gmra.mrb[36].mxu0 %vm605_vm2, %v16278_v4  ;;  %13542 = vmatmul.mubr.msk.bf16.vlgmr.msra.gmra.mrb[36].mxu1 %vm605_vm2, %v16278_v4 }
 0x259   : > { %6355 = vmatpush1.bf16.msra.mxu0 %v16693_v48  ;;  %6398 = vmatpush1.bf16.msra.mxu1 %v16696_v14  ;;  %v17061_v48 = vsel %vm609_vm0, %v13614_v46, 0  ;;  %v17064_v14 = vsel %vm609_vm0, %v13616_v47, 0  ;;  %v17535_v46 = vld [vmem:[#allocation6 + $0x88] sm:$0xff]   ;;  %v17539_v47 = vld [vmem:[#allocation6 + $0x50] sm:$0xff]  }
 0x25a   : > { %6386 = vmatprep.mubr.bf16.mxu0 %v15706_v0  ;;  %6429 = vmatprep.mubr.bf16.mxu1 %v15706_v0 }
 0x25b   : > { %13549 = vmatprep.subr.msk.bf16.mxu0 %vm609_vm0, %v16698_v63  ;;  %13551 = vmatprep.subr.msk.bf16.mxu1 %vm609_vm0, %v16700_v1  ;;  %v15466_v63 = vld [vmem:[%s15926_s14 + $0x18] sm:$0xff]   ;;  %v15467_v1 = vld [vmem:[%s15926_s14 + $0x24] sm:$0xff]  }
 0x260   : > { %13546 = vmatmul.mubr.msk.bf16.vlgmr.msra.gmra.mrb[40].mxu0 %vm605_vm2, %v16850_v35  ;;  %13548 = vmatmul.mubr.msk.bf16.vlgmr.msra.gmra.mrb[40].mxu1 %vm605_vm2, %v16850_v35 }
 0x261   : > { %6441 = vmatpush1.bf16.msra.mxu0 %v16715_v13  ;;  %6484 = vmatpush1.bf16.msra.mxu1 %v16718_v16  ;;  %v15334_v13 = vld [vmem:[%s16447_s19 + $0xc] sm:$0xff]   ;;  %v8918_v16 = vld [vmem:[#allocation2 + $0xe0] sm:$0xff] }
 0x262   : > { %6472 = vmatprep.mubr.bf16.mxu0 %v15706_v0  ;;  %6515 = vmatprep.mubr.bf16.mxu1 %v15706_v0  ;;  %v13669_v18 = vcombine.low %v8918_v16, %v8918_v16 }
 0x263   : > { %13561 = vmatprep.subr.msk.bf16.mxu0 %vm609_vm0, %v16852_v15  ;;  %13563 = vmatprep.subr.msk.bf16.mxu1 %vm609_vm0, %v16854_v36 }
 0x264   : > { %v17190_v21 = vsel %vm609_vm0, %v13669_v18, 0  ;;  %v17575_v18 = vld [vmem:[#allocation6 + $0x68] sm:$0xff]  }
 0x268   : > { %13550 = vmatmul.mubr.msk.bf16.vlgmr.msra.gmra.mrb[44].mxu0 %vm605_vm2, %v16850_v35  ;;  %13552 = vmatmul.mubr.msk.bf16.vlgmr.msra.gmra.mrb[44].mxu1 %vm605_vm2, %v16850_v35 }
 0x269   : > { %6592 = vmatpush1.bf16.msra.mxu0 %v16869_v45  ;;  %6635 = vmatpush1.bf16.msra.mxu1 %v16872_v51 }
 0x26a   : > { %6623 = vmatprep.mubr.bf16.mxu0 %v15706_v0  ;;  %6666 = vmatprep.mubr.bf16.mxu1 %v15706_v0 }
 0x26b   : > { %13565 = vmatprep.subr.msk.bf16.mxu0 %vm609_vm0, %v16874_v49  ;;  %13567 = vmatprep.subr.msk.bf16.mxu1 %vm609_vm0, %v16876_v53 }
 0x270   : > { %13562 = vmatmul.mubr.msk.bf16.vlgmr.msra.gmra.mrb[0].mxu0 %vm605_vm2, %v16379_v34  ;;  %13564 = vmatmul.mubr.msk.bf16.vlgmr.msra.gmra.mrb[0].mxu1 %vm605_vm2, %v16379_v34 }
 0x271   : > { %6678 = vmatpush1.bf16.msra.mxu0 %v16891_v52  ;;  %6721 = vmatpush1.bf16.msra.mxu1 %v16894_v61 }
 0x272   : > { %6709 = vmatprep.mubr.bf16.mxu0 %v15706_v0  ;;  %6752 = vmatprep.mubr.bf16.mxu1 %v15706_v0 }
 0x273   : > { %13569 = vmatprep.subr.msk.bf16.mxu0 %vm609_vm0, %v16852_v15  ;;  %13571 = vmatprep.subr.msk.bf16.mxu1 %vm609_vm0, %v16854_v36 }
 0x278   : > { %13566 = vmatmul.mubr.msk.bf16.vlgmr.msra.gmra.mrb[4].mxu0 %vm605_vm2, %v16379_v34  ;;  %13568 = vmatmul.mubr.msk.bf16.vlgmr.msra.gmra.mrb[4].mxu1 %vm605_vm2, %v16379_v34  ;;  %v7531_v34 = vld [vmem:[%s16447_s19] sm:$0xe] }
 0x279   : > { %6780 = vmatpush1.bf16.msra.mxu0 %v16869_v45  ;;  %6823 = vmatpush1.bf16.msra.mxu1 %v16872_v51  ;;  %v13601_v62 = vcombine.low %v7531_v34, %v16814_v17  ;;  %v17175_v17 = vcombine.high %v8918_v16, %v8918_v16  ;;  %v10123_v34 = vld [vmem:[#allocation2 + $0x110] sm:$0xff]  ;;  %v17563_v16 = vld [vmem:[#allocation6 + $0x60] sm:$0xff]  }
 0x27a   : > { %6811 = vmatprep.mubr.bf16.mxu0 %v15706_v0  ;;  %6854 = vmatprep.mubr.bf16.mxu1 %v15706_v0  ;;  %v17365_v11 = vcombine.high %v10123_v34, %v10123_v34 }
 0x27b   : > { %13573 = vmatprep.subr.msk.bf16.mxu0 %vm609_vm0, %v16874_v49  ;;  %13575 = vmatprep.subr.msk.bf16.mxu1 %vm609_vm0, %v16876_v53  ;;  %v7535_v9 = vrot.slane %v13601_v62, 1  ;;  %v10124_v62 = vld [vmem:[#allocation2 + $0x118] sm:$0xff] }
 0x27c   : > { %v17367_v12 = vcombine.high %v10124_v62, %v10124_v62 }
 0x27d   : > { %v17020_v28 = vsel %vm2923_vm3, %v7535_v9, %v7536_v10 }
 0x280   : > { %13570 = vmatmul.mubr.msk.bf16.vlgmr.msra.gmra.mrb[8].mxu0 %vm605_vm2, %v16409_v56  ;;  %13572 = vmatmul.mubr.msk.bf16.vlgmr.msra.gmra.mrb[8].mxu1 %vm605_vm2, %v16409_v56 }
 0x281   : > { %6866 = vmatpush1.bf16.msra.mxu0 %v16891_v52  ;;  %6909 = vmatpush1.bf16.msra.mxu1 %v16894_v61 }
 0x282   : > { %6897 = vmatprep.mubr.bf16.mxu0 %v15706_v0  ;;  %6940 = vmatprep.mubr.bf16.mxu1 %v15706_v0 }
 0x283   : > { %13577 = vmatprep.subr.msk.bf16.mxu0 %vm609_vm0, %v16852_v15  ;;  %13579 = vmatprep.subr.msk.bf16.mxu1 %vm609_vm0, %v16854_v36 }
 0x288   : > { %13574 = vmatmul.mubr.msk.bf16.vlgmr.msra.gmra.mrb[12].mxu0 %vm605_vm2, %v16409_v56  ;;  %13576 = vmatmul.mubr.msk.bf16.vlgmr.msra.gmra.mrb[12].mxu1 %vm605_vm2, %v16409_v56 }
 0x289   : > { %6968 = vmatpush1.bf16.msra.mxu0 %v16869_v45  ;;  %7011 = vmatpush1.bf16.msra.mxu1 %v16872_v51 }
 0x28a   : > { %6999 = vmatprep.mubr.bf16.mxu0 %v15706_v0  ;;  %7042 = vmatprep.mubr.bf16.mxu1 %v15706_v0 }
 0x28b   : > { %13581 = vmatprep.subr.msk.bf16.mxu0 %vm609_vm0, %v16874_v49  ;;  %13583 = vmatprep.subr.msk.bf16.mxu1 %vm609_vm0, %v16876_v53 }
 0x290   : > { %13578 = vmatmul.mubr.msk.bf16.vlgmr.msra.gmra.mrb[16].mxu0 %vm605_vm2, %v16442_v7  ;;  %13580 = vmatmul.mubr.msk.bf16.vlgmr.msra.gmra.mrb[16].mxu1 %vm605_vm2, %v16442_v7 }
 0x291   : > { %7054 = vmatpush1.bf16.msra.mxu0 %v16891_v52  ;;  %7097 = vmatpush1.bf16.msra.mxu1 %v16894_v61 }
 0x292   : > { %7085 = vmatprep.mubr.bf16.mxu0 %v15706_v0  ;;  %7128 = vmatprep.mubr.bf16.mxu1 %v15706_v0 }
 0x293   : > { %13585 = vmatprep.subr.msk.bf16.mxu0 %vm609_vm0, %v16852_v15  ;;  %13587 = vmatprep.subr.msk.bf16.mxu1 %vm609_vm0, %v16854_v36 }
 0x298   : > { %13582 = vmatmul.mubr.msk.bf16.vlgmr.msra.gmra.mrb[20].mxu0 %vm605_vm2, %v16442_v7  ;;  %13584 = vmatmul.mubr.msk.bf16.vlgmr.msra.gmra.mrb[20].mxu1 %vm605_vm2, %v16442_v7 }
 0x299   : > { %7156 = vmatpush1.bf16.msra.mxu0 %v16869_v45  ;;  %7199 = vmatpush1.bf16.msra.mxu1 %v16872_v51 }
 0x29a   : > { %7187 = vmatprep.mubr.bf16.mxu0 %v15706_v0  ;;  %7230 = vmatprep.mubr.bf16.mxu1 %v15706_v0 }
 0x29b   : > { %13589 = vmatprep.subr.msk.bf16.mxu0 %vm609_vm0, %v16874_v49  ;;  %13591 = vmatprep.subr.msk.bf16.mxu1 %vm609_vm0, %v16876_v53 }
 0x2a0   : > { %13586 = vmatmul.mubr.msk.bf16.vlgmr.msra.gmra.mrb[24].mxu0 %vm605_vm2, %v16477_v25  ;;  %13588 = vmatmul.mubr.msk.bf16.vlgmr.msra.gmra.mrb[24].mxu1 %vm605_vm2, %v16477_v25 }
 0x2a1   : > { %7242 = vmatpush1.bf16.msra.mxu0 %v16891_v52  ;;  %7285 = vmatpush1.bf16.msra.mxu1 %v16894_v61 }
 0x2a2   : > { %7273 = vmatprep.mubr.bf16.mxu0 %v15706_v0  ;;  %7316 = vmatprep.mubr.bf16.mxu1 %v15706_v0 }
 0x2a3   : > { %13593 = vmatprep.subr.msk.bf16.mxu0 %vm609_vm0, %v16852_v15  ;;  %13595 = vmatprep.subr.msk.bf16.mxu1 %vm609_vm0, %v16854_v36 }
 0x2a8   : > { %13590 = vmatmul.mubr.msk.bf16.vlgmr.msra.gmra.mrb[28].mxu0 %vm605_vm2, %v16477_v25  ;;  %13592 = vmatmul.mubr.msk.bf16.vlgmr.msra.gmra.mrb[28].mxu1 %vm605_vm2, %v16477_v25 }
 0x2a9   : > { %7344 = vmatpush1.bf16.msra.mxu0 %v16869_v45  ;;  %7387 = vmatpush1.bf16.msra.mxu1 %v16872_v51 }
 0x2aa   : > { %7375 = vmatprep.mubr.bf16.mxu0 %v15706_v0  ;;  %7418 = vmatprep.mubr.bf16.mxu1 %v15706_v0 }
 0x2ab   : > { %13597 = vmatprep.subr.msk.bf16.mxu0 %vm609_vm0, %v16874_v49  ;;  %13599 = vmatprep.subr.msk.bf16.mxu1 %vm609_vm0, %v16876_v53 }
 0x2b0   : > { %13594 = vmatmul.mubr.msk.bf16.vlgmr.msra.gmra.mrb[32].mxu0 %vm605_vm2, %v16507_v55  ;;  %13596 = vmatmul.mubr.msk.bf16.vlgmr.msra.gmra.mrb[32].mxu1 %vm605_vm2, %v16507_v55 }
 0x2b1   : > { %7430 = vmatpush1.bf16.msra.mxu0 %v16891_v52  ;;  %7473 = vmatpush1.bf16.msra.mxu1 %v16894_v61 }
 0x2b2   : > { %7461 = vmatprep.mubr.bf16.mxu0 %v15706_v0  ;;  %7504 = vmatprep.mubr.bf16.mxu1 %v15706_v0 }
 0x2b3   : > { %13602 = vmatprep.subr.msk.bf16.mxu0 %vm609_vm0, %v16852_v15  ;;  %13604 = vmatprep.subr.msk.bf16.mxu1 %vm609_vm0, %v16854_v36  ;;  %v17210_v15 = vsel %vm609_vm0, %v13673_v27, 0  ;;  %v17213_v36 = vsel %vm609_vm0, %v13675_v33, 0  ;;  %v17599_v27 = vld [vmem:[#allocation6 + $0x78] sm:$0xff]  }
 0x2b4   : > { %18605 = vst [vmem:[#allocation12_spill] sm:$0xff] %v17599_v27  ;;  %v17601_v33 = vld [vmem:[#allocation6 + $0xf8] sm:$0xff]  }
 0x2b5   : > { %18606 = vst [vmem:[#allocation13_spill] sm:$0xff] %v17601_v33 }
 0x2b8   : > { %13598 = vmatmul.mubr.msk.bf16.vlgmr.msra.gmra.mrb[36].mxu0 %vm605_vm2, %v16507_v55  ;;  %13600 = vmatmul.mubr.msk.bf16.vlgmr.msra.gmra.mrb[36].mxu1 %vm605_vm2, %v16507_v55 }
 0x2b9   : > { %7542 = vmatpush1.bf16.msra.mxu0 %v16869_v45  ;;  %7585 = vmatpush1.bf16.msra.mxu1 %v16872_v51 }
 0x2ba   : > { %7573 = vmatprep.mubr.bf16.mxu0 %v15706_v0  ;;  %7616 = vmatprep.mubr.bf16.mxu1 %v15706_v0 }
 0x2bb   : > { %13606 = vmatprep.subr.msk.bf16.mxu0 %vm609_vm0, %v16874_v49  ;;  %13608 = vmatprep.subr.msk.bf16.mxu1 %vm609_vm0, %v16876_v53  ;;  %v10121_v49 = vld [vmem:[#allocation2 + $0x100] sm:$0xff]  ;;  %v10122_v53 = vld [vmem:[#allocation2 + $0x108] sm:$0xff] }
 0x2bc   : > { %v17345_v57 = vcombine.high %v10121_v49, %v10121_v49  ;;  %v17347_v59 = vcombine.high %v10122_v53, %v10122_v53 }
 0x2c0   : > { %13603 = vmatmul.mubr.msk.bf16.vlgmr.msra.gmra.mrb[40].mxu0 %vm605_vm2, %v17020_v28  ;;  %13605 = vmatmul.mubr.msk.bf16.vlgmr.msra.gmra.mrb[40].mxu1 %vm605_vm2, %v17020_v28 }
 0x2c1   : > { %7628 = vmatpush1.bf16.msra.mxu0 %v16891_v52  ;;  %7671 = vmatpush1.bf16.msra.mxu1 %v16894_v61  ;;  %v13730_v52 = vcombine.low %v10121_v49, %v10121_v49  ;;  %v13732_v61 = vcombine.low %v10122_v53, %v10122_v53 }
 0x2c2   : > { %7659 = vmatprep.mubr.bf16.mxu0 %v15706_v0  ;;  %7702 = vmatprep.mubr.bf16.mxu1 %v15706_v0 }
 0x2c3   : > { %13618 = vmatprep.subr.msk.bf16.mxu0 %vm609_vm0, %v17022_v29  ;;  %13620 = vmatprep.subr.msk.bf16.mxu1 %vm609_vm0, %v17024_v31  ;;  %v17360_v9 = vsel %vm609_vm0, %v13730_v52, 0  ;;  %v17363_v10 = vsel %vm609_vm0, %v13732_v61, 0 }
 0x2c8   : > { %13607 = vmatmul.mubr.msk.bf16.vlgmr.msra.gmra.mrb[44].mxu0 %vm605_vm2, %v17020_v28  ;;  %13609 = vmatmul.mubr.msk.bf16.vlgmr.msra.gmra.mrb[44].mxu1 %vm605_vm2, %v17020_v28 }
 0x2c9   : > { %7779 = vmatpush1.bf16.msra.mxu0 %v17039_v50  ;;  %7822 = vmatpush1.bf16.msra.mxu1 %v17042_v6 }
 0x2ca   : > { %7810 = vmatprep.mubr.bf16.mxu0 %v15706_v0  ;;  %7853 = vmatprep.mubr.bf16.mxu1 %v15706_v0 }
 0x2cb   : > { %13622 = vmatprep.subr.msk.bf16.mxu0 %vm609_vm0, %v17044_v42  ;;  %13624 = vmatprep.subr.msk.bf16.mxu1 %vm609_vm0, %v17046_v43 }
 0x2d0   : > { %13619 = vmatmul.mubr.msk.bf16.vlgmr.msra.gmra.mrb[0].mxu0 %vm605_vm2, %v15466_v63  ;;  %13621 = vmatmul.mubr.msk.bf16.vlgmr.msra.gmra.mrb[0].mxu1 %vm605_vm2, %v15466_v63 }
 0x2d1   : > { %7865 = vmatpush1.bf16.msra.mxu0 %v17061_v48  ;;  %7908 = vmatpush1.bf16.msra.mxu1 %v17064_v14 }
 0x2d2   : > { %7896 = vmatprep.mubr.bf16.mxu0 %v15706_v0  ;;  %7939 = vmatprep.mubr.bf16.mxu1 %v15706_v0 }
 0x2d3   : > { %13626 = vmatprep.subr.msk.bf16.mxu0 %vm609_vm0, %v17022_v29  ;;  %13628 = vmatprep.subr.msk.bf16.mxu1 %vm609_vm0, %v17024_v31 }
 0x2d8   : > { %13623 = vmatmul.mubr.msk.bf16.vlgmr.msra.gmra.mrb[4].mxu0 %vm605_vm2, %v15466_v63  ;;  %13625 = vmatmul.mubr.msk.bf16.vlgmr.msra.gmra.mrb[4].mxu1 %vm605_vm2, %v15466_v63  ;;  %v17547_v63 = vld [vmem:[#allocation6 + $0x90] sm:$0xff]  }
 0x2d9   : > { %7967 = vmatpush1.bf16.msra.mxu0 %v17039_v50  ;;  %8010 = vmatpush1.bf16.msra.mxu1 %v17042_v6 }
 0x2da   : > { %7998 = vmatprep.mubr.bf16.mxu0 %v15706_v0  ;;  %8041 = vmatprep.mubr.bf16.mxu1 %v15706_v0 }
 0x2db   : > { %13630 = vmatprep.subr.msk.bf16.mxu0 %vm609_vm0, %v17044_v42  ;;  %13632 = vmatprep.subr.msk.bf16.mxu1 %vm609_vm0, %v17046_v43 }
 0x2e0   : > { %13627 = vmatmul.mubr.msk.bf16.vlgmr.msra.gmra.mrb[8].mxu0 %vm605_vm2, %v15467_v1  ;;  %13629 = vmatmul.mubr.msk.bf16.vlgmr.msra.gmra.mrb[8].mxu1 %vm605_vm2, %v15467_v1 }
 0x2e1   : > { %8053 = vmatpush1.bf16.msra.mxu0 %v17061_v48  ;;  %8096 = vmatpush1.bf16.msra.mxu1 %v17064_v14 }
 0x2e2   : > { %8084 = vmatprep.mubr.bf16.mxu0 %v15706_v0  ;;  %8127 = vmatprep.mubr.bf16.mxu1 %v15706_v0 }
 0x2e3   : > { %13634 = vmatprep.subr.msk.bf16.mxu0 %vm609_vm0, %v17022_v29  ;;  %13636 = vmatprep.subr.msk.bf16.mxu1 %vm609_vm0, %v17024_v31 }
 0x2e8   : > { %13631 = vmatmul.mubr.msk.bf16.vlgmr.msra.gmra.mrb[12].mxu0 %vm605_vm2, %v15467_v1  ;;  %13633 = vmatmul.mubr.msk.bf16.vlgmr.msra.gmra.mrb[12].mxu1 %vm605_vm2, %v15467_v1  ;;  %v17551_v1 = vld [vmem:[#allocation6 + $0x58] sm:$0xff]  }
 0x2e9   : > { %8155 = vmatpush1.bf16.msra.mxu0 %v17039_v50  ;;  %8198 = vmatpush1.bf16.msra.mxu1 %v17042_v6 }
 0x2ea   : > { %8186 = vmatprep.mubr.bf16.mxu0 %v15706_v0  ;;  %8229 = vmatprep.mubr.bf16.mxu1 %v15706_v0 }
 0x2eb   : > { %13638 = vmatprep.subr.msk.bf16.mxu0 %vm609_vm0, %v17044_v42  ;;  %13640 = vmatprep.subr.msk.bf16.mxu1 %vm609_vm0, %v17046_v43 }
 0x2f0   : > { %13635 = vmatmul.mubr.msk.bf16.vlgmr.msra.gmra.mrb[16].mxu0 %vm605_vm2, %v15468_v2  ;;  %13637 = vmatmul.mubr.msk.bf16.vlgmr.msra.gmra.mrb[16].mxu1 %vm605_vm2, %v15468_v2 }
 0x2f1   : > { %8241 = vmatpush1.bf16.msra.mxu0 %v17061_v48  ;;  %8284 = vmatpush1.bf16.msra.mxu1 %v17064_v14 }
 0x2f2   : > { %8272 = vmatprep.mubr.bf16.mxu0 %v15706_v0  ;;  %8315 = vmatprep.mubr.bf16.mxu1 %v15706_v0 }
 0x2f3   : > { %13642 = vmatprep.subr.msk.bf16.mxu0 %vm609_vm0, %v17022_v29  ;;  %13644 = vmatprep.subr.msk.bf16.mxu1 %vm609_vm0, %v17024_v31 }
 0x2f8   : > { %13639 = vmatmul.mubr.msk.bf16.vlgmr.msra.gmra.mrb[20].mxu0 %vm605_vm2, %v15468_v2  ;;  %13641 = vmatmul.mubr.msk.bf16.vlgmr.msra.gmra.mrb[20].mxu1 %vm605_vm2, %v15468_v2  ;;  %v17553_v2 = vld [vmem:[#allocation6 + $0xd8] sm:$0xff]  }
 0x2f9   : > { %8343 = vmatpush1.bf16.msra.mxu0 %v17039_v50  ;;  %8386 = vmatpush1.bf16.msra.mxu1 %v17042_v6 }
 0x2fa   : > { %8374 = vmatprep.mubr.bf16.mxu0 %v15706_v0  ;;  %8417 = vmatprep.mubr.bf16.mxu1 %v15706_v0 }
 0x2fb   : > { %13646 = vmatprep.subr.msk.bf16.mxu0 %vm609_vm0, %v17044_v42  ;;  %13648 = vmatprep.subr.msk.bf16.mxu1 %vm609_vm0, %v17046_v43 }
 0x300   : > { %13643 = vmatmul.mubr.msk.bf16.vlgmr.msra.gmra.mrb[24].mxu0 %vm605_vm2, %v15469_v5  ;;  %13645 = vmatmul.mubr.msk.bf16.vlgmr.msra.gmra.mrb[24].mxu1 %vm605_vm2, %v15469_v5 }
 0x301   : > { %8429 = vmatpush1.bf16.msra.mxu0 %v17061_v48  ;;  %8472 = vmatpush1.bf16.msra.mxu1 %v17064_v14 }
 0x302   : > { %8460 = vmatprep.mubr.bf16.mxu0 %v15706_v0  ;;  %8503 = vmatprep.mubr.bf16.mxu1 %v15706_v0 }
 0x303   : > { %13650 = vmatprep.subr.msk.bf16.mxu0 %vm609_vm0, %v17022_v29  ;;  %13652 = vmatprep.subr.msk.bf16.mxu1 %vm609_vm0, %v17024_v31 }
 0x308   : > { %13647 = vmatmul.mubr.msk.bf16.vlgmr.msra.gmra.mrb[28].mxu0 %vm605_vm2, %v15469_v5  ;;  %13649 = vmatmul.mubr.msk.bf16.vlgmr.msra.gmra.mrb[28].mxu1 %vm605_vm2, %v15469_v5  ;;  %v17557_v5 = vld [vmem:[#allocation6 + $0x18] sm:$0xff]  }
 0x309   : > { %8531 = vmatpush1.bf16.msra.mxu0 %v17039_v50  ;;  %8574 = vmatpush1.bf16.msra.mxu1 %v17042_v6 }
 0x30a   : > { %8562 = vmatprep.mubr.bf16.mxu0 %v15706_v0  ;;  %8605 = vmatprep.mubr.bf16.mxu1 %v15706_v0 }
 0x30b   : > { %13654 = vmatprep.subr.msk.bf16.mxu0 %vm609_vm0, %v17044_v42  ;;  %13656 = vmatprep.subr.msk.bf16.mxu1 %vm609_vm0, %v17046_v43 }
 0x310   : > { %13651 = vmatmul.mubr.msk.bf16.vlgmr.msra.gmra.mrb[32].mxu0 %vm605_vm2, %v16674_v58  ;;  %13653 = vmatmul.mubr.msk.bf16.vlgmr.msra.gmra.mrb[32].mxu1 %vm605_vm2, %v16674_v58 }
 0x311   : > { %8617 = vmatpush1.bf16.msra.mxu0 %v17061_v48  ;;  %8660 = vmatpush1.bf16.msra.mxu1 %v17064_v14 }
 0x312   : > { %8648 = vmatprep.mubr.bf16.mxu0 %v15706_v0  ;;  %8691 = vmatprep.mubr.bf16.mxu1 %v15706_v0 }
 0x313   : > { %13661 = vmatprep.subr.msk.bf16.mxu0 %vm609_vm0, %v17022_v29  ;;  %13663 = vmatprep.subr.msk.bf16.mxu1 %vm609_vm0, %v17024_v31  ;;  %v13734_v29 = vcombine.low %v10123_v34, %v10123_v34  ;;  %v13736_v31 = vcombine.low %v10124_v62, %v10124_v62 }
 0x315   : > { %v17380_v32 = vsel %vm609_vm0, %v13734_v29, 0  ;;  %v17383_v40 = vsel %vm609_vm0, %v13736_v31, 0 }
 0x318   : > { %13655 = vmatmul.mubr.msk.bf16.vlgmr.msra.gmra.mrb[36].mxu0 %vm605_vm2, %v16674_v58  ;;  %13657 = vmatmul.mubr.msk.bf16.vlgmr.msra.gmra.mrb[36].mxu1 %vm605_vm2, %v16674_v58  ;;  %v17177_v58 = vcombine.high %v8919_v54, %v8919_v54  ;;  %v17565_v54 = vld [vmem:[#allocation6 + $0xe0] sm:$0xff]  }
 0x319   : > { %8730 = vmatpush1.bf16.msra.mxu0 %v17039_v50  ;;  %8773 = vmatpush1.bf16.msra.mxu1 %v17042_v6  ;;  %v17521_v50 = vld [vmem:[#allocation6] sm:$0xff]  }
 0x31a   : > { %8761 = vmatprep.mubr.bf16.mxu0 %v15706_v0  ;;  %8804 = vmatprep.mubr.bf16.mxu1 %v15706_v0  ;;  %v17523_v6 = vld [vmem:[#allocation6 + $0x80] sm:$0xff]  }
 0x31b   : > { %13665 = vmatprep.subr.msk.bf16.mxu0 %vm609_vm0, %v17044_v42  ;;  %13667 = vmatprep.subr.msk.bf16.mxu1 %vm609_vm0, %v17046_v43  ;;  %v17525_v42 = vld [vmem:[#allocation6 + $0x48] sm:$0xff]  }
 0x31c   : > { %v17527_v43 = vld [vmem:[#allocation6 + $0xc8] sm:$0xff]  }
 0x320   : > { %13662 = vmatmul.mubr.msk.bf16.vlgmr.msra.gmra.mrb[40].mxu0 %vm605_vm2, %v15334_v13  ;;  %13664 = vmatmul.mubr.msk.bf16.vlgmr.msra.gmra.mrb[40].mxu1 %vm605_vm2, %v15334_v13 }
 0x321   : > { %8816 = vmatpush1.bf16.msra.mxu0 %v17061_v48  ;;  %8859 = vmatpush1.bf16.msra.mxu1 %v17064_v14  ;;  %v17541_v48 = vld [vmem:[#allocation6 + $0xd0] sm:$0xff]  }
 0x322   : > { %8847 = vmatprep.mubr.bf16.mxu0 %v15706_v0  ;;  %8890 = vmatprep.mubr.bf16.mxu1 %v15706_v0  ;;  %v17545_v14 = vld [vmem:[#allocation6 + $0x10] sm:$0xff]  }
 0x323   : > { %13677 = vmatprep.subr.msk.bf16.mxu0 %vm609_vm0, %v17175_v17  ;;  %13679 = vmatprep.subr.msk.bf16.mxu1 %vm609_vm0, %v17177_v58 }
 0x328   : > { %13666 = vmatmul.mubr.msk.bf16.vlgmr.msra.gmra.mrb[44].mxu0 %vm605_vm2, %v15334_v13  ;;  %13668 = vmatmul.mubr.msk.bf16.vlgmr.msra.gmra.mrb[44].mxu1 %vm605_vm2, %v15334_v13  ;;  %v17559_v13 = vld [vmem:[#allocation6 + $0x98] sm:$0xff]  }
 0x329   : > { %8967 = vmatpush1.bf16.msra.mxu0 %v17190_v21  ;;  %9010 = vmatpush1.bf16.msra.mxu1 %v17193_v22 }
 0x32a   : > { %8998 = vmatprep.mubr.bf16.mxu0 %v15706_v0  ;;  %9041 = vmatprep.mubr.bf16.mxu1 %v15706_v0 }
 0x32b   : > { %13681 = vmatprep.subr.msk.bf16.mxu0 %vm609_vm0, %v17195_v24  ;;  %13683 = vmatprep.subr.msk.bf16.mxu1 %vm609_vm0, %v17197_v60 }
 0x330   : > { %13678 = vmatmul.mubr.msk.bf16.vlgmr.msra.gmra.mrb[0].mxu0 %vm605_vm2, %v16089_v3  ;;  %13680 = vmatmul.mubr.msk.bf16.vlgmr.msra.gmra.mrb[0].mxu1 %vm605_vm2, %v16089_v3 }
 0x331   : > { %9053 = vmatpush1.bf16.msra.mxu0 %v17210_v15  ;;  %9096 = vmatpush1.bf16.msra.mxu1 %v17213_v36 }
 0x332   : > { %9084 = vmatprep.mubr.bf16.mxu0 %v15706_v0  ;;  %9127 = vmatprep.mubr.bf16.mxu1 %v15706_v0 }
 0x333   : > { %13685 = vmatprep.subr.msk.bf16.mxu0 %vm609_vm0, %v17175_v17  ;;  %13687 = vmatprep.subr.msk.bf16.mxu1 %vm609_vm0, %v17177_v58 }
 0x338   : > { %13682 = vmatmul.mubr.msk.bf16.vlgmr.msra.gmra.mrb[4].mxu0 %vm605_vm2, %v16089_v3  ;;  %13684 = vmatmul.mubr.msk.bf16.vlgmr.msra.gmra.mrb[4].mxu1 %vm605_vm2, %v16089_v3  ;;  %v13717_v3 = vld [vmem:[%s16447_s19 + $0xc] sm:$0xf] }
 0x339   : > { %9155 = vmatpush1.bf16.msra.mxu0 %v17190_v21  ;;  %9198 = vmatpush1.bf16.msra.mxu1 %v17193_v22 }
 0x33a   : > { %9186 = vmatprep.mubr.bf16.mxu0 %v15706_v0  ;;  %9229 = vmatprep.mubr.bf16.mxu1 %v15706_v0 }
 0x33b   : > { %13689 = vmatprep.subr.msk.bf16.mxu0 %vm609_vm0, %v17195_v24  ;;  %13691 = vmatprep.subr.msk.bf16.mxu1 %vm609_vm0, %v17197_v60 }
 0x340   : > { %13686 = vmatmul.mubr.msk.bf16.vlgmr.msra.gmra.mrb[8].mxu0 %vm605_vm2, %v16152_v23  ;;  %13688 = vmatmul.mubr.msk.bf16.vlgmr.msra.gmra.mrb[8].mxu1 %vm605_vm2, %v16152_v23 }
 0x341   : > { %9241 = vmatpush1.bf16.msra.mxu0 %v17210_v15  ;;  %9284 = vmatpush1.bf16.msra.mxu1 %v17213_v36 }
 0x342   : > { %9272 = vmatprep.mubr.bf16.mxu0 %v15706_v0  ;;  %9315 = vmatprep.mubr.bf16.mxu1 %v15706_v0 }
 0x343   : > { %13693 = vmatprep.subr.msk.bf16.mxu0 %vm609_vm0, %v17175_v17  ;;  %13695 = vmatprep.subr.msk.bf16.mxu1 %vm609_vm0, %v17177_v58 }
 0x348   : > { %13690 = vmatmul.mubr.msk.bf16.vlgmr.msra.gmra.mrb[12].mxu0 %vm605_vm2, %v16152_v23  ;;  %13692 = vmatmul.mubr.msk.bf16.vlgmr.msra.gmra.mrb[12].mxu1 %vm605_vm2, %v16152_v23  ;;  %v17309_v23 = vld [vmem:[%s16447_s19 + $0x10] sm:$0xf] }
 0x349   : > { %9343 = vmatpush1.bf16.msra.mxu0 %v17190_v21  ;;  %9386 = vmatpush1.bf16.msra.mxu1 %v17193_v22 }
 0x34a   : > { %9374 = vmatprep.mubr.bf16.mxu0 %v15706_v0  ;;  %9417 = vmatprep.mubr.bf16.mxu1 %v15706_v0 }
 0x34b   : > { %13697 = vmatprep.subr.msk.bf16.mxu0 %vm609_vm0, %v17195_v24  ;;  %13699 = vmatprep.subr.msk.bf16.mxu1 %vm609_vm0, %v17197_v60 }
 0x350   : > { %13694 = vmatmul.mubr.msk.bf16.vlgmr.msra.gmra.mrb[16].mxu0 %vm605_vm2, %v16215_v41  ;;  %13696 = vmatmul.mubr.msk.bf16.vlgmr.msra.gmra.mrb[16].mxu1 %vm605_vm2, %v16215_v41 }
 0x351   : > { %9429 = vmatpush1.bf16.msra.mxu0 %v17210_v15  ;;  %9472 = vmatpush1.bf16.msra.mxu1 %v17213_v36 }
 0x352   : > { %9460 = vmatprep.mubr.bf16.mxu0 %v15706_v0  ;;  %9503 = vmatprep.mubr.bf16.mxu1 %v15706_v0 }
 0x353   : > { %13701 = vmatprep.subr.msk.bf16.mxu0 %vm609_vm0, %v17175_v17  ;;  %13703 = vmatprep.subr.msk.bf16.mxu1 %vm609_vm0, %v17177_v58 }
 0x358   : > { %13698 = vmatmul.mubr.msk.bf16.vlgmr.msra.gmra.mrb[20].mxu0 %vm605_vm2, %v16215_v41  ;;  %13700 = vmatmul.mubr.msk.bf16.vlgmr.msra.gmra.mrb[20].mxu1 %vm605_vm2, %v16215_v41  ;;  %v13720_v41 = vcombine.low %v13717_v3, %v17309_v23  ;;  %v17611_v3 = vld [vmem:[#allocation6 + $0x140] sm:$0xff]  }
 0x359   : > { %9531 = vmatpush1.bf16.msra.mxu0 %v17190_v21  ;;  %9574 = vmatpush1.bf16.msra.mxu1 %v17193_v22  ;;  %18609 = vst [vmem:[#allocation16_spill] sm:$0xff] %v17611_v3 }
 0x35a   : > { %9562 = vmatprep.mubr.bf16.mxu0 %v15706_v0  ;;  %9605 = vmatprep.mubr.bf16.mxu1 %v15706_v0  ;;  %v9920_v37 = vshll.u32 %v13720_v41, 16  ;;  %v9918_v38 = vshrl.u32 %v13720_v41, 16  ;;  %v18495_v41 = vlaneseq }
 0x35b   : > { %13705 = vmatprep.subr.msk.bf16.mxu0 %vm609_vm0, %v17195_v24  ;;  %13707 = vmatprep.subr.msk.bf16.mxu1 %vm609_vm0, %v17197_v60 }
 0x35c   : > { %v9922_v30 = vrot.slane %v9920_v37, 1 }
 0x35e   : > { %v9923_v45 = vor.u32 %v9922_v30, %v9918_v38  ;;  %v405_v30 = vld [vmem:[#allocation4] sm:$0xff] }
 0x360   : > { %13702 = vmatmul.mubr.msk.bf16.vlgmr.msra.gmra.mrb[24].mxu0 %vm605_vm2, %v16278_v4  ;;  %13704 = vmatmul.mubr.msk.bf16.vlgmr.msra.gmra.mrb[24].mxu1 %vm605_vm2, %v16278_v4 }
 0x361   : > { %9617 = vmatpush1.bf16.msra.mxu0 %v17210_v15  ;;  %9660 = vmatpush1.bf16.msra.mxu1 %v17213_v36 }
 0x362   : > { %9648 = vmatprep.mubr.bf16.mxu0 %v15706_v0  ;;  %9691 = vmatprep.mubr.bf16.mxu1 %v15706_v0 }
 0x363   : > { %13709 = vmatprep.subr.msk.bf16.mxu0 %vm609_vm0, %v17175_v17  ;;  %13711 = vmatprep.subr.msk.bf16.mxu1 %vm609_vm0, %v17177_v58 }
 0x368   : > { %13706 = vmatmul.mubr.msk.bf16.vlgmr.msra.gmra.mrb[28].mxu0 %vm605_vm2, %v16278_v4  ;;  %13708 = vmatmul.mubr.msk.bf16.vlgmr.msra.gmra.mrb[28].mxu1 %vm605_vm2, %v16278_v4  ;;  %v17323_v4 = vld [vmem:[%s16447_s19 + $0x14] ss:$0 sps:$4 sm:$0x11]  }
 0x369   : > { %9719 = vmatpush1.bf16.msra.mxu0 %v17190_v21  ;;  %9762 = vmatpush1.bf16.msra.mxu1 %v17193_v22  ;;  %v9925_v39 = vshll.u32 %v17323_v4, 16 }
 0x36a   : > { %9750 = vmatprep.mubr.bf16.mxu0 %v15706_v0  ;;  %9793 = vmatprep.mubr.bf16.mxu1 %v15706_v0 }
 0x36b   : > { %13713 = vmatprep.subr.msk.bf16.mxu0 %vm609_vm0, %v17195_v24  ;;  %13715 = vmatprep.subr.msk.bf16.mxu1 %vm609_vm0, %v17197_v60  ;;  %v9927_v51 = vrot.slane %v9925_v39, 1 }
 0x370   : > { %13710 = vmatmul.mubr.msk.bf16.vlgmr.msra.gmra.mrb[32].mxu0 %vm605_vm2, %v16850_v35  ;;  %13712 = vmatmul.mubr.msk.bf16.vlgmr.msra.gmra.mrb[32].mxu1 %vm605_vm2, %v16850_v35 }
 0x371   : > { %9805 = vmatpush1.bf16.msra.mxu0 %v17210_v15  ;;  %9848 = vmatpush1.bf16.msra.mxu1 %v17213_v36 }
 0x372   : > { %9836 = vmatprep.mubr.bf16.mxu0 %v15706_v0  ;;  %9879 = vmatprep.mubr.bf16.mxu1 %v15706_v0 }
 0x373   : > { %13722 = vmatprep.subr.msk.bf16.mxu0 %vm609_vm0, %v17175_v17  ;;  %13724 = vmatprep.subr.msk.bf16.mxu1 %vm609_vm0, %v17177_v58  ;;  %v17569_v17 = vld [vmem:[#allocation6 + $0x20] sm:$0xff]  }
 0x374   : > { %v17571_v58 = vld [vmem:[#allocation6 + $0xa0] sm:$0xff]  }
 0x378   : > { %13714 = vmatmul.mubr.msk.bf16.vlgmr.msra.gmra.mrb[36].mxu0 %vm605_vm2, %v16850_v35  ;;  %13716 = vmatmul.mubr.msk.bf16.vlgmr.msra.gmra.mrb[36].mxu1 %vm605_vm2, %v16850_v35  ;;  %v9928_v35 = vsel %vm572_vm1, %v9923_v45, %v9927_v51 }
 0x379   : > { %9933 = vmatpush1.bf16.msra.mxu0 %v17190_v21  ;;  %9976 = vmatpush1.bf16.msra.mxu1 %v17193_v22  ;;  %v17587_v21 = vld [vmem:[#allocation6 + $0x70] sm:$0xff]  }
 0x37a   : > { %9964 = vmatprep.mubr.bf16.mxu0 %v15706_v0  ;;  %10007 = vmatprep.mubr.bf16.mxu1 %v15706_v0  ;;  %v17589_v22 = vld [vmem:[#allocation6 + $0xf0] sm:$0xff]  }
 0x37b   : > { %13726 = vmatprep.subr.msk.bf16.mxu0 %vm609_vm0, %v17195_v24  ;;  %13728 = vmatprep.subr.msk.bf16.mxu1 %vm609_vm0, %v17197_v60  ;;  %v17593_v24 = vld [vmem:[#allocation6 + $0x30] sm:$0xff]  }
 0x37c   : > { %v17595_v60 = vld [vmem:[#allocation6 + $0xb0] sm:$0xff]  }
 0x380   : > { %13723 = vmatmul.mubr.msk.bf16.vlgmr.msra.gmra.mrb[40].mxu0 %vm605_vm2, %v9928_v35  ;;  %13725 = vmatmul.mubr.msk.bf16.vlgmr.msra.gmra.mrb[40].mxu1 %vm605_vm2, %v9928_v35 }
 0x381   : > { %10019 = vmatpush1.bf16.msra.mxu0 %v17210_v15  ;;  %10062 = vmatpush1.bf16.msra.mxu1 %v17213_v36  ;;  %v17605_v15 = vld [vmem:[#allocation6 + $0x38] sm:$0xff]  }
 0x382   : > { %10050 = vmatprep.mubr.bf16.mxu0 %v15706_v0  ;;  %10093 = vmatprep.mubr.bf16.mxu1 %v15706_v0  ;;  %18607 = vst [vmem:[#allocation14_spill] sm:$0xff] %v17605_v15  ;;  %v17607_v36 = vld [vmem:[#allocation6 + $0xb8] sm:$0xff]  }
 0x383   : > { %13738 = vmatprep.subr.msk.bf16.mxu0 %vm609_vm0, %v17345_v57  ;;  %13740 = vmatprep.subr.msk.bf16.mxu1 %vm609_vm0, %v17347_v59  ;;  %18608 = vst [vmem:[#allocation15_spill] sm:$0xff] %v17607_v36 }
 0x388   : > { %13727 = vmatmul.mubr.msk.bf16.vlgmr.msra.gmra.mrb[44].mxu0 %vm605_vm2, %v9928_v35  ;;  %13729 = vmatmul.mubr.msk.bf16.vlgmr.msra.gmra.mrb[44].mxu1 %vm605_vm2, %v9928_v35 }
 0x389   : > { %10170 = vmatpush1.bf16.msra.mxu0 %v17360_v9  ;;  %10213 = vmatpush1.bf16.msra.mxu1 %v17363_v10 }
 0x38a   : > { %10201 = vmatprep.mubr.bf16.mxu0 %v15706_v0  ;;  %10244 = vmatprep.mubr.bf16.mxu1 %v15706_v0 }
 0x38b   : > { %13742 = vmatprep.subr.msk.bf16.mxu0 %vm609_vm0, %v17365_v11  ;;  %13744 = vmatprep.subr.msk.bf16.mxu1 %vm609_vm0, %v17367_v12 }
 0x390   : > { %13739 = vmatmul.mubr.msk.bf16.vlgmr.msra.gmra.mrb[0].mxu0 %vm605_vm2, %v16409_v56  ;;  %13741 = vmatmul.mubr.msk.bf16.vlgmr.msra.gmra.mrb[0].mxu1 %vm605_vm2, %v16409_v56 }
 0x391   : > { %10256 = vmatpush1.bf16.msra.mxu0 %v17380_v32  ;;  %10299 = vmatpush1.bf16.msra.mxu1 %v17383_v40 }
 0x392   : > { %10287 = vmatprep.mubr.bf16.mxu0 %v15706_v0  ;;  %10330 = vmatprep.mubr.bf16.mxu1 %v15706_v0 }
 0x393   : > { %13746 = vmatprep.subr.msk.bf16.mxu0 %vm609_vm0, %v17345_v57  ;;  %13748 = vmatprep.subr.msk.bf16.mxu1 %vm609_vm0, %v17347_v59 }
 0x398   : > { %13743 = vmatmul.mubr.msk.bf16.vlgmr.msra.gmra.mrb[4].mxu0 %vm605_vm2, %v16409_v56  ;;  %13745 = vmatmul.mubr.msk.bf16.vlgmr.msra.gmra.mrb[4].mxu1 %vm605_vm2, %v16409_v56  ;;  %v13778_v56 = vld [vmem:[%s16447_s19 + $0xc] sm:$0xe] }
 0x399   : > { %10358 = vmatpush1.bf16.msra.mxu0 %v17360_v9  ;;  %10401 = vmatpush1.bf16.msra.mxu1 %v17363_v10 }
 0x39a   : > { %10389 = vmatprep.mubr.bf16.mxu0 %v15706_v0  ;;  %10432 = vmatprep.mubr.bf16.mxu1 %v15706_v0 }
 0x39b   : > { %13750 = vmatprep.subr.msk.bf16.mxu0 %vm609_vm0, %v17365_v11  ;;  %13752 = vmatprep.subr.msk.bf16.mxu1 %vm609_vm0, %v17367_v12 }
 0x3a0   : > { %13747 = vmatmul.mubr.msk.bf16.vlgmr.msra.gmra.mrb[8].mxu0 %vm605_vm2, %v16442_v7  ;;  %13749 = vmatmul.mubr.msk.bf16.vlgmr.msra.gmra.mrb[8].mxu1 %vm605_vm2, %v16442_v7 }
 0x3a1   : > { %10444 = vmatpush1.bf16.msra.mxu0 %v17380_v32  ;;  %10487 = vmatpush1.bf16.msra.mxu1 %v17383_v40 }
 0x3a2   : > { %10475 = vmatprep.mubr.bf16.mxu0 %v15706_v0  ;;  %10518 = vmatprep.mubr.bf16.mxu1 %v15706_v0 }
 0x3a3   : > { %13754 = vmatprep.subr.msk.bf16.mxu0 %vm609_vm0, %v17345_v57  ;;  %13756 = vmatprep.subr.msk.bf16.mxu1 %vm609_vm0, %v17347_v59 }
 0x3a8   : > { %13751 = vmatmul.mubr.msk.bf16.vlgmr.msra.gmra.mrb[12].mxu0 %vm605_vm2, %v16442_v7  ;;  %13753 = vmatmul.mubr.msk.bf16.vlgmr.msra.gmra.mrb[12].mxu1 %vm605_vm2, %v16442_v7  ;;  %v13779_v7 = vcombine.low %v13778_v56, %v17309_v23  ;;  %v17613_v23 = vld [vmem:[#allocation6 + $0x1c0] sm:$0xff]  }
 0x3a9   : > { %10546 = vmatpush1.bf16.msra.mxu0 %v17360_v9  ;;  %10589 = vmatpush1.bf16.msra.mxu1 %v17363_v10  ;;  %18610 = vst [vmem:[#allocation17_spill] sm:$0xff] %v17613_v23 }
 0x3aa   : > { %10577 = vmatprep.mubr.bf16.mxu0 %v15706_v0  ;;  %10620 = vmatprep.mubr.bf16.mxu1 %v15706_v0 }
 0x3ab   : > { %13758 = vmatprep.subr.msk.bf16.mxu0 %vm609_vm0, %v17365_v11  ;;  %13760 = vmatprep.subr.msk.bf16.mxu1 %vm609_vm0, %v17367_v12 }
 0x3b0   : > { %13755 = vmatmul.mubr.msk.bf16.vlgmr.msra.gmra.mrb[16].mxu0 %vm605_vm2, %v16477_v25  ;;  %13757 = vmatmul.mubr.msk.bf16.vlgmr.msra.gmra.mrb[16].mxu1 %vm605_vm2, %v16477_v25 }
 0x3b1   : > { %10632 = vmatpush1.bf16.msra.mxu0 %v17380_v32  ;;  %10675 = vmatpush1.bf16.msra.mxu1 %v17383_v40 }
 0x3b2   : > { %10663 = vmatprep.mubr.bf16.mxu0 %v15706_v0  ;;  %10706 = vmatprep.mubr.bf16.mxu1 %v15706_v0 }
 0x3b3   : > { %13762 = vmatprep.subr.msk.bf16.mxu0 %vm609_vm0, %v17345_v57  ;;  %13764 = vmatprep.subr.msk.bf16.mxu1 %vm609_vm0, %v17347_v59 }
 0x3b8   : > { %13759 = vmatmul.mubr.msk.bf16.vlgmr.msra.gmra.mrb[20].mxu0 %vm605_vm2, %v16477_v25  ;;  %13761 = vmatmul.mubr.msk.bf16.vlgmr.msra.gmra.mrb[20].mxu1 %vm605_vm2, %v16477_v25  ;;  %v11113_v25 = vrot.slane %v13779_v7, 1 }
 0x3b9   : > { %10734 = vmatpush1.bf16.msra.mxu0 %v17360_v9  ;;  %10777 = vmatpush1.bf16.msra.mxu1 %v17363_v10 }
 0x3ba   : > { %10765 = vmatprep.mubr.bf16.mxu0 %v15706_v0  ;;  %10808 = vmatprep.mubr.bf16.mxu1 %v15706_v0 }
 0x3bb   : > { %13766 = vmatprep.subr.msk.bf16.mxu0 %vm609_vm0, %v17365_v11  ;;  %13768 = vmatprep.subr.msk.bf16.mxu1 %vm609_vm0, %v17367_v12 }
 0x3c0   : > { %13763 = vmatmul.mubr.msk.bf16.vlgmr.msra.gmra.mrb[24].mxu0 %vm605_vm2, %v16507_v55  ;;  %13765 = vmatmul.mubr.msk.bf16.vlgmr.msra.gmra.mrb[24].mxu1 %vm605_vm2, %v16507_v55 }
 0x3c1   : > { %10820 = vmatpush1.bf16.msra.mxu0 %v17380_v32  ;;  %10863 = vmatpush1.bf16.msra.mxu1 %v17383_v40 }
 0x3c2   : > { %10851 = vmatprep.mubr.bf16.mxu0 %v15706_v0  ;;  %10894 = vmatprep.mubr.bf16.mxu1 %v15706_v0 }
 0x3c3   : > { %13770 = vmatprep.subr.msk.bf16.mxu0 %vm609_vm0, %v17345_v57  ;;  %13772 = vmatprep.subr.msk.bf16.mxu1 %vm609_vm0, %v17347_v59 }
 0x3c8   : > { %13767 = vmatmul.mubr.msk.bf16.vlgmr.msra.gmra.mrb[28].mxu0 %vm605_vm2, %v16507_v55  ;;  %13769 = vmatmul.mubr.msk.bf16.vlgmr.msra.gmra.mrb[28].mxu1 %vm605_vm2, %v16507_v55  ;;  %v11114_v55 = vrot.slane %v17323_v4, 1  ;;  %v11309_v4 = vshrl.u32 %v18495_v41, 7 }
 0x3c9   : > { %10922 = vmatpush1.bf16.msra.mxu0 %v17360_v9  ;;  %10965 = vmatpush1.bf16.msra.mxu1 %v17363_v10 }
 0x3ca   : > { %10953 = vmatprep.mubr.bf16.mxu0 %v15706_v0  ;;  %10996 = vmatprep.mubr.bf16.mxu1 %v15706_v0  ;;  %v11115_v8 = vsel %vm2923_vm3, %v11113_v25, %v11114_v55  ;;  %v11310_v37 = vsub.s32 0, %v11309_v4  ;;  %v11318_v38 = vsub.s32 2, %v11309_v4  ;;  %v11314_v39 = vsub.s32 1, %v11309_v4 }
 0x3cb   : > { %13774 = vmatprep.subr.msk.bf16.mxu0 %vm609_vm0, %v17365_v11  ;;  %13776 = vmatprep.subr.msk.bf16.mxu1 %vm609_vm0, %v17367_v12  ;;  %v11322_v45 = vsub.s32 3, %v11309_v4  ;;  %v11330_v34 = vsub.s32 5, %v11309_v4  ;;  %v11338_v62 = vsub.s32 7, %v11309_v4 }
 0x3cc   : > { %v17620_v51 = vrot.slane %v405_v30, %v11310_v37  ;;  %v17622_v49 = vrot.slane %v405_v30, %v11318_v38  ;;  %v17624_v53 = vrot.slane %v405_v30, %v11314_v39 }
 0x3cd   : > { %v17626_v35 = vrot.slane %v405_v30, %v11322_v45  ;;  %v17640_v39 = vrot.slane %v405_v30, %v11330_v34  ;;  %v17642_v45 = vrot.slane %v405_v30, %v11338_v62  ;;  %v17646_v34 = vld [vmem:[#allocation6 + $0x180] sm:$0xff]  }
 0x3ce   : > { %18612 = vst [vmem:[#allocation19_spill] sm:$0xff] %v17646_v34 }
 0x3d0   : > { %13771 = vmatmul.mubr.msk.bf16.vlgmr.msra.gmra.mrb[32].mxu0 %vm605_vm2, %v17020_v28  ;;  %13773 = vmatmul.mubr.msk.bf16.vlgmr.msra.gmra.mrb[32].mxu1 %vm605_vm2, %v17020_v28 }
 0x3d1   : > { %11008 = vmatpush1.bf16.msra.mxu0 %v17380_v32  ;;  %11051 = vmatpush1.bf16.msra.mxu1 %v17383_v40 }
 0x3d2   : > { %11039 = vmatprep.mubr.bf16.mxu0 %v15706_v0  ;;  %11082 = vmatprep.mubr.bf16.mxu1 %v15706_v0 }
 0x3d3   : > { %13780 = vmatprep.subr.msk.bf16.mxu0 %vm609_vm0, %v17345_v57  ;;  %13782 = vmatprep.subr.msk.bf16.mxu1 %vm609_vm0, %v17347_v59  ;;  %v11326_v57 = vsub.s32 4, %v11309_v4  ;;  %v11334_v59 = vsub.s32 6, %v11309_v4 }
 0x3d5   : > { %v17636_v4 = vrot.slane %v405_v30, %v11334_v59 }
 0x3d8   : > { %13775 = vmatmul.mubr.msk.bf16.vlgmr.msra.gmra.mrb[36].mxu0 %vm605_vm2, %v17020_v28  ;;  %13777 = vmatmul.mubr.msk.bf16.vlgmr.msra.gmra.mrb[36].mxu1 %vm605_vm2, %v17020_v28  ;;  %v17509_v28 = vld [vmem:[#allocation6 + $0x40] sm:$0xff]  }
 0x3d9   : > { %11120 = vmatpush1.bf16.msra.mxu0 %v17360_v9  ;;  %11163 = vmatpush1.bf16.msra.mxu1 %v17363_v10 }
 0x3da   : > { %11151 = vmatprep.mubr.bf16.mxu0 %v15706_v0  ;;  %11194 = vmatprep.mubr.bf16.mxu1 %v15706_v0 }
 0x3db   : > { %13784 = vmatprep.subr.msk.bf16.mxu0 %vm609_vm0, %v17365_v11  ;;  %13786 = vmatprep.subr.msk.bf16.mxu1 %vm609_vm0, %v17367_v12 }
 0x3e0   : > { %13781 = vmatmul.mubr.msk.bf16.vlgmr.msra.gmra.mrb[40].mxu0 %vm605_vm2, %v11115_v8  ;;  %13783 = vmatmul.mubr.msk.bf16.vlgmr.msra.gmra.mrb[40].mxu1 %vm605_vm2, %v11115_v8 }
 0x3e1   : > { %11206 = vmatpush1.bf16.msra.mxu0 %v17380_v32  ;;  %11249 = vmatpush1.bf16.msra.mxu1 %v17383_v40 }
 0x3e2   : > { %11237 = vmatprep.mubr.bf16.mxu0 %v15706_v0  ;;  %11280 = vmatprep.mubr.bf16.mxu1 %v15706_v0  ;;  %v17533_v0 = vld [vmem:[#allocation6 + $0x8] sm:$0xff]  }
 0x3e3   : > { %13866 = vmatprep.subr.bf16.mxu0 %v17509_v28  ;;  %13888 = vmatprep.subr.bf16.mxu1 %v17511_v26 }
 0x3e8   : > { %13785 = vmatmul.mubr.msk.bf16.vlgmr.msra.gmra.mrb[44].mxu0 %vm605_vm2, %v11115_v8  ;;  %13787 = vmatmul.mubr.msk.bf16.vlgmr.msra.gmra.mrb[44].mxu1 %vm605_vm2, %v11115_v8  ;;  %v17634_v8 = vrot.slane %v405_v30, %v11326_v57 }
 0x3e9   : > { %13867 = vmatpush3.bf16.msra.mxu0 %v17521_v50  ;;  %13889 = vmatpush3.bf16.msra.mxu1 %v17523_v6 }
 0x3ea   : > { %13868 = vmatprep.subr.bf16.mxu0 %v17525_v42  ;;  %13890 = vmatprep.subr.bf16.mxu1 %v17527_v43 }
 0x3ed   : > { %13869 = vmatpush3.bf16.msra.mxu0 %v17533_v0  ;;  %13891 = vmatpush3.bf16.msra.mxu1 %v17535_v46 }
 0x3ee   : > { %13870 = vmatprep.subr.bf16.mxu0 %v17539_v47  ;;  %13892 = vmatprep.subr.bf16.mxu1 %v17541_v48 }
 0x3f1   : > { %13871 = vmatpush3.bf16.msra.mxu0 %v17545_v14  ;;  %13893 = vmatpush3.bf16.msra.mxu1 %v17547_v63 }
 0x3f2   : > { %13872 = vmatprep.subr.bf16.mxu0 %v17551_v1  ;;  %13894 = vmatprep.subr.bf16.mxu1 %v17553_v2 }
 0x3f5   : > { %13873 = vmatpush3.bf16.msra.mxu0 %v17557_v5  ;;  %13895 = vmatpush3.bf16.msra.mxu1 %v17559_v13 }
 0x3f6   : > { %13874 = vmatprep.subr.bf16.mxu0 %v17563_v16  ;;  %13896 = vmatprep.subr.bf16.mxu1 %v17565_v54 }
 0x3f9   : > { %13875 = vmatpush3.bf16.msra.mxu0 %v17569_v17  ;;  %13897 = vmatpush3.bf16.msra.mxu1 %v17571_v58 }
 0x3fa   : > { %13876 = vmatprep.subr.bf16.mxu0 %v17575_v18  ;;  %13898 = vmatprep.subr.bf16.mxu1 %v17577_v19 }
 0x3fd   : > { %13877 = vmatpush3.bf16.msra.mxu0 %v17581_v20  ;;  %13899 = vmatpush3.bf16.msra.mxu1 %v17583_v44 }
 0x3fe   : > { %13878 = vmatprep.subr.bf16.mxu0 %v17587_v21  ;;  %13900 = vmatprep.subr.bf16.mxu1 %v17589_v22 }
 0x401   : > { %13879 = vmatpush3.bf16.msra.mxu0 %v17593_v24  ;;  %13901 = vmatpush3.bf16.msra.mxu1 %v17595_v60 }
 0x402   : > { %13880 = vmatprep.subr.bf16.mxu0 %v17599_v27  ;;  %13902 = vmatprep.subr.bf16.mxu1 %v17601_v33  ;;  %v17644_v33 = vld [vmem:[#allocation6 + $0x100] sm:$0xff]  }
 0x403   : > { %18611 = vst [vmem:[#allocation18_spill] sm:$0xff] %v17644_v33 }
 0x405   : > { %13881 = vmatpush3.bf16.msra.mxu0 %v17605_v15  ;;  %13903 = vmatpush3.bf16.msra.mxu1 %v17607_v36 }
 0x406   : > { %13910 = vmatprep.subr.bf16.mxu0 %v17611_v3  ;;  %13932 = vmatprep.subr.bf16.mxu1 %v17613_v23 }
 0x463   : > { %v10203_v52 = vpop.f32.mrb[0].mxu0  ;;  %v10246_v61 = vpop.f32.mrb[0].mxu1 }
 0x464   : > { %v11348_v9 = vadd.f32 %v17620_v51, %v10203_v52  ;;  %v11350_v10 = vadd.f32 %v17622_v49, %v10246_v61  ;;  %v10205_v11 = vpop.f32.mrb[1].mxu0  ;;  %v10248_v12 = vpop.f32.mrb[1].mxu1 }
 0x465   : > { %v11349_v29 = vadd.f32 %v17624_v53, %v10205_v11  ;;  %v11351_v31 = vadd.f32 %v17626_v35, %v10248_v12  ;;  %v10207_v32 = vpop.f32.mrb[2].mxu0  ;;  %v10250_v40 = vpop.f32.mrb[2].mxu1 }
 0x466   : > { %v11356_v56 = vadd.f32 %v17620_v51, %v10207_v32  ;;  %v11358_v7 = vadd.f32 %v17622_v49, %v10250_v40  ;;  %v10209_v25 = vpop.f32.mrb[3].mxu0  ;;  %v10252_v55 = vpop.f32.mrb[3].mxu1  ;;  %v11364_v52 = vmax.f32 %v11348_v9, 0.0  ;;  %v11366_v61 = vmax.f32 %v11350_v10, 0.0 }
 0x467   : > { %v11357_v37 = vadd.f32 %v17624_v53, %v10209_v25  ;;  %v11359_v38 = vadd.f32 %v17626_v35, %v10252_v55  ;;  %v11365_v32 = vmax.f32 %v11349_v29, 0.0  ;;  %v11367_v40 = vmax.f32 %v11351_v31, 0.0  ;;  %v17650_v29 = vld [vmem:[#allocation6 + $0x148] sm:$0xff]  }
 0x468   : > { %v11372_v11 = vmax.f32 %v11356_v56, 0.0  ;;  %v11374_v12 = vmax.f32 %v11358_v7, 0.0  ;;  %18613 = vst [vmem:[#allocation20_spill] sm:$0xff] %v17650_v29  ;;  %v17652_v31 = vld [vmem:[#allocation6 + $0x1c8] sm:$0xff]  }
 0x469   : > { %v11373_v41 = vmax.f32 %v11357_v37, 0.0  ;;  %v11375_v23 = vmax.f32 %v11359_v38, 0.0  ;;  %18614 = vst [vmem:[#allocation21_spill] sm:$0xff] %v17652_v31 }
 0x46a   : > { %v11380_v57 = vpack.c.bf16 %v11372_v11, %v11364_v52  ;;  %v11382_v3 = vpack.c.bf16 %v11374_v12, %v11366_v61  ;;  %v17662_v11 = vld [vmem:[#allocation6 + $0x108] sm:$0xff]  }
 0x46b   : > { %v11381_v59 = vpack.c.bf16 %v11373_v41, %v11365_v32  ;;  %v11383_v36 = vpack.c.bf16 %v11375_v23, %v11367_v40  ;;  %v10289_v15 = vpop.f32.mrb[4].mxu0  ;;  %v10332_v25 = vpop.f32.mrb[4].mxu1  ;;  %18615 = vst [vmem:[#allocation22_spill] sm:$0xff] %v17662_v11  ;;  %v17664_v12 = vld [vmem:[#allocation6 + $0x188] sm:$0xff]  }
 0x46c   : > { %v11352_v30 = vadd.f32 %v17634_v8, %v10289_v15  ;;  %v11354_v62 = vadd.f32 %v17636_v4, %v10332_v25  ;;  %v10291_v9 = vpop.f32.mrb[5].mxu0  ;;  %v10334_v10 = vpop.f32.mrb[5].mxu1  ;;  %18616 = vst [vmem:[#allocation23_spill] sm:$0xff] %v17664_v12 }
 0x46d   : > { %v11353_v56 = vadd.f32 %v17640_v39, %v10291_v9  ;;  %v11355_v23 = vadd.f32 %v17642_v45, %v10334_v10  ;;  %v10293_v41 = vpop.f32.mrb[6].mxu0  ;;  %v10336_v7 = vpop.f32.mrb[6].mxu1  ;;  %11810 = vmatprep.mubr.bf16.mxu0 %v11381_v59  ;;  %11851 = vmatprep.mubr.bf16.mxu1 %v11383_v36 }
 0x46e   : > { %v11360_v55 = vadd.f32 %v17634_v8, %v10293_v41  ;;  %v11362_v15 = vadd.f32 %v17636_v4, %v10336_v7  ;;  %v10295_v37 = vpop.f32.mrb[7].mxu0  ;;  %v10338_v38 = vpop.f32.mrb[7].mxu1  ;;  %11811 = vmatmul.mubr.bf16.vlgmr.msra.gmra.mrb[48].mxu0 %v11380_v57  ;;  %11852 = vmatmul.mubr.bf16.vlgmr.msra.gmra.mrb[48].mxu1 %v11382_v3  ;;  %v11368_v36 = vmax.f32 %v11352_v30, 0.0  ;;  %v11370_v32 = vmax.f32 %v11354_v62, 0.0  ;;  %v17668_v3 = vld [vmem:[#allocation6 + $0x150] sm:$0xff]  }
 0x46f   : > { %v11361_v52 = vadd.f32 %v17640_v39, %v10295_v37  ;;  %v11363_v61 = vadd.f32 %v17642_v45, %v10338_v38  ;;  %13911 = vmatpush3.bf16.msra.mxu0 %v17644_v33  ;;  %13933 = vmatpush3.bf16.msra.mxu1 %v17646_v34  ;;  %18617 = vst [vmem:[#allocation24_spill] sm:$0xff] %v17668_v3  ;;  %v17670_v57 = vld [vmem:[#allocation6 + $0x1d0] sm:$0xff]   ;;  %v11369_v25 = vmax.f32 %v11353_v56, 0.0  ;;  %v11371_v9 = vmax.f32 %v11355_v23, 0.0 }
 0x470   : > { %v11376_v40 = vmax.f32 %v11360_v55, 0.0  ;;  %v11378_v59 = vmax.f32 %v11362_v15, 0.0  ;;  %13912 = vmatprep.subr.bf16.mxu0 %v17650_v29  ;;  %13934 = vmatprep.subr.bf16.mxu1 %v17652_v31  ;;  %18618 = vst [vmem:[#allocation25_spill] sm:$0xff] %v17670_v57  ;;  %v17678_v38 = vld [vmem:[#allocation6 + $0x110] sm:$0xff]  }
 0x471   : > { %v11377_v10 = vmax.f32 %v11361_v52, 0.0  ;;  %v11379_v41 = vmax.f32 %v11363_v61, 0.0  ;;  %18619 = vst [vmem:[#allocation26_spill] sm:$0xff] %v17678_v38  ;;  %v17680_v31 = vld [vmem:[#allocation6 + $0x190] sm:$0xff]  }
 0x472   : > { %v17672_v7 = vpack.c.bf16 %v11376_v40, %v11368_v36  ;;  %v17674_v37 = vpack.c.bf16 %v11378_v59, %v11370_v32  ;;  %18620 = vst [vmem:[#allocation27_spill] sm:$0xff] %v17680_v31  ;;  %v17686_v36 = vld [vmem:[#allocation6 + $0x158] sm:$0xff]  }
 0x473   : > { %v11385_v30 = vpack.c.bf16 %v11377_v10, %v11369_v25  ;;  %v11387_v62 = vpack.c.bf16 %v11379_v41, %v11371_v9  ;;  %13913 = vmatpush3.bf16.msra.mxu0 %v17662_v11  ;;  %13935 = vmatpush3.bf16.msra.mxu1 %v17664_v12  ;;  %v10391_v55 = vpop.f32.mrb[8].mxu0  ;;  %v10434_v15 = vpop.f32.mrb[8].mxu1  ;;  %18621 = vst [vmem:[#allocation28_spill] sm:$0xff] %v17686_v36  ;;  %v17688_v32 = vld [vmem:[#allocation6 + $0x1d8] sm:$0xff]  }
 0x474   : > { %v11957_v56 = vadd.f32 %v17620_v51, %v10391_v55  ;;  %v11959_v23 = vadd.f32 %v17622_v49, %v10434_v15  ;;  %v10393_v52 = vpop.f32.mrb[9].mxu0  ;;  %v10436_v61 = vpop.f32.mrb[9].mxu1  ;;  %13914 = vmatprep.subr.bf16.mxu0 %v17668_v3  ;;  %13936 = vmatprep.subr.bf16.mxu1 %v17670_v57  ;;  %18622 = vst [vmem:[#allocation29_spill] sm:$0xff] %v17688_v32 }
 0x475   : > { %v11958_v40 = vadd.f32 %v17624_v53, %v10393_v52  ;;  %v11960_v59 = vadd.f32 %v17626_v35, %v10436_v61  ;;  %v10395_v25 = vpop.f32.mrb[10].mxu0  ;;  %v10438_v9 = vpop.f32.mrb[10].mxu1  ;;  %11892 = vmatprep.mubr.bf16.mxu0 %v11385_v30  ;;  %11933 = vmatprep.mubr.bf16.mxu1 %v11387_v62  ;;  %v17698_v52 = vld [vmem:[#allocation6 + $0x118] sm:$0xff]  }
 0x476   : > { %v11965_v10 = vadd.f32 %v17620_v51, %v10395_v25  ;;  %v11967_v41 = vadd.f32 %v17622_v49, %v10438_v9  ;;  %v10397_v55 = vpop.f32.mrb[11].mxu0  ;;  %v10440_v15 = vpop.f32.mrb[11].mxu1  ;;  %18623 = vst [vmem:[#allocation30_spill] sm:$0xff] %v17698_v52  ;;  %v17700_v61 = vld [vmem:[#allocation6 + $0x198] sm:$0xff]   ;;  %v11973_v30 = vmax.f32 %v11957_v56, 0.0  ;;  %v11975_v62 = vmax.f32 %v11959_v23, 0.0 }
 0x477   : > { %v11966_v57 = vadd.f32 %v17624_v53, %v10397_v55  ;;  %v11968_v3 = vadd.f32 %v17626_v35, %v10440_v15  ;;  %13915 = vmatpush3.bf16.msra.mxu0 %v17678_v38  ;;  %13937 = vmatpush3.bf16.msra.mxu1 %v17680_v31  ;;  %18624 = vst [vmem:[#allocation31_spill] sm:$0xff] %v17700_v61  ;;  %v17704_v9 = vld [vmem:[#allocation6 + $0x160] sm:$0xff]   ;;  %v11974_v15 = vmax.f32 %v11958_v40, 0.0  ;;  %v11976_v38 = vmax.f32 %v11960_v59, 0.0 }
 0x478   : > { %v11981_v12 = vmax.f32 %v11965_v10, 0.0  ;;  %v11983_v25 = vmax.f32 %v11967_v41, 0.0  ;;  %13916 = vmatprep.subr.bf16.mxu0 %v17686_v36  ;;  %13938 = vmatprep.subr.bf16.mxu1 %v17688_v32  ;;  %18625 = vst [vmem:[#allocation32_spill] sm:$0xff] %v17704_v9  ;;  %v17706_v55 = vld [vmem:[#allocation6 + $0x1e0] sm:$0xff]  }
 0x479   : > { %18626 = vst [vmem:[#allocation33_spill] sm:$0xff] %v17706_v55  ;;  %v11982_v11 = vmax.f32 %v11966_v57, 0.0  ;;  %v11984_v31 = vmax.f32 %v11968_v3, 0.0  ;;  %v17718_v32 = vld [vmem:[#allocation6 + $0x120] sm:$0xff]  }
 0x47a   : > { %v17708_v29 = vpack.c.bf16 %v11981_v12, %v11973_v30  ;;  %v17710_v34 = vpack.c.bf16 %v11983_v25, %v11975_v62  ;;  %18629 = vst [vmem:[#allocation36_spill] sm:$0xff] %v17718_v32  ;;  %v17720_v40 = vld [vmem:[#allocation6 + $0x1a0] sm:$0xff]  }
 0x47b   : > { %v17712_v56 = vpack.c.bf16 %v11982_v11, %v11974_v15  ;;  %v17714_v23 = vpack.c.bf16 %v11984_v31, %v11976_v38  ;;  %13917 = vmatpush3.bf16.msra.mxu0 %v17698_v52  ;;  %13939 = vmatpush3.bf16.msra.mxu1 %v17700_v61  ;;  %v10477_v10 = vpop.f32.mrb[12].mxu0  ;;  %v10520_v41 = vpop.f32.mrb[12].mxu1  ;;  %18630 = vst [vmem:[#allocation37_spill] sm:$0xff] %v17720_v40  ;;  %v17726_v31 = vld [vmem:[#allocation6 + $0x168] sm:$0xff]  }
 0x47c   : > { %18627 = vst [vmem:[#allocation34_spill] sm:$0xff] %v17708_v29  ;;  %18628 = vst [vmem:[#allocation35_spill] sm:$0xff] %v17710_v34  ;;  %v11961_v3 = vadd.f32 %v17634_v8, %v10477_v10  ;;  %v11963_v12 = vadd.f32 %v17636_v4, %v10520_v41  ;;  %v10479_v57 = vpop.f32.mrb[13].mxu0  ;;  %v10522_v59 = vpop.f32.mrb[13].mxu1  ;;  %13918 = vmatprep.subr.bf16.mxu0 %v17704_v9  ;;  %13940 = vmatprep.subr.bf16.mxu1 %v17706_v55  ;;  %v17728_v11 = vld [vmem:[#allocation6 + $0x1e8] sm:$0xff]  }
 0x47d   : > { %18631 = vst [vmem:[#allocation38_spill] sm:$0xff] %v17726_v31  ;;  %18632 = vst [vmem:[#allocation39_spill] sm:$0xff] %v17728_v11  ;;  %v11962_v38 = vadd.f32 %v17640_v39, %v10479_v57  ;;  %v11964_v30 = vadd.f32 %v17642_v45, %v10522_v59  ;;  %v10481_v62 = vpop.f32.mrb[14].mxu0  ;;  %v10524_v25 = vpop.f32.mrb[14].mxu1  ;;  %v17738_v52 = vld [vmem:[#allocation6 + $0x128] sm:$0xff]  }
 0x47e   : > { %v11969_v15 = vadd.f32 %v17634_v8, %v10481_v62  ;;  %v11971_v10 = vadd.f32 %v17636_v4, %v10524_v25  ;;  %v10483_v41 = vpop.f32.mrb[15].mxu0  ;;  %v10526_v61 = vpop.f32.mrb[15].mxu1  ;;  %18633 = vst [vmem:[#allocation40_spill] sm:$0xff] %v17738_v52  ;;  %v17740_v57 = vld [vmem:[#allocation6 + $0x1a8] sm:$0xff]   ;;  %v11977_v59 = vmax.f32 %v11961_v3, 0.0  ;;  %v11979_v36 = vmax.f32 %v11963_v12, 0.0 }
 0x47f   : > { %v11970_v9 = vadd.f32 %v17640_v39, %v10483_v41  ;;  %v11972_v55 = vadd.f32 %v17642_v45, %v10526_v61  ;;  %13919 = vmatpush3.bf16.msra.mxu0 %v17718_v32  ;;  %13941 = vmatpush3.bf16.msra.mxu1 %v17720_v40  ;;  %18634 = vst [vmem:[#allocation41_spill] sm:$0xff] %v17740_v57  ;;  %v17744_v25 = vld [vmem:[#allocation6 + $0x170] sm:$0xff]   ;;  %v11978_v61 = vmax.f32 %v11962_v38, 0.0  ;;  %v11980_v32 = vmax.f32 %v11964_v30, 0.0 }
 0x480   : > { %v11985_v33 = vmax.f32 %v11969_v15, 0.0  ;;  %v11987_v62 = vmax.f32 %v11971_v10, 0.0  ;;  %13920 = vmatprep.subr.bf16.mxu0 %v17726_v31  ;;  %13942 = vmatprep.subr.bf16.mxu1 %v17728_v11  ;;  %18635 = vst [vmem:[#allocation42_spill] sm:$0xff] %v17744_v25  ;;  %v17746_v41 = vld [vmem:[#allocation6 + $0x1f0] sm:$0xff]  }
 0x481   : > { %18636 = vst [vmem:[#allocation43_spill] sm:$0xff] %v17746_v41  ;;  %v11986_v34 = vmax.f32 %v11970_v9, 0.0  ;;  %v11988_v40 = vmax.f32 %v11972_v55, 0.0  ;;  %v17758_v11 = vld [vmem:[#allocation6 + $0x130] sm:$0xff]  }
 0x482   : > { %v17748_v29 = vpack.c.bf16 %v11985_v33, %v11977_v59  ;;  %v17750_v27 = vpack.c.bf16 %v11987_v62, %v11979_v36  ;;  %18641 = vst [vmem:[#allocation48_spill] sm:$0xff] %v17758_v11  ;;  %v17760_v38 = vld [vmem:[#allocation6 + $0x1b0] sm:$0xff]  }
 0x483   : > { %v17752_v3 = vpack.c.bf16 %v11986_v34, %v11978_v61  ;;  %v17754_v12 = vpack.c.bf16 %v11988_v40, %v11980_v32  ;;  %13921 = vmatpush3.bf16.msra.mxu0 %v17738_v52  ;;  %13943 = vmatpush3.bf16.msra.mxu1 %v17740_v57  ;;  %v10579_v15 = vpop.f32.mrb[16].mxu0  ;;  %v10622_v10 = vpop.f32.mrb[16].mxu1  ;;  %18642 = vst [vmem:[#allocation49_spill] sm:$0xff] %v17760_v38  ;;  %v17766_v34 = vld [vmem:[#allocation6 + $0x178] sm:$0xff]  }
 0x484   : > { %18637 = vst [vmem:[#allocation44_spill] sm:$0xff] %v17748_v29  ;;  %18638 = vst [vmem:[#allocation45_spill] sm:$0xff] %v17750_v27  ;;  %v12176_v9 = vadd.f32 %v17620_v51, %v10579_v15  ;;  %v12178_v33 = vadd.f32 %v17622_v49, %v10622_v10  ;;  %v10581_v36 = vpop.f32.mrb[17].mxu0  ;;  %v10624_v55 = vpop.f32.mrb[17].mxu1  ;;  %13922 = vmatprep.subr.bf16.mxu0 %v17744_v25  ;;  %13944 = vmatprep.subr.bf16.mxu1 %v17746_v41  ;;  %v17768_v32 = vld [vmem:[#allocation6 + $0x1f8] sm:$0xff]  }
 0x485   : > { %18639 = vst [vmem:[#allocation46_spill] sm:$0xff] %v17752_v3  ;;  %18640 = vst [vmem:[#allocation47_spill] sm:$0xff] %v17754_v12  ;;  %v12177_v40 = vadd.f32 %v17624_v53, %v10581_v36  ;;  %v12179_v30 = vadd.f32 %v17626_v35, %v10624_v55  ;;  %v10583_v59 = vpop.f32.mrb[18].mxu0  ;;  %v10626_v62 = vpop.f32.mrb[18].mxu1  ;;  %v17778_v25 = vld [vmem:[#allocation6 + $0x138] sm:$0xff]  }
 0x486   : > { %v12184_v61 = vadd.f32 %v17620_v51, %v10583_v59  ;;  %v12186_v15 = vadd.f32 %v17622_v49, %v10626_v62  ;;  %v10585_v10 = vpop.f32.mrb[19].mxu0  ;;  %v10628_v27 = vpop.f32.mrb[19].mxu1  ;;  %v17780_v36 = vld [vmem:[#allocation6 + $0x1b8] sm:$0xff]   ;;  %v12192_v55 = vmax.f32 %v12176_v9, 0.0  ;;  %v12194_v57 = vmax.f32 %v12178_v33, 0.0 }
 0x487   : > { %v12185_v29 = vadd.f32 %v17624_v53, %v10585_v10  ;;  %v12187_v41 = vadd.f32 %v17626_v35, %v10628_v27  ;;  %13923 = vmatpush3.bf16.msra.mxu0 %v17758_v11  ;;  %13945 = vmatpush3.bf16.msra.mxu1 %v17760_v38  ;;  %v12193_v62 = vmax.f32 %v12177_v40, 0.0  ;;  %v12195_v10 = vmax.f32 %v12179_v30, 0.0 }
 0x488   : > { %v12200_v52 = vmax.f32 %v12184_v61, 0.0  ;;  %v12202_v59 = vmax.f32 %v12186_v15, 0.0  ;;  %13924 = vmatprep.subr.bf16.mxu0 %v17766_v34  ;;  %13946 = vmatprep.subr.bf16.mxu1 %v17768_v32 }
 0x489   : > { %v12201_v31 = vmax.f32 %v12185_v29, 0.0  ;;  %v12203_v27 = vmax.f32 %v12187_v41, 0.0 }
 0x48a   : > { %v17784_v12 = vpack.c.bf16 %v12200_v52, %v12192_v55  ;;  %v17786_v11 = vpack.c.bf16 %v12202_v59, %v12194_v57 }
 0x48b   : > { %v17788_v38 = vpack.c.bf16 %v12201_v31, %v12193_v62  ;;  %v17790_v3 = vpack.c.bf16 %v12203_v27, %v12195_v10  ;;  %13925 = vmatpush3.bf16.msra.mxu0 %v17778_v25  ;;  %13947 = vmatpush3.bf16.msra.mxu1 %v17780_v36  ;;  %v10665_v9 = vpop.f32.mrb[20].mxu0  ;;  %v10708_v33 = vpop.f32.mrb[20].mxu1 }
 0x48c   : > { %v12180_v61 = vadd.f32 %v17634_v8, %v10665_v9  ;;  %v12182_v40 = vadd.f32 %v17636_v4, %v10708_v33  ;;  %v10667_v29 = vpop.f32.mrb[21].mxu0  ;;  %v10710_v41 = vpop.f32.mrb[21].mxu1  ;;  %13954 = vmatprep.subr.bf16.mxu0 %v17509_v28  ;;  %13976 = vmatprep.subr.bf16.mxu1 %v17511_v26 }
 0x48d   : > { %v12181_v52 = vadd.f32 %v17640_v39, %v10667_v29  ;;  %v12183_v31 = vadd.f32 %v17642_v45, %v10710_v41  ;;  %v10669_v57 = vpop.f32.mrb[22].mxu0  ;;  %v10712_v30 = vpop.f32.mrb[22].mxu1 }
 0x48e   : > { %v12188_v15 = vadd.f32 %v17634_v8, %v10669_v57  ;;  %v12190_v55 = vadd.f32 %v17636_v4, %v10712_v30  ;;  %11893 = vmatmul.mubr.bf16.vlgmr.msra.gmra.mrb[52].mxu0 %v17672_v7  ;;  %11934 = vmatmul.mubr.bf16.vlgmr.msra.gmra.mrb[52].mxu1 %v17674_v37  ;;  %v10671_v59 = vpop.f32.mrb[23].mxu0  ;;  %v10714_v62 = vpop.f32.mrb[23].mxu1  ;;  %v12196_v10 = vmax.f32 %v12180_v61, 0.0  ;;  %v12198_v27 = vmax.f32 %v12182_v40, 0.0 }
 0x48f   : > { %v12189_v28 = vadd.f32 %v17640_v39, %v10671_v59  ;;  %v12191_v26 = vadd.f32 %v17642_v45, %v10714_v62  ;;  %13955 = vmatpush3.bf16.msra.mxu0 %v17521_v50  ;;  %12029 = vmatprep.mubr.bf16.mxu0 %v17712_v56  ;;  %v12197_v7 = vmax.f32 %v12181_v52, 0.0  ;;  %v12199_v37 = vmax.f32 %v12183_v31, 0.0 }
 0x490   : > { %v12204_v9 = vmax.f32 %v12188_v15, 0.0  ;;  %v12206_v33 = vmax.f32 %v12190_v55, 0.0  ;;  %13977 = vmatpush3.bf16.msra.mxu1 %v17523_v6  ;;  %12070 = vmatprep.mubr.bf16.mxu1 %v17714_v23 }
 0x491   : > { %v12205_v29 = vmax.f32 %v12189_v28, 0.0  ;;  %v12207_v41 = vmax.f32 %v12191_v26, 0.0  ;;  %13956 = vmatprep.subr.bf16.mxu0 %v17525_v42  ;;  %13978 = vmatprep.subr.bf16.mxu1 %v17527_v43 }
 0x492   : > { %v17812_v57 = vpack.c.bf16 %v12204_v9, %v12196_v10  ;;  %v17814_v50 = vpack.c.bf16 %v12206_v33, %v12198_v27 }
 0x493   : > { %v17816_v56 = vpack.c.bf16 %v12205_v29, %v12197_v7  ;;  %v17818_v61 = vpack.c.bf16 %v12207_v41, %v12199_v37  ;;  %13957 = vmatpush3.bf16.msra.mxu0 %v17533_v0  ;;  %v10767_v6 = vpop.f32.mrb[24].mxu0  ;;  %v10810_v23 = vpop.f32.mrb[24].mxu1 }
 0x494   : > { %13979 = vmatpush3.bf16.msra.mxu1 %v17535_v46  ;;  %v12395_v40 = vadd.f32 %v17620_v51, %v10767_v6  ;;  %v12397_v42 = vadd.f32 %v17622_v49, %v10810_v23  ;;  %v10769_v52 = vpop.f32.mrb[25].mxu0  ;;  %v10812_v43 = vpop.f32.mrb[25].mxu1  ;;  %13958 = vmatprep.subr.bf16.mxu0 %v17539_v47 }
 0x495   : > { %v12396_v31 = vadd.f32 %v17624_v53, %v10769_v52  ;;  %v12398_v30 = vadd.f32 %v17626_v35, %v10812_v43  ;;  %v10771_v15 = vpop.f32.mrb[26].mxu0  ;;  %v10814_v55 = vpop.f32.mrb[26].mxu1  ;;  %13980 = vmatprep.subr.bf16.mxu1 %v17541_v48 }
 0x496   : > { %v12403_v0 = vadd.f32 %v17620_v51, %v10771_v15  ;;  %v12405_v46 = vadd.f32 %v17622_v49, %v10814_v55  ;;  %v10773_v59 = vpop.f32.mrb[27].mxu0  ;;  %v10816_v62 = vpop.f32.mrb[27].mxu1  ;;  %v12411_v47 = vmax.f32 %v12395_v40, 0.0  ;;  %v12413_v10 = vmax.f32 %v12397_v42, 0.0 }
 0x497   : > { %v12404_v28 = vadd.f32 %v17624_v53, %v10773_v59  ;;  %v12406_v26 = vadd.f32 %v17626_v35, %v10816_v62  ;;  %13959 = vmatpush3.bf16.msra.mxu0 %v17545_v14  ;;  %v12412_v48 = vmax.f32 %v12396_v31, 0.0  ;;  %v12414_v33 = vmax.f32 %v12398_v30, 0.0 }
 0x498   : > { %v12419_v27 = vmax.f32 %v12403_v0, 0.0  ;;  %v12421_v9 = vmax.f32 %v12405_v46, 0.0  ;;  %13981 = vmatpush3.bf16.msra.mxu1 %v17547_v63  ;;  %13960 = vmatprep.subr.bf16.mxu0 %v17551_v1 }
 0x499   : > { %v12420_v7 = vmax.f32 %v12404_v28, 0.0  ;;  %v12422_v37 = vmax.f32 %v12406_v26, 0.0  ;;  %13982 = vmatprep.subr.bf16.mxu1 %v17553_v2 }
 0x49a   : > { %v17836_v29 = vpack.c.bf16 %v12419_v27, %v12411_v47  ;;  %v17838_v41 = vpack.c.bf16 %v12421_v9, %v12413_v10 }
 0x49b   : > { %v17840_v6 = vpack.c.bf16 %v12420_v7, %v12412_v48  ;;  %v17842_v14 = vpack.c.bf16 %v12422_v37, %v12414_v33  ;;  %13961 = vmatpush3.bf16.msra.mxu0 %v17557_v5  ;;  %v10853_v23 = vpop.f32.mrb[28].mxu0  ;;  %v10896_v63 = vpop.f32.mrb[28].mxu1 }
 0x49c   : > { %18643 = vst [vmem:[#allocation50_spill] sm:$0xff] %v17836_v29  ;;  %18644 = vst [vmem:[#allocation51_spill] sm:$0xff] %v17838_v41  ;;  %13983 = vmatpush3.bf16.msra.mxu1 %v17559_v13  ;;  %v12399_v1 = vadd.f32 %v17634_v8, %v10853_v23  ;;  %v12401_v40 = vadd.f32 %v17636_v4, %v10896_v63  ;;  %v10855_v42 = vpop.f32.mrb[29].mxu0  ;;  %v10898_v2 = vpop.f32.mrb[29].mxu1  ;;  %13962 = vmatprep.subr.bf16.mxu0 %v17563_v16  ;;  %v18054_v41 = vld [vmem:[#allocation6 + $0x70] sm:$0xff]  }
 0x49d   : > { %v12400_v52 = vadd.f32 %v17640_v39, %v10855_v42  ;;  %v12402_v43 = vadd.f32 %v17642_v45, %v10898_v2  ;;  %v10857_v31 = vpop.f32.mrb[30].mxu0  ;;  %v10900_v30 = vpop.f32.mrb[30].mxu1  ;;  %13984 = vmatprep.subr.bf16.mxu1 %v17565_v54  ;;  %v18057_v29 = vld [vmem:[#allocation6 + $0xf0] sm:$0xff]  }
 0x49e   : > { %v12407_v5 = vadd.f32 %v17634_v8, %v10857_v31  ;;  %v12409_v13 = vadd.f32 %v17636_v4, %v10900_v30  ;;  %v10859_v15 = vpop.f32.mrb[31].mxu0  ;;  %v10902_v55 = vpop.f32.mrb[31].mxu1  ;;  %v12415_v16 = vmax.f32 %v12399_v1, 0.0  ;;  %v12417_v59 = vmax.f32 %v12401_v40, 0.0 }
 0x49f   : > { %v12408_v0 = vadd.f32 %v17640_v39, %v10859_v15  ;;  %v12410_v46 = vadd.f32 %v17642_v45, %v10902_v55  ;;  %13963 = vmatpush3.bf16.msra.mxu0 %v17569_v17  ;;  %v12416_v54 = vmax.f32 %v12400_v52, 0.0  ;;  %v12418_v26 = vmax.f32 %v12402_v43, 0.0 }
 0x4a0   : > { %v12423_v62 = vmax.f32 %v12407_v5, 0.0  ;;  %v12425_v28 = vmax.f32 %v12409_v13, 0.0  ;;  %13985 = vmatpush3.bf16.msra.mxu1 %v17571_v58  ;;  %13964 = vmatprep.subr.bf16.mxu0 %v17575_v18  ;;  %v18649_v13 = vld [vmem:[#allocation12_spill] sm:$0xff] }
 0x4a1   : > { %v12424_v47 = vmax.f32 %v12408_v0, 0.0  ;;  %v12426_v10 = vmax.f32 %v12410_v46, 0.0  ;;  %13986 = vmatprep.subr.bf16.mxu1 %v17577_v19  ;;  %v18650_v46 = vld [vmem:[#allocation13_spill] sm:$0xff] }
 0x4a2   : > { %v17860_v27 = vpack.c.bf16 %v12423_v62, %v12415_v16  ;;  %v17862_v9 = vpack.c.bf16 %v12425_v28, %v12417_v59  ;;  %v18655_v28 = vld [vmem:[#allocation14_spill] sm:$0xff] }
 0x4a3   : > { %v17864_v48 = vpack.c.bf16 %v12424_v47, %v12416_v54  ;;  %v17866_v17 = vpack.c.bf16 %v12426_v10, %v12418_v26  ;;  %13965 = vmatpush3.bf16.msra.mxu0 %v17581_v20  ;;  %v10955_v33 = vpop.f32.mrb[32].mxu0  ;;  %v10998_v58 = vpop.f32.mrb[32].mxu1  ;;  %v18656_v26 = vld [vmem:[#allocation15_spill] sm:$0xff] }
 0x4a4   : > { %18645 = vst [vmem:[#allocation52_spill] sm:$0xff] %v17860_v27  ;;  %18646 = vst [vmem:[#allocation53_spill] sm:$0xff] %v17862_v9  ;;  %13987 = vmatpush3.bf16.msra.mxu1 %v17583_v44  ;;  %v12614_v18 = vadd.f32 %v17620_v51, %v10955_v33  ;;  %v12616_v7 = vadd.f32 %v17622_v49, %v10998_v58  ;;  %v10957_v37 = vpop.f32.mrb[33].mxu0  ;;  %v11000_v19 = vpop.f32.mrb[33].mxu1  ;;  %13966 = vmatprep.subr.bf16.mxu0 %v17587_v21  ;;  %v18042_v9 = vld [vmem:[#allocation6 + $0x68] sm:$0xff]  }
 0x4a5   : > { %18647 = vst [vmem:[#allocation54_spill] sm:$0xff] %v17864_v48  ;;  %18648 = vst [vmem:[#allocation55_spill] sm:$0xff] %v17866_v17  ;;  %v12615_v23 = vadd.f32 %v17624_v53, %v10957_v37  ;;  %v12617_v63 = vadd.f32 %v17626_v35, %v11000_v19  ;;  %v10959_v1 = vpop.f32.mrb[34].mxu0  ;;  %v11002_v40 = vpop.f32.mrb[34].mxu1  ;;  %13988 = vmatprep.subr.bf16.mxu1 %v17589_v22  ;;  %v18045_v27 = vld [vmem:[#allocation6 + $0xe8] sm:$0xff]  }
 0x4a6   : > { %v12622_v20 = vadd.f32 %v17620_v51, %v10959_v1  ;;  %v12624_v44 = vadd.f32 %v17622_v49, %v11002_v40  ;;  %v10961_v42 = vpop.f32.mrb[35].mxu0  ;;  %v11004_v2 = vpop.f32.mrb[35].mxu1  ;;  %v12630_v21 = vmax.f32 %v12614_v18, 0.0  ;;  %v12632_v31 = vmax.f32 %v12616_v7, 0.0  ;;  %v18657_v18 = vld [vmem:[#allocation16_spill] sm:$0xff] }
 0x4a7   : > { %v12623_v52 = vadd.f32 %v17624_v53, %v10961_v42  ;;  %v12625_v43 = vadd.f32 %v17626_v35, %v11004_v2  ;;  %13967 = vmatpush3.bf16.msra.mxu0 %v17593_v24  ;;  %v12631_v22 = vmax.f32 %v12615_v23, 0.0  ;;  %v12633_v15 = vmax.f32 %v12617_v63, 0.0  ;;  %v18658_v63 = vld [vmem:[#allocation17_spill] sm:$0xff]  ;;  %v18660_v2 = vld [vmem:[#allocation35_spill] sm:$0xff] }
 0x4a8   : > { %v12638_v30 = vmax.f32 %v12622_v20, 0.0  ;;  %v12640_v5 = vmax.f32 %v12624_v44, 0.0  ;;  %13989 = vmatpush3.bf16.msra.mxu1 %v17595_v60  ;;  %13968 = vmatprep.subr.bf16.mxu0 %v18649_v13  ;;  %v18659_v20 = vld [vmem:[#allocation34_spill] sm:$0xff]  ;;  %v18048_v17 = vld [vmem:[#allocation6 + $0x28] sm:$0xff]  }
 0x4a9   : > { %v12639_v55 = vmax.f32 %v12623_v52, 0.0  ;;  %v12641_v0 = vmax.f32 %v12625_v43, 0.0  ;;  %13990 = vmatprep.subr.bf16.mxu1 %v18650_v46  ;;  %v18051_v48 = vld [vmem:[#allocation6 + $0xa8] sm:$0xff]  }
 0x4aa   : > { %v17884_v16 = vpack.c.bf16 %v12638_v30, %v12630_v21  ;;  %v17886_v59 = vpack.c.bf16 %v12640_v5, %v12632_v31  ;;  %v18661_v21 = vld [vmem:[#allocation18_spill] sm:$0xff] }
 0x4ab   : > { %v17888_v62 = vpack.c.bf16 %v12639_v55, %v12631_v22  ;;  %v17890_v24 = vpack.c.bf16 %v12641_v0, %v12633_v15  ;;  %13969 = vmatpush3.bf16.msra.mxu0 %v18655_v28  ;;  %v11041_v54 = vpop.f32.mrb[36].mxu0  ;;  %v11084_v60 = vpop.f32.mrb[36].mxu1  ;;  %v18662_v22 = vld [vmem:[#allocation46_spill] sm:$0xff]  ;;  %v18663_v15 = vld [vmem:[#allocation19_spill] sm:$0xff] }
 0x4ac   : > { %18651 = vst [vmem:[#allocation12_spill] sm:$0xff] %v17884_v16  ;;  %18652 = vst [vmem:[#allocation13_spill] sm:$0xff] %v17886_v59  ;;  %13991 = vmatpush3.bf16.msra.mxu1 %v18656_v26  ;;  %v12618_v47 = vadd.f32 %v17634_v8, %v11041_v54  ;;  %v12620_v10 = vadd.f32 %v17636_v4, %v11084_v60  ;;  %v11043_v33 = vpop.f32.mrb[37].mxu0  ;;  %v11086_v58 = vpop.f32.mrb[37].mxu1  ;;  %13998 = vmatprep.subr.bf16.mxu0 %v18657_v18  ;;  %v18664_v54 = vld [vmem:[#allocation47_spill] sm:$0xff]  ;;  %v18665_v60 = vld [vmem:[#allocation20_spill] sm:$0xff] }
 0x4ad   : > { %18653 = vst [vmem:[#allocation56_spill] sm:$0xff] %v17888_v62  ;;  %18654 = vst [vmem:[#allocation57_spill] sm:$0xff] %v17890_v24  ;;  %v12619_v7 = vadd.f32 %v17640_v39, %v11043_v33  ;;  %v12621_v37 = vadd.f32 %v17642_v45, %v11086_v58  ;;  %v11045_v19 = vpop.f32.mrb[38].mxu0  ;;  %v11088_v23 = vpop.f32.mrb[38].mxu1  ;;  %14020 = vmatprep.subr.bf16.mxu1 %v18658_v63  ;;  %v18671_v18 = vld [vmem:[#allocation22_spill] sm:$0xff]  ;;  %v18033_v16 = vld [vmem:[#allocation6 + $0xe0] sm:$0xff]  }
 0x4ae   : > { %v12626_v1 = vadd.f32 %v17634_v8, %v11045_v19  ;;  %v12628_v40 = vadd.f32 %v17636_v4, %v11088_v23  ;;  %12030 = vmatmul.mubr.bf16.vlgmr.msra.gmra.mrb[56].mxu0 %v18659_v20  ;;  %v11047_v44 = vpop.f32.mrb[39].mxu0  ;;  %v11090_v42 = vpop.f32.mrb[39].mxu1  ;;  %v12634_v31 = vmax.f32 %v12618_v47, 0.0  ;;  %v12636_v30 = vmax.f32 %v12620_v10, 0.0  ;;  %v18668_v47 = vld [vmem:[#allocation21_spill] sm:$0xff]  ;;  %v18672_v19 = vld [vmem:[#allocation23_spill] sm:$0xff] }
 0x4af   : > { %12071 = vmatmul.mubr.bf16.vlgmr.msra.gmra.mrb[56].mxu1 %v18660_v2  ;;  %v12627_v52 = vadd.f32 %v17640_v39, %v11047_v44  ;;  %v12629_v43 = vadd.f32 %v17642_v45, %v11090_v42  ;;  %13999 = vmatpush3.bf16.msra.mxu0 %v18661_v21  ;;  %v12635_v55 = vmax.f32 %v12619_v7, 0.0  ;;  %v12637_v0 = vmax.f32 %v12621_v37, 0.0  ;;  %v18673_v20 = vld [vmem:[#allocation24_spill] sm:$0xff]  ;;  %18703 = vst [vmem:[#allocation22_spill] sm:$0xff] %v18042_v9 }
 0x4b0   : > { %v12642_v5 = vmax.f32 %v12626_v1, 0.0  ;;  %v12644_v13 = vmax.f32 %v12628_v40, 0.0  ;;  %12111 = vmatprep.mubr.bf16.mxu0 %v18662_v22  ;;  %14021 = vmatpush3.bf16.msra.mxu1 %v18663_v15  ;;  %v18036_v24 = vld [vmem:[#allocation6 + $0x20] sm:$0xff]   ;;  %18704 = vst [vmem:[#allocation23_spill] sm:$0xff] %v18045_v27  ;;  %18705 = vst [vmem:[#allocation24_spill] sm:$0xff] %v18048_v17 }
 0x4b1   : > { %v12643_v46 = vmax.f32 %v12627_v52, 0.0  ;;  %v12645_v28 = vmax.f32 %v12629_v43, 0.0  ;;  %12152 = vmatprep.mubr.bf16.mxu1 %v18664_v54  ;;  %14000 = vmatprep.subr.bf16.mxu0 %v18665_v60  ;;  %v18674_v43 = vld [vmem:[#allocation25_spill] sm:$0xff]  ;;  %v18039_v62 = vld [vmem:[#allocation6 + $0xa0] sm:$0xff]  }
 0x4b2   : > { %v17911_v26 = vpack.c.bf16 %v12642_v5, %v12634_v31  ;;  %v17913_v33 = vpack.c.bf16 %v12644_v13, %v12636_v30  ;;  %14022 = vmatprep.subr.bf16.mxu1 %v18668_v47  ;;  %18706 = vst [vmem:[#allocation25_spill] sm:$0xff] %v18051_v48 }
 0x4b3   : > { %v17916_v10 = vpack.c.bf16 %v12643_v46, %v12635_v55  ;;  %v17918_v58 = vpack.c.bf16 %v12645_v28, %v12637_v0  ;;  %14001 = vmatpush3.bf16.msra.mxu0 %v18671_v18  ;;  %v11153_v7 = vpop.f32.mrb[40].mxu0  ;;  %v11196_v37 = vpop.f32.mrb[40].mxu1  ;;  %v18675_v0 = vld [vmem:[#allocation26_spill] sm:$0xff] }
 0x4b4   : > { %18666 = vst [vmem:[#allocation14_spill] sm:$0xff] %v17911_v26  ;;  %18667 = vst [vmem:[#allocation15_spill] sm:$0xff] %v17913_v33  ;;  %14023 = vmatpush3.bf16.msra.mxu1 %v18672_v19  ;;  %v12833_v23 = vadd.f32 %v17620_v51, %v11153_v7  ;;  %v12835_v63 = vadd.f32 %v17622_v49, %v11196_v37  ;;  %v11155_v1 = vpop.f32.mrb[41].mxu0  ;;  %v11198_v40 = vpop.f32.mrb[41].mxu1  ;;  %14002 = vmatprep.subr.bf16.mxu0 %v18673_v20  ;;  %v18676_v37 = vld [vmem:[#allocation27_spill] sm:$0xff]  ;;  %v18688_v26 = vld [vmem:[#allocation37_spill] sm:$0xff] }
 0x4b5   : > { %18669 = vst [vmem:[#allocation16_spill] sm:$0xff] %v17916_v10  ;;  %18670 = vst [vmem:[#allocation17_spill] sm:$0xff] %v17918_v58  ;;  %v12834_v44 = vadd.f32 %v17624_v53, %v11155_v1  ;;  %v12836_v42 = vadd.f32 %v17626_v35, %v11198_v40  ;;  %v11157_v2 = vpop.f32.mrb[42].mxu0  ;;  %v11200_v52 = vpop.f32.mrb[42].mxu1  ;;  %14024 = vmatprep.subr.bf16.mxu1 %v18674_v43  ;;  %v18677_v1 = vld [vmem:[#allocation28_spill] sm:$0xff]  ;;  %v18689_v58 = vld [vmem:[#allocation38_spill] sm:$0xff] }
 0x4b6   : > { %v12841_v31 = vadd.f32 %v17620_v51, %v11157_v2  ;;  %v12843_v30 = vadd.f32 %v17622_v49, %v11200_v52  ;;  %v11159_v5 = vpop.f32.mrb[43].mxu0  ;;  %v11202_v13 = vpop.f32.mrb[43].mxu1  ;;  %v12849_v46 = vmax.f32 %v12833_v23, 0.0  ;;  %v12851_v28 = vmax.f32 %v12835_v63, 0.0  ;;  %v18678_v52 = vld [vmem:[#allocation29_spill] sm:$0xff]  ;;  %v18683_v63 = vld [vmem:[#allocation30_spill] sm:$0xff] }
 0x4b7   : > { %v12842_v22 = vadd.f32 %v17624_v53, %v11159_v5  ;;  %v12844_v55 = vadd.f32 %v17626_v35, %v11202_v13  ;;  %14003 = vmatpush3.bf16.msra.mxu0 %v18675_v0  ;;  %v12850_v40 = vmax.f32 %v12834_v44, 0.0  ;;  %v12852_v51 = vmax.f32 %v12836_v42, 0.0  ;;  %v18684_v5 = vld [vmem:[#allocation31_spill] sm:$0xff]  ;;  %18707 = vst [vmem:[#allocation26_spill] sm:$0xff] %v18054_v41  ;;  %18708 = vst [vmem:[#allocation27_spill] sm:$0xff] %v18057_v29 }
 0x4b8   : > { %v12857_v54 = vmax.f32 %v12841_v31, 0.0  ;;  %v12859_v7 = vmax.f32 %v12843_v30, 0.0  ;;  %14025 = vmatpush3.bf16.msra.mxu1 %v18676_v37  ;;  %14004 = vmatprep.subr.bf16.mxu0 %v18677_v1 }
 0x4b9   : > { %v12858_v2 = vmax.f32 %v12842_v22, 0.0  ;;  %v12860_v49 = vmax.f32 %v12844_v55, 0.0  ;;  %14026 = vmatprep.subr.bf16.mxu1 %v18678_v52  ;;  %v18685_v55 = vld [vmem:[#allocation32_spill] sm:$0xff] }
 0x4ba   : > { %v17936_v33 = vpack.c.bf16 %v12857_v54, %v12849_v46  ;;  %v17938_v53 = vpack.c.bf16 %v12859_v7, %v12851_v28 }
 0x4bb   : > { %v17940_v35 = vpack.c.bf16 %v12858_v2, %v12850_v40  ;;  %v17942_v23 = vpack.c.bf16 %v12860_v49, %v12852_v51  ;;  %14005 = vmatpush3.bf16.msra.mxu0 %v18683_v63  ;;  %v11239_v31 = vpop.f32.mrb[44].mxu0  ;;  %v11282_v30 = vpop.f32.mrb[44].mxu1  ;;  %v18686_v40 = vld [vmem:[#allocation33_spill] sm:$0xff] }
 0x4bc   : > { %18679 = vst [vmem:[#allocation34_spill] sm:$0xff] %v17936_v33  ;;  %18680 = vst [vmem:[#allocation35_spill] sm:$0xff] %v17938_v53  ;;  %14027 = vmatpush3.bf16.msra.mxu1 %v18684_v5  ;;  %v12837_v44 = vadd.f32 %v17634_v8, %v11239_v31  ;;  %v12839_v42 = vadd.f32 %v17636_v4, %v11282_v30  ;;  %v11241_v13 = vpop.f32.mrb[45].mxu0  ;;  %v11284_v22 = vpop.f32.mrb[45].mxu1  ;;  %14006 = vmatprep.subr.bf16.mxu0 %v18685_v55  ;;  %v18687_v33 = vld [vmem:[#allocation36_spill] sm:$0xff] }
 0x4bd   : > { %18681 = vst [vmem:[#allocation18_spill] sm:$0xff] %v17940_v35  ;;  %18682 = vst [vmem:[#allocation46_spill] sm:$0xff] %v17942_v23  ;;  %v12838_v46 = vadd.f32 %v17640_v39, %v11241_v13  ;;  %v12840_v28 = vadd.f32 %v17642_v45, %v11284_v22  ;;  %v11243_v54 = vpop.f32.mrb[46].mxu0  ;;  %v11286_v7 = vpop.f32.mrb[46].mxu1  ;;  %14028 = vmatprep.subr.bf16.mxu1 %v18686_v40 }
 0x4be   : > { %v12845_v51 = vadd.f32 %v17634_v8, %v11243_v54  ;;  %v12847_v2 = vadd.f32 %v17636_v4, %v11286_v7  ;;  %v11245_v49 = vpop.f32.mrb[47].mxu0  ;;  %v11288_v31 = vpop.f32.mrb[47].mxu1  ;;  %v12853_v23 = vmax.f32 %v12837_v44, 0.0  ;;  %v12855_v13 = vmax.f32 %v12839_v42, 0.0  ;;  %v18690_v7 = vld [vmem:[#allocation39_spill] sm:$0xff]  ;;  %v18695_v42 = vld [vmem:[#allocation40_spill] sm:$0xff] }
 0x4bf   : > { %v12846_v30 = vadd.f32 %v17640_v39, %v11245_v49  ;;  %v12848_v53 = vadd.f32 %v17642_v45, %v11288_v31  ;;  %14007 = vmatpush3.bf16.msra.mxu0 %v18687_v33  ;;  %v12854_v10 = vmax.f32 %v12838_v46, 0.0  ;;  %v12856_v8 = vmax.f32 %v12840_v28, 0.0  ;;  %v18698_v46 = vld [vmem:[#allocation43_spill] sm:$0xff]  ;;  %v18699_v28 = vld [vmem:[#allocation48_spill] sm:$0xff]  ;;  %v18702_v49 = vld [vmem:[#allocation45_spill] sm:$0xff] }
 0x4c0   : > { %v12861_v35 = vmax.f32 %v12845_v51, 0.0  ;;  %v12863_v22 = vmax.f32 %v12847_v2, 0.0  ;;  %14029 = vmatpush3.bf16.msra.mxu1 %v18688_v26  ;;  %14008 = vmatprep.subr.bf16.mxu0 %v18689_v58  ;;  %v18696_v51 = vld [vmem:[#allocation41_spill] sm:$0xff]  ;;  %v18697_v2 = vld [vmem:[#allocation42_spill] sm:$0xff]  ;;  %v17986_v31 = vld [vmem:[#allocation6] sm:$0xff]  }
 0x4c1   : > { %v12862_v54 = vmax.f32 %v12846_v30, 0.0  ;;  %v12864_v4 = vmax.f32 %v12848_v53, 0.0  ;;  %14030 = vmatprep.subr.bf16.mxu1 %v18690_v7  ;;  %v18700_v53 = vld [vmem:[#allocation49_spill] sm:$0xff]  ;;  %v17990_v30 = vld [vmem:[#allocation6 + $0x80] sm:$0xff]  }
 0x4c2   : > { %v17960_v59 = vpack.c.bf16 %v12861_v35, %v12853_v23  ;;  %v17962_v39 = vpack.c.bf16 %v12863_v22, %v12855_v13  ;;  %v17981_v35 = vld [vmem:[#allocation6 + $0xc0] sm:$0xff]   ;;  %v17994_v13 = vld [vmem:[#allocation6 + $0x48] sm:$0xff]  }
 0x4c3   : > { %v17964_v45 = vpack.c.bf16 %v12862_v54, %v12854_v10  ;;  %v17966_v44 = vpack.c.bf16 %v12864_v4, %v12856_v8  ;;  %14009 = vmatpush3.bf16.msra.mxu0 %v18695_v42  ;;  %v17978_v10 = vld [vmem:[#allocation6 + $0x40] sm:$0xff]   ;;  %v17997_v22 = vld [vmem:[#allocation6 + $0xc8] sm:$0xff]   ;;  %v18012_v4 = vld [vmem:[#allocation6 + $0x10] sm:$0xff]  }
 0x4c4   : > { %18691 = vst [vmem:[#allocation19_spill] sm:$0xff] %v17960_v59  ;;  %18692 = vst [vmem:[#allocation47_spill] sm:$0xff] %v17962_v39  ;;  %14031 = vmatpush3.bf16.msra.mxu1 %v18696_v51  ;;  %14010 = vmatprep.subr.bf16.mxu0 %v18697_v2  ;;  %v18701_v23 = vld [vmem:[#allocation44_spill] sm:$0xff]  ;;  %v18021_v39 = vld [vmem:[#allocation6 + $0xd8] sm:$0xff]  }
 0x4c5   : > { %18693 = vst [vmem:[#allocation20_spill] sm:$0xff] %v17964_v45  ;;  %18694 = vst [vmem:[#allocation21_spill] sm:$0xff] %v17966_v44  ;;  %14032 = vmatprep.subr.bf16.mxu1 %v18698_v46  ;;  %v18000_v8 = vld [vmem:[#allocation6 + $0x8] sm:$0xff]   ;;  %v18024_v59 = vld [vmem:[#allocation6 + $0x18] sm:$0xff]  }
 0x4c6   : > { %v18003_v54 = vld [vmem:[#allocation6 + $0x88] sm:$0xff]   ;;  %v18027_v44 = vld [vmem:[#allocation6 + $0x98] sm:$0xff]   ;;  %v18030_v45 = vld [vmem:[#allocation6 + $0x60] sm:$0xff]  }
 0x4c7   : > { %14011 = vmatpush3.bf16.msra.mxu0 %v18699_v28 }
 0x4c8   : > { %14033 = vmatpush3.bf16.msra.mxu1 %v18700_v53  ;;  %14012 = vmatprep.subr.bf16.mxu0 %v17766_v34 }
 0x4c9   : > { %14034 = vmatprep.subr.bf16.mxu1 %v17768_v32 }
 0x4cb   : > { %14013 = vmatpush3.bf16.msra.mxu0 %v17778_v25 }
 0x4cc   : > { %14035 = vmatpush3.bf16.msra.mxu1 %v17780_v36  ;;  %14042 = vmatprep.subr.bf16.mxu0 %v17978_v10 }
 0x4cd   : > { %14064 = vmatprep.subr.bf16.mxu1 %v17981_v35 }
 0x4ce   : > { %12112 = vmatmul.mubr.bf16.vlgmr.msra.gmra.mrb[60].mxu0 %v18701_v23  ;;  %v18015_v23 = vld [vmem:[#allocation6 + $0x90] sm:$0xff]  }
 0x4cf   : > { %12153 = vmatmul.mubr.bf16.vlgmr.msra.gmra.mrb[60].mxu1 %v18702_v49  ;;  %14043 = vmatpush3.bf16.msra.mxu0 %v17986_v31  ;;  %v18018_v49 = vld [vmem:[#allocation6 + $0x58] sm:$0xff]  }
 0x4d0   : > { %12248 = vmatprep.mubr.bf16.mxu0 %v17788_v38  ;;  %14065 = vmatpush3.bf16.msra.mxu1 %v17990_v30  ;;  %v18006_v38 = vld [vmem:[#allocation6 + $0x50] sm:$0xff]  }
 0x4d1   : > { %12289 = vmatprep.mubr.bf16.mxu1 %v17790_v3  ;;  %14044 = vmatprep.subr.bf16.mxu0 %v17994_v13  ;;  %v18009_v3 = vld [vmem:[#allocation6 + $0xd0] sm:$0xff]  }
 0x4d2   : > { %14066 = vmatprep.subr.bf16.mxu1 %v17997_v22 }
 0x4d3   : > { %14045 = vmatpush3.bf16.msra.mxu0 %v18000_v8 }
 0x4d4   : > { %14067 = vmatpush3.bf16.msra.mxu1 %v18003_v54  ;;  %14046 = vmatprep.subr.bf16.mxu0 %v18006_v38 }
 0x4d5   : > { %14068 = vmatprep.subr.bf16.mxu1 %v18009_v3 }
 0x4d7   : > { %14047 = vmatpush3.bf16.msra.mxu0 %v18012_v4 }
 0x4d8   : > { %14069 = vmatpush3.bf16.msra.mxu1 %v18015_v23  ;;  %14048 = vmatprep.subr.bf16.mxu0 %v18018_v49 }
 0x4d9   : > { %14070 = vmatprep.subr.bf16.mxu1 %v18021_v39 }
 0x4db   : > { %14049 = vmatpush3.bf16.msra.mxu0 %v18024_v59 }
 0x4dc   : > { %14071 = vmatpush3.bf16.msra.mxu1 %v18027_v44  ;;  %14050 = vmatprep.subr.bf16.mxu0 %v18030_v45 }
 0x4dd   : > { %14072 = vmatprep.subr.bf16.mxu1 %v18033_v16 }
 0x4df   : > { %14051 = vmatpush3.bf16.msra.mxu0 %v18036_v24 }
 0x4e0   : > { %14073 = vmatpush3.bf16.msra.mxu1 %v18039_v62  ;;  %14052 = vmatprep.subr.bf16.mxu0 %v18042_v9  ;;  %v18060_v9 = vld [vmem:[#allocation6 + $0x30] sm:$0xff]  }
 0x4e1   : > { %14074 = vmatprep.subr.bf16.mxu1 %v18045_v27  ;;  %18709 = vst [vmem:[#allocation28_spill] sm:$0xff] %v18060_v9  ;;  %v18063_v27 = vld [vmem:[#allocation6 + $0xb0] sm:$0xff]  }
 0x4e2   : > { %18710 = vst [vmem:[#allocation29_spill] sm:$0xff] %v18063_v27 }
 0x4e3   : > { %14053 = vmatpush3.bf16.msra.mxu0 %v18048_v17  ;;  %v18066_v17 = vld [vmem:[#allocation6 + $0x78] sm:$0xff]  }
 0x4e4   : > { %14075 = vmatpush3.bf16.msra.mxu1 %v18051_v48  ;;  %14054 = vmatprep.subr.bf16.mxu0 %v18054_v41  ;;  %v18069_v48 = vld [vmem:[#allocation6 + $0xf8] sm:$0xff]  }
 0x4e5   : > { %14076 = vmatprep.subr.bf16.mxu1 %v18057_v29  ;;  %v18072_v41 = vld [vmem:[#allocation6 + $0x38] sm:$0xff]  }
 0x4e6   : > { %v18075_v29 = vld [vmem:[#allocation6 + $0xb8] sm:$0xff]  }
 0x4e7   : > { %14055 = vmatpush3.bf16.msra.mxu0 %v18060_v9  ;;  %v18078_v9 = vld [vmem:[#allocation6 + $0x140] sm:$0xff]  }
 0x4e8   : > { %14077 = vmatpush3.bf16.msra.mxu1 %v18063_v27  ;;  %14056 = vmatprep.subr.bf16.mxu0 %v18066_v17  ;;  %v18081_v27 = vld [vmem:[#allocation6 + $0x1c0] sm:$0xff]  }
 0x4e9   : > { %14078 = vmatprep.subr.bf16.mxu1 %v18069_v48 }
 0x4eb   : > { %14057 = vmatpush3.bf16.msra.mxu0 %v18072_v41 }
 0x4ec   : > { %14079 = vmatpush3.bf16.msra.mxu1 %v18075_v29  ;;  %14086 = vmatprep.subr.bf16.mxu0 %v18078_v9 }
 0x4ed   : > { %14108 = vmatprep.subr.bf16.mxu1 %v18081_v27 }
 0x4ee   : > { %12249 = vmatmul.mubr.bf16.vlgmr.msra.gmra.mrb[64].mxu0 %v17784_v12  ;;  %v18712_v12 = vld [vmem:[#allocation23_spill] sm:$0xff] }
 0x4ef   : > { %12290 = vmatmul.mubr.bf16.vlgmr.msra.gmra.mrb[64].mxu1 %v17786_v11  ;;  %14087 = vmatpush3.bf16.msra.mxu0 %v18661_v21  ;;  %v18711_v11 = vld [vmem:[#allocation22_spill] sm:$0xff] }
 0x4f0   : > { %12330 = vmatprep.mubr.bf16.mxu0 %v17816_v56  ;;  %14109 = vmatpush3.bf16.msra.mxu1 %v18663_v15  ;;  %v18715_v56 = vld [vmem:[#allocation26_spill] sm:$0xff]  ;;  %v18720_v15 = vld [vmem:[#allocation51_spill] sm:$0xff] }
 0x4f1   : > { %12371 = vmatprep.mubr.bf16.mxu1 %v17818_v61  ;;  %14088 = vmatprep.subr.bf16.mxu0 %v18665_v60  ;;  %v18716_v61 = vld [vmem:[#allocation27_spill] sm:$0xff]  ;;  %v18719_v21 = vld [vmem:[#allocation50_spill] sm:$0xff] }
 0x4f2   : > { %14110 = vmatprep.subr.bf16.mxu1 %v18668_v47  ;;  %v18158_v60 = vld [vmem:[#allocation6 + $0x100] sm:$0xff]   ;;  %v18721_v47 = vld [vmem:[#allocation54_spill] sm:$0xff] }
 0x4f3   : > { %14089 = vmatpush3.bf16.msra.mxu0 %v18671_v18  ;;  %v18162_v18 = vld [vmem:[#allocation6 + $0x180] sm:$0xff]  }
 0x4f4   : > { %14111 = vmatpush3.bf16.msra.mxu1 %v18672_v19  ;;  %14090 = vmatprep.subr.bf16.mxu0 %v18673_v20  ;;  %v18722_v19 = vld [vmem:[#allocation55_spill] sm:$0xff]  ;;  %v18166_v20 = vld [vmem:[#allocation6 + $0x148] sm:$0xff]  }
 0x4f5   : > { %14112 = vmatprep.subr.bf16.mxu1 %v18674_v43  ;;  %v18169_v43 = vld [vmem:[#allocation6 + $0x1c8] sm:$0xff]  }
 0x4f7   : > { %14091 = vmatpush3.bf16.msra.mxu0 %v18675_v0  ;;  %v18172_v0 = vld [vmem:[#allocation6 + $0x108] sm:$0xff]  }
 0x4f8   : > { %14113 = vmatpush3.bf16.msra.mxu1 %v18676_v37  ;;  %14092 = vmatprep.subr.bf16.mxu0 %v18677_v1  ;;  %v18175_v37 = vld [vmem:[#allocation6 + $0x188] sm:$0xff]   ;;  %v18178_v1 = vld [vmem:[#allocation6 + $0x150] sm:$0xff]  }
 0x4f9   : > { %14114 = vmatprep.subr.bf16.mxu1 %v18678_v52  ;;  %18723 = vst [vmem:[#allocation30_spill] sm:$0xff] %v18175_v37  ;;  %18724 = vst [vmem:[#allocation31_spill] sm:$0xff] %v18178_v1  ;;  %v18181_v52 = vld [vmem:[#allocation6 + $0x1d0] sm:$0xff]  }
 0x4fa   : > { %18725 = vst [vmem:[#allocation32_spill] sm:$0xff] %v18181_v52 }
 0x4fb   : > { %14093 = vmatpush3.bf16.msra.mxu0 %v18683_v63 }
 0x4fc   : > { %14115 = vmatpush3.bf16.msra.mxu1 %v18684_v5  ;;  %14094 = vmatprep.subr.bf16.mxu0 %v18685_v55 }
 0x4fd   : > { %14116 = vmatprep.subr.bf16.mxu1 %v18686_v40 }
 0x4ff   : > { %14095 = vmatpush3.bf16.msra.mxu0 %v18687_v33 }
 0x500   : > { %14117 = vmatpush3.bf16.msra.mxu1 %v18688_v26  ;;  %14096 = vmatprep.subr.bf16.mxu0 %v18689_v58 }
 0x501   : > { %14118 = vmatprep.subr.bf16.mxu1 %v18690_v7 }
 0x503   : > { %14097 = vmatpush3.bf16.msra.mxu0 %v18695_v42 }
 0x504   : > { %14119 = vmatpush3.bf16.msra.mxu1 %v18696_v51  ;;  %14098 = vmatprep.subr.bf16.mxu0 %v18697_v2 }
 0x505   : > { %14120 = vmatprep.subr.bf16.mxu1 %v18698_v46 }
 0x507   : > { %14099 = vmatpush3.bf16.msra.mxu0 %v18699_v28 }
 0x508   : > { %14121 = vmatpush3.bf16.msra.mxu1 %v18700_v53  ;;  %14100 = vmatprep.subr.bf16.mxu0 %v17766_v34 }
 0x509   : > { %14122 = vmatprep.subr.bf16.mxu1 %v17768_v32 }
 0x50b   : > { %14101 = vmatpush3.bf16.msra.mxu0 %v17778_v25 }
 0x50c   : > { %14123 = vmatpush3.bf16.msra.mxu1 %v17780_v36  ;;  %14130 = vmatprep.subr.bf16.mxu0 %v17978_v10 }
 0x50d   : > { %14152 = vmatprep.subr.bf16.mxu1 %v17981_v35 }
 0x50e   : > { %12331 = vmatmul.mubr.bf16.vlgmr.msra.gmra.mrb[68].mxu0 %v17812_v57  ;;  %v18713_v57 = vld [vmem:[#allocation24_spill] sm:$0xff] }
 0x50f   : > { %12372 = vmatmul.mubr.bf16.vlgmr.msra.gmra.mrb[68].mxu1 %v17814_v50  ;;  %14131 = vmatpush3.bf16.msra.mxu0 %v17986_v31  ;;  %v18714_v50 = vld [vmem:[#allocation25_spill] sm:$0xff] }
 0x510   : > { %12467 = vmatprep.mubr.bf16.mxu0 %v17840_v6  ;;  %14153 = vmatpush3.bf16.msra.mxu1 %v17990_v30  ;;  %v18717_v6 = vld [vmem:[#allocation28_spill] sm:$0xff] }
 0x511   : > { %12508 = vmatprep.mubr.bf16.mxu1 %v17842_v14  ;;  %14132 = vmatprep.subr.bf16.mxu0 %v17994_v13  ;;  %v18718_v14 = vld [vmem:[#allocation29_spill] sm:$0xff] }
 0x512   : > { %14154 = vmatprep.subr.bf16.mxu1 %v17997_v22 }
 0x513   : > { %14133 = vmatpush3.bf16.msra.mxu0 %v18000_v8 }
 0x514   : > { %14155 = vmatpush3.bf16.msra.mxu1 %v18003_v54  ;;  %14134 = vmatprep.subr.bf16.mxu0 %v18006_v38 }
 0x515   : > { %14156 = vmatprep.subr.bf16.mxu1 %v18009_v3 }
 0x517   : > { %14135 = vmatpush3.bf16.msra.mxu0 %v18012_v4 }
 0x518   : > { %14157 = vmatpush3.bf16.msra.mxu1 %v18015_v23  ;;  %14136 = vmatprep.subr.bf16.mxu0 %v18018_v49 }
 0x519   : > { %14158 = vmatprep.subr.bf16.mxu1 %v18021_v39 }
 0x51b   : > { %14137 = vmatpush3.bf16.msra.mxu0 %v18024_v59 }
 0x51c   : > { %14159 = vmatpush3.bf16.msra.mxu1 %v18027_v44  ;;  %14138 = vmatprep.subr.bf16.mxu0 %v18030_v45 }
 0x51d   : > { %14160 = vmatprep.subr.bf16.mxu1 %v18033_v16 }
 0x51f   : > { %14139 = vmatpush3.bf16.msra.mxu0 %v18036_v24 }
 0x520   : > { %14161 = vmatpush3.bf16.msra.mxu1 %v18039_v62  ;;  %14140 = vmatprep.subr.bf16.mxu0 %v18711_v11 }
 0x521   : > { %14162 = vmatprep.subr.bf16.mxu1 %v18712_v12 }
 0x523   : > { %14141 = vmatpush3.bf16.msra.mxu0 %v18713_v57 }
 0x524   : > { %14163 = vmatpush3.bf16.msra.mxu1 %v18714_v50  ;;  %14142 = vmatprep.subr.bf16.mxu0 %v18715_v56 }
 0x525   : > { %14164 = vmatprep.subr.bf16.mxu1 %v18716_v61 }
 0x527   : > { %14143 = vmatpush3.bf16.msra.mxu0 %v18717_v6 }
 0x528   : > { %14165 = vmatpush3.bf16.msra.mxu1 %v18718_v14  ;;  %14144 = vmatprep.subr.bf16.mxu0 %v18066_v17 }
 0x529   : > { %14166 = vmatprep.subr.bf16.mxu1 %v18069_v48 }
 0x52b   : > { %14145 = vmatpush3.bf16.msra.mxu0 %v18072_v41 }
 0x52c   : > { %14167 = vmatpush3.bf16.msra.mxu1 %v18075_v29  ;;  %14174 = vmatprep.subr.bf16.mxu0 %v18078_v9 }
 0x52d   : > { %14196 = vmatprep.subr.bf16.mxu1 %v18081_v27 }
 0x52e   : > { %12468 = vmatmul.mubr.bf16.vlgmr.msra.gmra.mrb[72].mxu0 %v18719_v21  ;;  %v18184_v21 = vld [vmem:[#allocation6 + $0x110] sm:$0xff]  }
 0x52f   : > { %12509 = vmatmul.mubr.bf16.vlgmr.msra.gmra.mrb[72].mxu1 %v18720_v15  ;;  %14175 = vmatpush3.bf16.msra.mxu0 %v18158_v60  ;;  %18726 = vst [vmem:[#allocation33_spill] sm:$0xff] %v18184_v21  ;;  %v18187_v15 = vld [vmem:[#allocation6 + $0x190] sm:$0xff]  }
 0x530   : > { %12549 = vmatprep.mubr.bf16.mxu0 %v18721_v47  ;;  %14197 = vmatpush3.bf16.msra.mxu1 %v18162_v18  ;;  %18727 = vst [vmem:[#allocation36_spill] sm:$0xff] %v18187_v15  ;;  %v18190_v47 = vld [vmem:[#allocation6 + $0x158] sm:$0xff]  }
 0x531   : > { %12590 = vmatprep.mubr.bf16.mxu1 %v18722_v19  ;;  %14176 = vmatprep.subr.bf16.mxu0 %v18166_v20  ;;  %18728 = vst [vmem:[#allocation37_spill] sm:$0xff] %v18190_v47  ;;  %v18193_v19 = vld [vmem:[#allocation6 + $0x1d8] sm:$0xff]  }
 0x532   : > { %14198 = vmatprep.subr.bf16.mxu1 %v18169_v43  ;;  %18729 = vst [vmem:[#allocation38_spill] sm:$0xff] %v18193_v19 }
 0x533   : > { %14177 = vmatpush3.bf16.msra.mxu0 %v18172_v0 }
 0x534   : > { %14199 = vmatpush3.bf16.msra.mxu1 %v18175_v37  ;;  %14178 = vmatprep.subr.bf16.mxu0 %v18178_v1 }
 0x535   : > { %14200 = vmatprep.subr.bf16.mxu1 %v18181_v52 }
 0x537   : > { %14179 = vmatpush3.bf16.msra.mxu0 %v18184_v21  ;;  %v18204_v21 = vld [vmem:[#allocation7] ss:$0 sm:$0xff] }
 0x538   : > { %14201 = vmatpush3.bf16.msra.mxu1 %v18187_v15  ;;  %14180 = vmatprep.subr.bf16.mxu0 %v18190_v47 }
 0x539   : > { %14202 = vmatprep.subr.bf16.mxu1 %v18193_v19 }
 0x53b   : > { %14181 = vmatpush3.bf16.msra.mxu0 %v18683_v63 }
 0x53c   : > { %14203 = vmatpush3.bf16.msra.mxu1 %v18684_v5  ;;  %14182 = vmatprep.subr.bf16.mxu0 %v18685_v55 }
 0x53d   : > { %14204 = vmatprep.subr.bf16.mxu1 %v18686_v40 }
 0x53f   : > { %14183 = vmatpush3.bf16.msra.mxu0 %v18687_v33 }
 0x540   : > { %14205 = vmatpush3.bf16.msra.mxu1 %v18688_v26  ;;  %14184 = vmatprep.subr.bf16.mxu0 %v18689_v58 }
 0x541   : > { %v13882_v15 = vpop.f32.mrb[48].mxu0  ;;  %v13904_v47 = vpop.f32.mrb[48].mxu1  ;;  %14206 = vmatprep.subr.bf16.mxu1 %v18690_v7 }
 0x542   : > { %v13883_v19 = vpop.f32.mrb[49].mxu0  ;;  %v13905_v63 = vpop.f32.mrb[49].mxu1 }
 0x543   : > { %v13884_v52 = vadd.f32 %v13883_v19, %v13882_v15  ;;  %v13906_v5 = vadd.f32 %v13905_v63, %v13904_v47  ;;  %14185 = vmatpush3.bf16.msra.mxu0 %v18695_v42  ;;  %v13885_v55 = vpop.f32.mrb[50].mxu0  ;;  %v13907_v40 = vpop.f32.mrb[50].mxu1 }
 0x544   : > { %14207 = vmatpush3.bf16.msra.mxu1 %v18696_v51  ;;  %v13886_v33 = vpop.f32.mrb[51].mxu0  ;;  %v13908_v26 = vpop.f32.mrb[51].mxu1  ;;  %14186 = vmatprep.subr.bf16.mxu0 %v18697_v2  ;;  %v18730_v51 = vld [vmem:[#allocation52_spill] sm:$0xff]  ;;  %v18731_v2 = vld [vmem:[#allocation53_spill] sm:$0xff] }
 0x545   : > { %v11813_v58 = vadd.f32 %v13884_v52, %v18204_v21  ;;  %v13887_v1 = vadd.f32 %v13886_v33, %v13885_v55  ;;  %v13909_v7 = vadd.f32 %v13908_v26, %v13907_v40  ;;  %14208 = vmatprep.subr.bf16.mxu1 %v18698_v46  ;;  %v18732_v46 = vld [vmem:[#allocation56_spill] sm:$0xff] }
 0x547   : > { %v11854_v37 = vadd.f32 %v13906_v5, %v11813_v58  ;;  %v11816_v15 = vadd.f32 %v13887_v1, %v18204_v21  ;;  %14187 = vmatpush3.bf16.msra.mxu0 %v18699_v28 }
 0x548   : > { %14209 = vmatpush3.bf16.msra.mxu1 %v18700_v53  ;;  %14188 = vmatprep.subr.bf16.mxu0 %v17766_v34  ;;  %v18733_v34 = vld [vmem:[#allocation57_spill] sm:$0xff] }
 0x549   : > { %v11857_v42 = vadd.f32 %v13909_v7, %v11816_v15  ;;  %14210 = vmatprep.subr.bf16.mxu1 %v17768_v32 }
 0x54b   : > { %14189 = vmatpush3.bf16.msra.mxu0 %v17778_v25 }
 0x54c   : > { %14211 = vmatpush3.bf16.msra.mxu1 %v17780_v36  ;;  %14218 = vmatprep.subr.bf16.mxu0 %v17978_v10 }
 0x54d   : > { %14240 = vmatprep.subr.bf16.mxu1 %v17981_v35 }
 0x54e   : > { %12550 = vmatmul.mubr.bf16.vlgmr.msra.gmra.mrb[76].mxu0 %v18730_v51  ;;  %v18734_v51 = vld [vmem:[#allocation12_spill] sm:$0xff] }
 0x54f   : > { %12591 = vmatmul.mubr.bf16.vlgmr.msra.gmra.mrb[76].mxu1 %v18731_v2  ;;  %14219 = vmatpush3.bf16.msra.mxu0 %v17986_v31  ;;  %v18735_v2 = vld [vmem:[#allocation13_spill] sm:$0xff] }
 0x550   : > { %12686 = vmatprep.mubr.bf16.mxu0 %v18732_v46  ;;  %14241 = vmatpush3.bf16.msra.mxu1 %v17990_v30  ;;  %v18736_v46 = vld [vmem:[#allocation16_spill] sm:$0xff] }
 0x551   : > { %12727 = vmatprep.mubr.bf16.mxu1 %v18733_v34  ;;  %14220 = vmatprep.subr.bf16.mxu0 %v17994_v13  ;;  %v18737_v34 = vld [vmem:[#allocation17_spill] sm:$0xff] }
 0x552   : > { %14242 = vmatprep.subr.bf16.mxu1 %v17997_v22 }
 0x553   : > { %14221 = vmatpush3.bf16.msra.mxu0 %v18000_v8 }
 0x554   : > { %14243 = vmatpush3.bf16.msra.mxu1 %v18003_v54  ;;  %14222 = vmatprep.subr.bf16.mxu0 %v18006_v38 }
 0x555   : > { %14244 = vmatprep.subr.bf16.mxu1 %v18009_v3 }
 0x557   : > { %14223 = vmatpush3.bf16.msra.mxu0 %v18012_v4 }
 0x558   : > { %14245 = vmatpush3.bf16.msra.mxu1 %v18015_v23  ;;  %14224 = vmatprep.subr.bf16.mxu0 %v18018_v49 }
 0x559   : > { %14246 = vmatprep.subr.bf16.mxu1 %v18021_v39 }
 0x55b   : > { %14225 = vmatpush3.bf16.msra.mxu0 %v18024_v59 }
 0x55c   : > { %14247 = vmatpush3.bf16.msra.mxu1 %v18027_v44  ;;  %14226 = vmatprep.subr.bf16.mxu0 %v18030_v45 }
 0x55d   : > { %14248 = vmatprep.subr.bf16.mxu1 %v18033_v16 }
 0x55f   : > { %14227 = vmatpush3.bf16.msra.mxu0 %v18036_v24 }
 0x560   : > { %14249 = vmatpush3.bf16.msra.mxu1 %v18039_v62  ;;  %14228 = vmatprep.subr.bf16.mxu0 %v18711_v11 }
 0x561   : > { %v13926_v25 = vpop.f32.mrb[52].mxu0  ;;  %v13948_v32 = vpop.f32.mrb[52].mxu1  ;;  %14250 = vmatprep.subr.bf16.mxu1 %v18712_v12 }
 0x562   : > { %v13927_v36 = vpop.f32.mrb[53].mxu0  ;;  %v13949_v28 = vpop.f32.mrb[53].mxu1 }
 0x563   : > { %v13928_v53 = vadd.f32 %v13927_v36, %v13926_v25  ;;  %v13950_v1 = vadd.f32 %v13949_v28, %v13948_v32  ;;  %v13929_v52 = vpop.f32.mrb[54].mxu0  ;;  %v13951_v47 = vpop.f32.mrb[54].mxu1  ;;  %14229 = vmatpush3.bf16.msra.mxu0 %v18713_v57  ;;  %v18738_v25 = vld [vmem:[#allocation30_spill] sm:$0xff]  ;;  %v18739_v32 = vld [vmem:[#allocation31_spill] sm:$0xff]  ;;  %v18740_v36 = vld [vmem:[#allocation32_spill] sm:$0xff] }
 0x564   : > { %14251 = vmatpush3.bf16.msra.mxu1 %v18714_v50  ;;  %v13930_v19 = vpop.f32.mrb[55].mxu0  ;;  %v13952_v63 = vpop.f32.mrb[55].mxu1  ;;  %14230 = vmatprep.subr.bf16.mxu0 %v18715_v56 }
 0x565   : > { %v11895_v5 = vadd.f32 %v13928_v53, %v11854_v37  ;;  %v13931_v55 = vadd.f32 %v13930_v19, %v13929_v52  ;;  %v13953_v40 = vadd.f32 %v13952_v63, %v13951_v47  ;;  %14252 = vmatprep.subr.bf16.mxu1 %v18716_v61  ;;  %v18741_v53 = vld [vmem:[#allocation33_spill] sm:$0xff]  ;;  %v18742_v52 = vld [vmem:[#allocation36_spill] sm:$0xff]  ;;  %v18744_v63 = vld [vmem:[#allocation38_spill] sm:$0xff] }
 0x566   : > { %v18743_v47 = vld [vmem:[#allocation37_spill] sm:$0xff] }
 0x567   : > { %v18248_v33 = vadd.f32 %v13950_v1, %v11895_v5  ;;  %v11898_v26 = vadd.f32 %v13931_v55, %v11857_v42  ;;  %14231 = vmatpush3.bf16.msra.mxu0 %v18717_v6  ;;  %v18280_v55 = vld [vmem:[#allocation6 + $0x118] sm:$0xff]  }
 0x568   : > { %14253 = vmatpush3.bf16.msra.mxu1 %v18718_v14  ;;  %14232 = vmatprep.subr.bf16.mxu0 %v18066_v17  ;;  %18745 = vst [vmem:[#allocation39_spill] sm:$0xff] %v18280_v55 }
 0x569   : > { %v11942_v58 = vsub.f32 0.0, %v18248_v33  ;;  %v18254_v7 = vadd.f32 %v13953_v40, %v11898_v26  ;;  %14254 = vmatprep.subr.bf16.mxu1 %v18069_v48  ;;  %v18283_v40 = vld [vmem:[#allocation6 + $0x198] sm:$0xff]   ;;  %v18286_v26 = vld [vmem:[#allocation6 + $0x160] sm:$0xff]  }
 0x56a   : > { %18746 = vst [vmem:[#allocation40_spill] sm:$0xff] %v18283_v40  ;;  %18747 = vst [vmem:[#allocation41_spill] sm:$0xff] %v18286_v26 }
 0x56b   : > { %v11944_v37 = vmul.f32 1.442695, %v11942_v58  ;;  %v11943_v15 = vsub.f32 0.0, %v18254_v7  ;;  %14233 = vmatpush3.bf16.msra.mxu0 %v18072_v41  ;;  %v18289_v58 = vld [vmem:[#allocation6 + $0x1e0] sm:$0xff]  }
 0x56c   : > { %14255 = vmatpush3.bf16.msra.mxu1 %v18075_v29  ;;  %14262 = vmatprep.subr.bf16.mxu0 %v18078_v9  ;;  %18748 = vst [vmem:[#allocation42_spill] sm:$0xff] %v18289_v58 }
 0x56d   : > { %15418 = vpow2.f32 %v11944_v37  ;;  %v11946_v42 = vmul.f32 1.442695, %v11943_v15  ;;  %14284 = vmatprep.subr.bf16.mxu1 %v18081_v27  ;;  %v18749_v37 = vlaneseq }
 0x56e   : > { %12687 = vmatmul.mubr.bf16.vlgmr.msra.gmra.mrb[80].mxu0 %v18734_v51  ;;  %v18298_v51 = vld [vmem:[#allocation6 + $0x1a0] sm:$0xff]  }
 0x56f   : > { %15420 = vpow2.f32 %v11946_v42  ;;  %12728 = vmatmul.mubr.bf16.vlgmr.msra.gmra.mrb[80].mxu1 %v18735_v2  ;;  %14263 = vmatpush3.bf16.msra.mxu0 %v18158_v60  ;;  %v18293_v15 = vand.u32 127, %v18749_v37  ;;  %v18295_v42 = vld [vmem:[#allocation6 + $0x120] sm:$0xff]   ;;  %18751 = vst [vmem:[#allocation48_spill] sm:$0xff] %v18298_v51  ;;  %v18301_v2 = vld [vmem:[#allocation6 + $0x168] sm:$0xff]  }
 0x570   : > { %12768 = vmatprep.mubr.bf16.mxu0 %v18736_v46  ;;  %14285 = vmatpush3.bf16.msra.mxu1 %v18162_v18  ;;  %18750 = vst [vmem:[#allocation43_spill] sm:$0xff] %v18295_v42  ;;  %18752 = vst [vmem:[#allocation49_spill] sm:$0xff] %v18301_v2 }
 0x571   : > { %12809 = vmatprep.mubr.bf16.mxu1 %v18737_v34  ;;  %14264 = vmatprep.subr.bf16.mxu0 %v18166_v20  ;;  %v18304_v34 = vld [vmem:[#allocation6 + $0x1e8] sm:$0xff]   ;;  %vm11952_vm4 = vcmp.lt.s32.totalorder %v18293_v15, 18 }
 0x572   : > { %14286 = vmatprep.subr.bf16.mxu1 %v18169_v43  ;;  %18753 = vst [vmem:[#allocation44_spill] sm:$0xff] %v18304_v34 }
 0x573   : > { %14265 = vmatpush3.bf16.msra.mxu0 %v18172_v0 }
 0x574   : > { %14287 = vmatpush3.bf16.msra.mxu1 %v18738_v25  ;;  %14266 = vmatprep.subr.bf16.mxu0 %v18739_v32 }
 0x575   : > { %14288 = vmatprep.subr.bf16.mxu1 %v18740_v36 }
 0x577   : > { %v15419_v28 = vpop.eup %15418  ;;  %14267 = vmatpush3.bf16.msra.mxu0 %v18741_v53 }
 0x578   : > { %v11948_v1 = vadd.f32 1.0, %v15419_v28  ;;  %14289 = vmatpush3.bf16.msra.mxu1 %v18742_v52  ;;  %14268 = vmatprep.subr.bf16.mxu0 %v18743_v47  ;;  %v18334_v52 = vld [vmem:[#allocation6 + $0x130] sm:$0xff]  }
 0x579   : > { %v15421_v19 = vpop.eup %15420  ;;  %14290 = vmatprep.subr.bf16.mxu1 %v18744_v63 }
 0x57a   : > { %15422 = vrcp.f32 %v11948_v1  ;;  %v11949_v5 = vadd.f32 1.0, %v15421_v19 }
 0x57b   : > { %14269 = vmatpush3.bf16.msra.mxu0 %v18280_v55 }
 0x57c   : > { %15424 = vrcp.f32 %v11949_v5  ;;  %14291 = vmatpush3.bf16.msra.mxu1 %v18283_v40  ;;  %14270 = vmatprep.subr.bf16.mxu0 %v18286_v26  ;;  %v18319_v40 = vld [vmem:[#allocation6 + $0x170] sm:$0xff]  }
 0x57d   : > { %14292 = vmatprep.subr.bf16.mxu1 %v18289_v58  ;;  %v18316_v58 = vld [vmem:[#allocation6 + $0x1a8] sm:$0xff]   ;;  %18756 = vst [vmem:[#allocation23_spill] sm:$0xff] %v18319_v40 }
 0x57e   : > { %18755 = vst [vmem:[#allocation22_spill] sm:$0xff] %v18316_v58 }
 0x57f   : > { %14271 = vmatpush3.bf16.msra.mxu0 %v18295_v42 }
 0x580   : > { %14293 = vmatpush3.bf16.msra.mxu1 %v18298_v51  ;;  %14272 = vmatprep.subr.bf16.mxu0 %v18301_v2  ;;  %v18313_v51 = vld [vmem:[#allocation6 + $0x128] sm:$0xff]  }
 0x581   : > { %v13970_v46 = vpop.f32.mrb[56].mxu0  ;;  %14294 = vmatprep.subr.bf16.mxu1 %v18304_v34  ;;  %18754 = vst [vmem:[#allocation45_spill] sm:$0xff] %v18313_v51 }
 0x582   : > { %v13992_v28 = vpop.f32.mrb[56].mxu1  ;;  %v13971_v1 = vpop.f32.mrb[57].mxu0 }
 0x583   : > { %v13972_v19 = vadd.f32 %v13971_v1, %v13970_v46  ;;  %v13993_v5 = vpop.f32.mrb[57].mxu1  ;;  %v13973_v37 = vpop.f32.mrb[58].mxu0  ;;  %14273 = vmatpush3.bf16.msra.mxu0 %v18313_v51 }
 0x584   : > { %v15423_v2 = vpop.eup %15422  ;;  %v13994_v42 = vadd.f32 %v13993_v5, %v13992_v28  ;;  %v13995_v34 = vpop.f32.mrb[58].mxu1  ;;  %14295 = vmatpush3.bf16.msra.mxu1 %v18316_v58  ;;  %14274 = vmatprep.subr.bf16.mxu0 %v18319_v40  ;;  %v18326_v28 = vld [vmem:[#allocation6 + $0x1f0] sm:$0xff]  }
 0x585   : > { %v13974_v26 = vpop.f32.mrb[59].mxu0  ;;  %v11953_v46 = vsel %vm11952_vm4, %v15423_v2, %v18248_v33  ;;  %v12032_v1 = vadd.f32 %v13972_v19, %v18204_v21  ;;  %v13996_v55 = vpop.f32.mrb[59].mxu1  ;;  %14296 = vmatprep.subr.bf16.mxu1 %v18326_v28  ;;  %v18338_v33 = vld [vmem:[#allocation6 + $0x1b0] sm:$0xff]   ;;  %v18344_v2 = vld [vmem:[#allocation6 + $0x1f8] sm:$0xff]  }
 0x586   : > { %v13975_v51 = vadd.f32 %v13974_v26, %v13973_v37  ;;  %v15425_v5 = vpop.eup %15424  ;;  %11955 = vst [vmem:[%s18311_s29] sm:$0xff] %v11953_v46  ;;  %v13997_v58 = vadd.f32 %v13996_v55, %v13995_v34  ;;  %v18341_v26 = vld [vmem:[#allocation6 + $0x178] sm:$0xff]  }
 0x587   : > { %v11954_v63 = vsel %vm11952_vm4, %v15425_v5, %v18254_v7  ;;  %v12073_v40 = vadd.f32 %v13994_v42, %v12032_v1  ;;  %14275 = vmatpush3.bf16.msra.mxu0 %v18334_v52  ;;  %v18347_v7 = vld [vmem:[#allocation6 + $0x138] sm:$0xff]  }
 0x588   : > { %v12035_v47 = vadd.f32 %v13975_v51, %v18204_v21  ;;  %11956 = vst [vmem:[%s18311_s29 + $0x8] sm:$0xff] %v11954_v63  ;;  %14297 = vmatpush3.bf16.msra.mxu1 %v18338_v33  ;;  %14276 = vmatprep.subr.bf16.mxu0 %v18341_v26  ;;  %v18350_v42 = vld [vmem:[#allocation6 + $0x1b8] sm:$0xff]   ;;  %v18776_v19 = vld [vmem:[#allocation45_spill] sm:$0xff] }
 0x589   : > { %14298 = vmatprep.subr.bf16.mxu1 %v18344_v2  ;;  %v18757_v63 = vld [vmem:[#allocation14_spill] sm:$0xff]  ;;  %v18758_v51 = vld [vmem:[#allocation15_spill] sm:$0xff] }
 0x58a   : > { %v12076_v55 = vadd.f32 %v13997_v58, %v12035_v47  ;;  %v18759_v47 = vld [vmem:[#allocation18_spill] sm:$0xff] }
 0x58b   : > { %14277 = vmatpush3.bf16.msra.mxu0 %v18347_v7  ;;  %v18760_v58 = vld [vmem:[#allocation46_spill] sm:$0xff] }
 0x58c   : > { %14299 = vmatpush3.bf16.msra.mxu1 %v18350_v42  ;;  %14306 = vmatprep.subr.bf16.mxu0 %v17978_v10  ;;  %v18777_v5 = vld [vmem:[#allocation22_spill] sm:$0xff] }
 0x58d   : > { %14328 = vmatprep.subr.bf16.mxu1 %v17981_v35 }
 0x58e   : > { %12769 = vmatmul.mubr.bf16.vlgmr.msra.gmra.mrb[84].mxu0 %v18757_v63  ;;  %v18778_v63 = vld [vmem:[#allocation23_spill] sm:$0xff] }
 0x58f   : > { %12810 = vmatmul.mubr.bf16.vlgmr.msra.gmra.mrb[84].mxu1 %v18758_v51  ;;  %14307 = vmatpush3.bf16.msra.mxu0 %v17986_v31 }
 0x590   : > { %12905 = vmatprep.mubr.bf16.mxu0 %v18759_v47  ;;  %14329 = vmatpush3.bf16.msra.mxu1 %v17990_v30 }
 0x591   : > { %12946 = vmatprep.mubr.bf16.mxu1 %v18760_v58  ;;  %14308 = vmatprep.subr.bf16.mxu0 %v17994_v13 }
 0x592   : > { %14330 = vmatprep.subr.bf16.mxu1 %v17997_v22 }
 0x593   : > { %14309 = vmatpush3.bf16.msra.mxu0 %v18000_v8 }
 0x594   : > { %14331 = vmatpush3.bf16.msra.mxu1 %v18003_v54  ;;  %14310 = vmatprep.subr.bf16.mxu0 %v18006_v38 }
 0x595   : > { %14332 = vmatprep.subr.bf16.mxu1 %v18009_v3 }
 0x597   : > { %14311 = vmatpush3.bf16.msra.mxu0 %v18012_v4 }
 0x598   : > { %14333 = vmatpush3.bf16.msra.mxu1 %v18015_v23  ;;  %14312 = vmatprep.subr.bf16.mxu0 %v18018_v49 }
 0x599   : > { %14334 = vmatprep.subr.bf16.mxu1 %v18021_v39 }
 0x59b   : > { %14313 = vmatpush3.bf16.msra.mxu0 %v18024_v59 }
 0x59c   : > { %14335 = vmatpush3.bf16.msra.mxu1 %v18027_v44  ;;  %14314 = vmatprep.subr.bf16.mxu0 %v18030_v45 }
 0x59d   : > { %14336 = vmatprep.subr.bf16.mxu1 %v18033_v16 }
 0x59f   : > { %14315 = vmatpush3.bf16.msra.mxu0 %v18036_v24 }
 0x5a0   : > { %14337 = vmatpush3.bf16.msra.mxu1 %v18039_v62  ;;  %14316 = vmatprep.subr.bf16.mxu0 %v18711_v11  ;;  %v18761_v11 = vld [vmem:[#allocation34_spill] sm:$0xff] }
 0x5a1   : > { %v14014_v10 = vpop.f32.mrb[60].mxu0  ;;  %14338 = vmatprep.subr.bf16.mxu1 %v18712_v12  ;;  %v18766_v12 = vld [vmem:[#allocation37_spill] sm:$0xff] }
 0x5a2   : > { %v14036_v35 = vpop.f32.mrb[60].mxu1  ;;  %v14015_v31 = vpop.f32.mrb[61].mxu0 }
 0x5a3   : > { %v14016_v39 = vadd.f32 %v14015_v31, %v14014_v10  ;;  %v14037_v30 = vpop.f32.mrb[61].mxu1  ;;  %v14017_v59 = vpop.f32.mrb[62].mxu0  ;;  %14317 = vmatpush3.bf16.msra.mxu0 %v18713_v57 }
 0x5a4   : > { %v14038_v44 = vadd.f32 %v14037_v30, %v14036_v35  ;;  %v14039_v45 = vpop.f32.mrb[62].mxu1  ;;  %14339 = vmatpush3.bf16.msra.mxu1 %v18714_v50  ;;  %v14018_v16 = vpop.f32.mrb[63].mxu0  ;;  %14318 = vmatprep.subr.bf16.mxu0 %v18715_v56  ;;  %v18767_v50 = vld [vmem:[#allocation38_spill] sm:$0xff] }
 0x5a5   : > { %v12114_v62 = vadd.f32 %v14016_v39, %v12073_v40  ;;  %v14019_v24 = vadd.f32 %v14018_v16, %v14017_v59  ;;  %v14040_v13 = vpop.f32.mrb[63].mxu1  ;;  %14340 = vmatprep.subr.bf16.mxu1 %v18716_v61  ;;  %v18768_v61 = vld [vmem:[#allocation39_spill] sm:$0xff] }
 0x5a6   : > { %v14041_v22 = vadd.f32 %v14040_v13, %v14039_v45  ;;  %v18780_v45 = vld [vmem:[#allocation47_spill] sm:$0xff] }
 0x5a7   : > { %v12155_v8 = vadd.f32 %v14038_v44, %v12114_v62  ;;  %v12117_v54 = vadd.f32 %v14019_v24, %v12076_v55  ;;  %14319 = vmatpush3.bf16.msra.mxu0 %v18717_v6  ;;  %v18769_v6 = vld [vmem:[#allocation40_spill] sm:$0xff] }
 0x5a8   : > { %14341 = vmatpush3.bf16.msra.mxu1 %v18718_v14  ;;  %14320 = vmatprep.subr.bf16.mxu0 %v18066_v17  ;;  %v18762_v17 = vld [vmem:[#allocation35_spill] sm:$0xff]  ;;  %v18770_v14 = vld [vmem:[#allocation41_spill] sm:$0xff] }
 0x5a9   : > { %v12161_v38 = vsub.f32 0.0, %v12155_v8  ;;  %v18386_v3 = vadd.f32 %v14041_v22, %v12117_v54  ;;  %14342 = vmatprep.subr.bf16.mxu1 %v18069_v48  ;;  %v18763_v48 = vld [vmem:[#allocation20_spill] sm:$0xff] }
 0x5ab   : > { %v12163_v4 = vmul.f32 1.442695, %v12161_v38  ;;  %v12162_v23 = vsub.f32 0.0, %v18386_v3  ;;  %14321 = vmatpush3.bf16.msra.mxu0 %v18072_v41  ;;  %v18764_v41 = vld [vmem:[#allocation21_spill] sm:$0xff] }
 0x5ac   : > { %14343 = vmatpush3.bf16.msra.mxu1 %v18075_v29  ;;  %14350 = vmatprep.subr.bf16.mxu0 %v18078_v9  ;;  %v18765_v9 = vld [vmem:[#allocation36_spill] sm:$0xff] }
 0x5ad   : > { %15426 = vpow2.f32 %v12163_v4  ;;  %v12165_v49 = vmul.f32 1.442695, %v12162_v23  ;;  %14372 = vmatprep.subr.bf16.mxu1 %v18081_v27 }
 0x5ae   : > { %12906 = vmatmul.mubr.bf16.vlgmr.msra.gmra.mrb[88].mxu0 %v18761_v11 }
 0x5af   : > { %15428 = vpow2.f32 %v12165_v49  ;;  %12947 = vmatmul.mubr.bf16.vlgmr.msra.gmra.mrb[88].mxu1 %v18762_v17  ;;  %14351 = vmatpush3.bf16.msra.mxu0 %v18158_v60  ;;  %v18771_v60 = vld [vmem:[#allocation42_spill] sm:$0xff] }
 0x5b0   : > { %12987 = vmatprep.mubr.bf16.mxu0 %v18763_v48  ;;  %14373 = vmatpush3.bf16.msra.mxu1 %v18162_v18  ;;  %v18772_v18 = vld [vmem:[#allocation43_spill] sm:$0xff] }
 0x5b1   : > { %13028 = vmatprep.mubr.bf16.mxu1 %v18764_v41  ;;  %14352 = vmatprep.subr.bf16.mxu0 %v18166_v20  ;;  %v18773_v20 = vld [vmem:[#allocation48_spill] sm:$0xff] }
 0x5b2   : > { %14374 = vmatprep.subr.bf16.mxu1 %v18169_v43  ;;  %v18774_v43 = vld [vmem:[#allocation49_spill] sm:$0xff] }
 0x5b3   : > { %14353 = vmatpush3.bf16.msra.mxu0 %v18172_v0 }
 0x5b4   : > { %14375 = vmatpush3.bf16.msra.mxu1 %v18738_v25  ;;  %14354 = vmatprep.subr.bf16.mxu0 %v18739_v32  ;;  %v18775_v25 = vld [vmem:[#allocation44_spill] sm:$0xff] }
 0x5b5   : > { %14376 = vmatprep.subr.bf16.mxu1 %v18740_v36 }
 0x5b7   : > { %v15427_v29 = vpop.eup %15426  ;;  %14355 = vmatpush3.bf16.msra.mxu0 %v18741_v53 }
 0x5b8   : > { %v12167_v27 = vadd.f32 1.0, %v15427_v29  ;;  %14377 = vmatpush3.bf16.msra.mxu1 %v18765_v9  ;;  %14356 = vmatprep.subr.bf16.mxu0 %v18766_v12 }
 0x5b9   : > { %v15429_v57 = vpop.eup %15428  ;;  %14378 = vmatprep.subr.bf16.mxu1 %v18767_v50 }
 0x5ba   : > { %15430 = vrcp.f32 %v12167_v27  ;;  %v12168_v56 = vadd.f32 1.0, %v15429_v57 }
 0x5bb   : > { %14357 = vmatpush3.bf16.msra.mxu0 %v18768_v61 }
 0x5bc   : > { %15432 = vrcp.f32 %v12168_v56  ;;  %14379 = vmatpush3.bf16.msra.mxu1 %v18769_v6  ;;  %14358 = vmatprep.subr.bf16.mxu0 %v18770_v14 }
 0x5bd   : > { %14380 = vmatprep.subr.bf16.mxu1 %v18771_v60 }
 0x5bf   : > { %14359 = vmatpush3.bf16.msra.mxu0 %v18772_v18 }
 0x5c0   : > { %14381 = vmatpush3.bf16.msra.mxu1 %v18773_v20  ;;  %14360 = vmatprep.subr.bf16.mxu0 %v18774_v43 }
 0x5c1   : > { %v14058_v0 = vpop.f32.mrb[64].mxu0  ;;  %14382 = vmatprep.subr.bf16.mxu1 %v18775_v25 }
 0x5c2   : > { %v14080_v32 = vpop.f32.mrb[64].mxu1  ;;  %v14059_v36 = vpop.f32.mrb[65].mxu0 }
 0x5c3   : > { %v14060_v53 = vadd.f32 %v14059_v36, %v14058_v0  ;;  %v14081_v40 = vpop.f32.mrb[65].mxu1  ;;  %v14061_v34 = vpop.f32.mrb[66].mxu0  ;;  %14361 = vmatpush3.bf16.msra.mxu0 %v18776_v19 }
 0x5c4   : > { %v15431_v37 = vpop.eup %15430  ;;  %v14082_v46 = vadd.f32 %v14081_v40, %v14080_v32  ;;  %v14083_v1 = vpop.f32.mrb[66].mxu1  ;;  %14383 = vmatpush3.bf16.msra.mxu1 %v18777_v5  ;;  %14362 = vmatprep.subr.bf16.mxu0 %v18778_v63 }
 0x5c5   : > { %v14062_v55 = vpop.f32.mrb[67].mxu0  ;;  %v12171_v51 = vsel %vm11952_vm4, %v15431_v37, %v12155_v8  ;;  %v12251_v47 = vadd.f32 %v14060_v53, %v18204_v21  ;;  %v14084_v10 = vpop.f32.mrb[67].mxu1  ;;  %14384 = vmatprep.subr.bf16.mxu1 %v18326_v28  ;;  %v18779_v28 = vld [vmem:[#allocation19_spill] sm:$0xff] }
 0x5c6   : > { %v14063_v58 = vadd.f32 %v14062_v55, %v14061_v34  ;;  %v15433_v35 = vpop.eup %15432  ;;  %13853 = vst [vmem:[%s18311_s29 + $0x10] sm:$0xff] %v12171_v51  ;;  %v14085_v31 = vadd.f32 %v14084_v10, %v14083_v1 }
 0x5c7   : > { %v12172_v39 = vsel %vm11952_vm4, %v15433_v35, %v18386_v3  ;;  %v12292_v30 = vadd.f32 %v14082_v46, %v12251_v47  ;;  %14363 = vmatpush3.bf16.msra.mxu0 %v18334_v52 }
 0x5c8   : > { %v12254_v59 = vadd.f32 %v14063_v58, %v18204_v21  ;;  %13854 = vst [vmem:[%s18311_s29 + $0x18] sm:$0xff] %v12172_v39  ;;  %14385 = vmatpush3.bf16.msra.mxu1 %v18338_v33  ;;  %14364 = vmatprep.subr.bf16.mxu0 %v18341_v26 }
 0x5c9   : > { %14386 = vmatprep.subr.bf16.mxu1 %v18344_v2 }
 0x5ca   : > { %v12295_v44 = vadd.f32 %v14085_v31, %v12254_v59 }
 0x5cb   : > { %14365 = vmatpush3.bf16.msra.mxu0 %v18347_v7 }
 0x5cc   : > { %14387 = vmatpush3.bf16.msra.mxu1 %v18350_v42 }
 0x5ce   : > { %12988 = vmatmul.mubr.bf16.vlgmr.msra.gmra.mrb[92].mxu0 %v18779_v28 }
 0x5cf   : > { %13029 = vmatmul.mubr.bf16.vlgmr.msra.gmra.mrb[92].mxu1 %v18780_v45 }
 0x5e1   : > { %v14102_v16 = vpop.f32.mrb[68].mxu0 }
 0x5e2   : > { %v14124_v62 = vpop.f32.mrb[68].mxu1  ;;  %v14103_v24 = vpop.f32.mrb[69].mxu0 }
 0x5e3   : > { %v14104_v52 = vadd.f32 %v14103_v24, %v14102_v16  ;;  %v14125_v13 = vpop.f32.mrb[69].mxu1  ;;  %v14105_v22 = vpop.f32.mrb[70].mxu0 }
 0x5e4   : > { %v14126_v33 = vadd.f32 %v14125_v13, %v14124_v62  ;;  %v14127_v8 = vpop.f32.mrb[70].mxu1  ;;  %v14106_v26 = vpop.f32.mrb[71].mxu0 }
 0x5e5   : > { %v12333_v54 = vadd.f32 %v14104_v52, %v12292_v30  ;;  %v14107_v38 = vadd.f32 %v14106_v26, %v14105_v22  ;;  %v14128_v2 = vpop.f32.mrb[71].mxu1 }
 0x5e6   : > { %v14129_v3 = vadd.f32 %v14128_v2, %v14127_v8 }
 0x5e7   : > { %v12374_v7 = vadd.f32 %v14126_v33, %v12333_v54  ;;  %v12336_v4 = vadd.f32 %v14107_v38, %v12295_v44 }
 0x5e9   : > { %v12380_v42 = vsub.f32 0.0, %v12374_v7  ;;  %v12377_v23 = vadd.f32 %v14129_v3, %v12336_v4 }
 0x5eb   : > { %v12382_v49 = vmul.f32 1.442695, %v12380_v42  ;;  %v12381_v11 = vsub.f32 0.0, %v12377_v23 }
 0x5ed   : > { %15434 = vpow2.f32 %v12382_v49  ;;  %v12384_v17 = vmul.f32 1.442695, %v12381_v11 }
 0x5ef   : > { %15436 = vpow2.f32 %v12384_v17 }
 0x5f7   : > { %v15435_v48 = vpop.eup %15434 }
 0x5f8   : > { %v12386_v41 = vadd.f32 1.0, %v15435_v48 }
 0x5f9   : > { %v15437_v29 = vpop.eup %15436 }
 0x5fa   : > { %15438 = vrcp.f32 %v12386_v41  ;;  %v12387_v27 = vadd.f32 1.0, %v15437_v29 }
 0x5fc   : > { %15440 = vrcp.f32 %v12387_v27 }
 0x601   : > { %v14146_v9 = vpop.f32.mrb[72].mxu0 }
 0x602   : > { %v14168_v12 = vpop.f32.mrb[72].mxu1  ;;  %v14147_v57 = vpop.f32.mrb[73].mxu0 }
 0x603   : > { %v14148_v50 = vadd.f32 %v14147_v57, %v14146_v9  ;;  %v14169_v56 = vpop.f32.mrb[73].mxu1  ;;  %v14149_v61 = vpop.f32.mrb[74].mxu0 }
 0x604   : > { %v15439_v6 = vpop.eup %15438  ;;  %v14170_v14 = vadd.f32 %v14169_v56, %v14168_v12  ;;  %v14171_v60 = vpop.f32.mrb[74].mxu1 }
 0x605   : > { %v14150_v18 = vpop.f32.mrb[75].mxu0  ;;  %v12390_v20 = vsel %vm11952_vm4, %v15439_v6, %v12374_v7  ;;  %v12470_v43 = vadd.f32 %v14148_v50, %v18204_v21  ;;  %v14172_v25 = vpop.f32.mrb[75].mxu1 }
 0x606   : > { %v14151_v0 = vadd.f32 %v14150_v18, %v14149_v61  ;;  %v15441_v32 = vpop.eup %15440  ;;  %13855 = vst [vmem:[%s18311_s29 + $0x20] sm:$0xff] %v12390_v20  ;;  %v14173_v36 = vadd.f32 %v14172_v25, %v14171_v60 }
 0x607   : > { %v12391_v53 = vsel %vm11952_vm4, %v15441_v32, %v12377_v23  ;;  %v12511_v40 = vadd.f32 %v14170_v14, %v12470_v43 }
 0x608   : > { %v12473_v34 = vadd.f32 %v14151_v0, %v18204_v21  ;;  %13856 = vst [vmem:[%s18311_s29 + $0x28] sm:$0xff] %v12391_v53 }
 0x60a   : > { %v12514_v19 = vadd.f32 %v14173_v36, %v12473_v34 }
 0x621   : > { %v14190_v37 = vpop.f32.mrb[76].mxu0 }
 0x622   : > { %v14212_v46 = vpop.f32.mrb[76].mxu1  ;;  %v14191_v1 = vpop.f32.mrb[77].mxu0 }
 0x623   : > { %v14192_v5 = vadd.f32 %v14191_v1, %v14190_v37  ;;  %v14213_v55 = vpop.f32.mrb[77].mxu1  ;;  %v14193_v63 = vpop.f32.mrb[78].mxu0 }
 0x624   : > { %v14214_v51 = vadd.f32 %v14213_v55, %v14212_v46  ;;  %v14215_v47 = vpop.f32.mrb[78].mxu1  ;;  %v14194_v58 = vpop.f32.mrb[79].mxu0 }
 0x625   : > { %v12552_v10 = vadd.f32 %v14192_v5, %v12511_v40  ;;  %v14195_v35 = vadd.f32 %v14194_v58, %v14193_v63  ;;  %v14216_v31 = vpop.f32.mrb[79].mxu1 }
 0x626   : > { %v14217_v39 = vadd.f32 %v14216_v31, %v14215_v47 }
 0x627   : > { %v12593_v30 = vadd.f32 %v14214_v51, %v12552_v10  ;;  %v12555_v59 = vadd.f32 %v14195_v35, %v12514_v19 }
 0x629   : > { %v12599_v44 = vsub.f32 0.0, %v12593_v30  ;;  %v12596_v28 = vadd.f32 %v14217_v39, %v12555_v59 }
 0x62b   : > { %v12601_v45 = vmul.f32 1.442695, %v12599_v44  ;;  %v12600_v16 = vsub.f32 0.0, %v12596_v28 }
 0x62d   : > { %15442 = vpow2.f32 %v12601_v45  ;;  %v12603_v62 = vmul.f32 1.442695, %v12600_v16 }
 0x62f   : > { %15444 = vpow2.f32 %v12603_v62 }
 0x637   : > { %v15443_v24 = vpop.eup %15442 }
 0x638   : > { %v12605_v52 = vadd.f32 1.0, %v15443_v24 }
 0x639   : > { %v15445_v13 = vpop.eup %15444 }
 0x63a   : > { %15446 = vrcp.f32 %v12605_v52  ;;  %v12606_v22 = vadd.f32 1.0, %v15445_v13 }
 0x63c   : > { %15448 = vrcp.f32 %v12606_v22 }
 0x641   : > { %v14234_v33 = vpop.f32.mrb[80].mxu0 }
 0x642   : > { %v14256_v8 = vpop.f32.mrb[80].mxu1  ;;  %v14235_v26 = vpop.f32.mrb[81].mxu0 }
 0x643   : > { %v14236_v54 = vadd.f32 %v14235_v26, %v14234_v33  ;;  %v14257_v38 = vpop.f32.mrb[81].mxu1  ;;  %v14237_v2 = vpop.f32.mrb[82].mxu0 }
 0x644   : > { %v15447_v3 = vpop.eup %15446  ;;  %v14258_v7 = vadd.f32 %v14257_v38, %v14256_v8  ;;  %v14259_v4 = vpop.f32.mrb[82].mxu1 }
 0x645   : > { %v14238_v42 = vpop.f32.mrb[83].mxu0  ;;  %v12609_v23 = vsel %vm11952_vm4, %v15447_v3, %v12593_v30  ;;  %v12689_v49 = vadd.f32 %v14236_v54, %v18204_v21  ;;  %v14260_v17 = vpop.f32.mrb[83].mxu1 }
 0x646   : > { %v14239_v11 = vadd.f32 %v14238_v42, %v14237_v2  ;;  %v15449_v48 = vpop.eup %15448  ;;  %13857 = vst [vmem:[%s18311_s29 + $0x30] sm:$0xff] %v12609_v23  ;;  %v14261_v41 = vadd.f32 %v14260_v17, %v14259_v4 }
 0x647   : > { %v12610_v29 = vsel %vm11952_vm4, %v15449_v48, %v12596_v28  ;;  %v12730_v27 = vadd.f32 %v14258_v7, %v12689_v49 }
 0x648   : > { %v12692_v9 = vadd.f32 %v14239_v11, %v18204_v21  ;;  %13858 = vst [vmem:[%s18311_s29 + $0x38] sm:$0xff] %v12610_v29 }
 0x64a   : > { %v12733_v12 = vadd.f32 %v14261_v41, %v12692_v9 }
 0x661   : > { %v14278_v57 = vpop.f32.mrb[84].mxu0 }
 0x662   : > { %v14300_v50 = vpop.f32.mrb[84].mxu1  ;;  %v14279_v56 = vpop.f32.mrb[85].mxu0 }
 0x663   : > { %v14280_v61 = vadd.f32 %v14279_v56, %v14278_v57  ;;  %v14301_v6 = vpop.f32.mrb[85].mxu1  ;;  %v14281_v14 = vpop.f32.mrb[86].mxu0 }
 0x664   : > { %v14302_v60 = vadd.f32 %v14301_v6, %v14300_v50  ;;  %v14303_v18 = vpop.f32.mrb[86].mxu1  ;;  %v14282_v20 = vpop.f32.mrb[87].mxu0 }
 0x665   : > { %v12771_v43 = vadd.f32 %v14280_v61, %v12730_v27  ;;  %v14283_v0 = vadd.f32 %v14282_v20, %v14281_v14  ;;  %v14304_v25 = vpop.f32.mrb[87].mxu1 }
 0x666   : > { %v14305_v32 = vadd.f32 %v14304_v25, %v14303_v18 }
 0x667   : > { %v12812_v36 = vadd.f32 %v14302_v60, %v12771_v43  ;;  %v12774_v53 = vadd.f32 %v14283_v0, %v12733_v12 }
 0x669   : > { %v12818_v40 = vsub.f32 0.0, %v12812_v36  ;;  %v12815_v34 = vadd.f32 %v14305_v32, %v12774_v53 }
 0x66b   : > { %v12820_v19 = vmul.f32 1.442695, %v12818_v40  ;;  %v12819_v37 = vsub.f32 0.0, %v12815_v34 }
 0x66d   : > { %15450 = vpow2.f32 %v12820_v19  ;;  %v12822_v46 = vmul.f32 1.442695, %v12819_v37 }
 0x66f   : > { %15452 = vpow2.f32 %v12822_v46 }
 0x677   : > { %v15451_v1 = vpop.eup %15450 }
 0x678   : > { %v12824_v5 = vadd.f32 1.0, %v15451_v1 }
 0x679   : > { %v15453_v55 = vpop.eup %15452 }
 0x67a   : > { %15454 = vrcp.f32 %v12824_v5  ;;  %v12825_v63 = vadd.f32 1.0, %v15453_v55 }
 0x67c   : > { %15456 = vrcp.f32 %v12825_v63 }
 0x681   : > { %v14322_v51 = vpop.f32.mrb[88].mxu0 }
 0x682   : > { %v14344_v47 = vpop.f32.mrb[88].mxu1  ;;  %v14323_v58 = vpop.f32.mrb[89].mxu0 }
 0x683   : > { %v14324_v10 = vadd.f32 %v14323_v58, %v14322_v51  ;;  %v14345_v35 = vpop.f32.mrb[89].mxu1  ;;  %v14325_v31 = vpop.f32.mrb[90].mxu0 }
 0x684   : > { %v15455_v39 = vpop.eup %15454  ;;  %v14346_v30 = vadd.f32 %v14345_v35, %v14344_v47  ;;  %v14347_v59 = vpop.f32.mrb[90].mxu1 }
 0x685   : > { %v14326_v44 = vpop.f32.mrb[91].mxu0  ;;  %v12828_v28 = vsel %vm11952_vm4, %v15455_v39, %v12812_v36  ;;  %v12908_v45 = vadd.f32 %v14324_v10, %v18204_v21  ;;  %v14348_v62 = vpop.f32.mrb[91].mxu1 }
 0x686   : > { %v14327_v16 = vadd.f32 %v14326_v44, %v14325_v31  ;;  %v15457_v24 = vpop.eup %15456  ;;  %13859 = vst [vmem:[%s18311_s29 + $0x40] sm:$0xff] %v12828_v28  ;;  %v14349_v52 = vadd.f32 %v14348_v62, %v14347_v59 }
 0x687   : > { %v12829_v13 = vsel %vm11952_vm4, %v15457_v24, %v12815_v34  ;;  %v12949_v22 = vadd.f32 %v14346_v30, %v12908_v45 }
 0x688   : > { %v12911_v33 = vadd.f32 %v14327_v16, %v18204_v21  ;;  %13860 = vst [vmem:[%s18311_s29 + $0x48] sm:$0xff] %v12829_v13 }
 0x68a   : > { %v12952_v8 = vadd.f32 %v14349_v52, %v12911_v33 }
 0x6a1   : > { %v14366_v26 = vpop.f32.mrb[92].mxu0 }
 0x6a2   : > { %v14388_v54 = vpop.f32.mrb[92].mxu1  ;;  %v14367_v38 = vpop.f32.mrb[93].mxu0 }
 0x6a3   : > { %v14368_v2 = vadd.f32 %v14367_v38, %v14366_v26  ;;  %v14389_v3 = vpop.f32.mrb[93].mxu1  ;;  %v14369_v7 = vpop.f32.mrb[94].mxu0 }
 0x6a4   : > { %v14390_v4 = vadd.f32 %v14389_v3, %v14388_v54  ;;  %v14391_v42 = vpop.f32.mrb[94].mxu1  ;;  %v14370_v23 = vpop.f32.mrb[95].mxu0 }
 0x6a5   : > { %v12990_v49 = vadd.f32 %v14368_v2, %v12949_v22  ;;  %v14371_v11 = vadd.f32 %v14370_v23, %v14369_v7  ;;  %v14392_v17 = vpop.f32.mrb[95].mxu1 }
 0x6a6   : > { %v14393_v48 = vadd.f32 %v14392_v17, %v14391_v42 }
 0x6a7   : > { %v13031_v41 = vadd.f32 %v14390_v4, %v12990_v49  ;;  %v12993_v29 = vadd.f32 %v14371_v11, %v12952_v8 }
 0x6a9   : > { %v13037_v27 = vsub.f32 0.0, %v13031_v41  ;;  %v13034_v21 = vadd.f32 %v14393_v48, %v12993_v29 }
 0x6ab   : > { %v13039_v9 = vmul.f32 1.442695, %v13037_v27  ;;  %v13038_v12 = vsub.f32 0.0, %v13034_v21 }
 0x6ad   : > { %15458 = vpow2.f32 %v13039_v9  ;;  %v13041_v57 = vmul.f32 1.442695, %v13038_v12 }
 0x6af   : > { %15460 = vpow2.f32 %v13041_v57 }
 0x6b7   : > { %v15459_v50 = vpop.eup %15458 }
 0x6b8   : > { %v13043_v56 = vadd.f32 1.0, %v15459_v50 }
 0x6b9   : > { %v15461_v61 = vpop.eup %15460 }
 0x6ba   : > { %15462 = vrcp.f32 %v13043_v56  ;;  %v13044_v6 = vadd.f32 1.0, %v15461_v61 }
 0x6bc   : > { %15464 = vrcp.f32 %v13044_v6 }
 0x6c4   : > { %v15463_v14 = vpop.eup %15462 }
 0x6c5   : > { %v13047_v60 = vsel %vm11952_vm4, %v15463_v14, %v13031_v41 }
 0x6c6   : > { %v15465_v18 = vpop.eup %15464  ;;  %13861 = vst [vmem:[%s18311_s29 + $0x50] sm:$0xff] %v13047_v60 }
 0x6c7   : > { %v13048_v20 = vsel %vm11952_vm4, %v15465_v18, %v13034_v21 }
 0x6c8   : > { %13862 = vst [vmem:[%s18311_s29 + $0x58] sm:$0xff] %v13048_v20 }
 0x6c9 PF: > { %s19_s25 = sadd.s32 1, %s15696_s25   ;;  %s18781_s21 = smov %s15688_s23 }
 0x6ca   : > { %p16_p11 = scmp.ge.s32.totalorder %s19_s25, 8   ;;  %s18782_s22 = smov %s15692_s24 }
 0x6cb   : > { %s18783_s23 = smov %s18786_s8  ;;  %s18784_s24 = smov %s18790_s26 }
 0x6cc   :  { %18 = sbr.rel (!%p16_p11) target bundleno = 7 (0x7), region = 113 }
 0x6d3   :  { %13082 = vsyncpa [#allocation3], 1 }
 0x6d4   :  { %13084 = vsyncpa [#allocation3 + $0x1], 1 }
 0x6d5   :  { %13085 = vsyncpa [#allocation5], 1 }
 0x6d6   :  { %13086 = vsyncpa [#allocation8], 1 }

</bundles_post_ra>
